<compile_context>
chip_gen: v6e
topology: v6e:2x2x1
jax: 0.10.0
libtpu: 0.0.40
codegen_flags: <defaults>
</compile_context>

<pallas_src>
import math

import jax
import jax.numpy as jnp
from jax.experimental import pallas as pl
from jax.experimental.pallas import tpu as pltpu


# ---------------------------------------------------------------------------
# Model configuration (mirrors the PyTorch __init__ shapes)
# ---------------------------------------------------------------------------
VOCAB_SIZES = {"pitch": 17, "duration": 11, "offset": 7}
VOCAB_LIST = list(VOCAB_SIZES.values())          # [17, 11, 7]
EMB_SIZES = [16, 8, 8]                           # per-feature embedding sizes
TOTAL_EMB = sum(EMB_SIZES)                       # config.emb.total_size = 32
HIDDEN = 32                                      # gru.hidden_size == gru_size
NUM_LAYERS = 2                                   # gru.num_layers
SPLIT = VOCAB_LIST[1]                            # 11: softmax split point
PROJ_OUT = VOCAB_LIST[1] + VOCAB_LIST[2]         # 18: proj output width


# ---------------------------------------------------------------------------
# In-kernel helpers (operate on VMEM *values* for one batch element)
# ---------------------------------------------------------------------------
def _gru_seq(x_seq, w_ih, w_hh, b_ih, b_hh, h0):
    """Unidirectional GRU over a (T, Din) sequence (one batch element).

    The input projection for all time steps is hoisted out of the recurrence
    and the short static time loop is fully unrolled.
    """
    T = x_seq.shape[0]
    H = w_hh.shape[0]
    gi_all = jnp.dot(x_seq, w_ih, preferred_element_type=jnp.float32) + b_ih  # (T, 3H)
    h = h0                                                                    # (1, H)
    outs = []
    for t in range(T):                         # static unroll (T small & static)
        gi = gi_all[t:t + 1]                   # (1, 3H)
        gh = jnp.dot(h, w_hh, preferred_element_type=jnp.float32) + b_hh
        r = jax.nn.sigmoid(gi[:, :H] + gh[:, :H])
        z = jax.nn.sigmoid(gi[:, H:2 * H] + gh[:, H:2 * H])
        n = jnp.tanh(gi[:, 2 * H:] + r * gh[:, 2 * H:])
        h = (1.0 - z) * n + z * h
        outs.append(h)
    return jnp.concatenate(outs, axis=0)       # (T, H)


def _attention(dec, enc, mask, wq, bq, wk, bk, wv, bv):
    """QKV attention for one batch element.

    dec: (T, H) decoder states, enc: (S, H) encoder states, mask: (1, S).
    Returns (attention_vec (T, H), attention_weight (T, S)); the weights are a
    softmax over the source axis S (== torch.softmax(score, dim=1)).
    """
    q = jnp.dot(dec, wq, preferred_element_type=jnp.float32) + bq   # (T, H)
    k = jnp.dot(enc, wk, preferred_element_type=jnp.float32) + bk   # (S, H)
    v = jnp.dot(enc, wv, preferred_element_type=jnp.float32) + bv   # (S, H)
    # score[t, s] = <q_t, k_s>  (transposed view of torch's (S, T) score)
    score = jax.lax.dot_general(q, k, (((1,), (1,)), ((), ())),
                                preferred_element_type=jnp.float32)  # (T, S)
    score = jnp.where(mask > 0.5, score, -1e30)
    m = jnp.max(score, axis=-1, keepdims=True)
    e = jnp.exp(score - m)
    aw = e / jnp.sum(e, axis=-1, keepdims=True)                      # (T, S)
    vec = jnp.dot(aw, v, preferred_element_type=jnp.float32)         # (T, H)
    return vec, aw


def _softmax_last(x):
    m = jnp.max(x, axis=-1, keepdims=True)
    e = jnp.exp(x - m)
    return e / jnp.sum(e, axis=-1, keepdims=True)


# ---------------------------------------------------------------------------
# Fused decoder kernel (one grid step == one batch element)
# ---------------------------------------------------------------------------
def decoder_kernel(
    x_ref, enc_ref, h0_ref, mask_ref,
    w_ih0, w_hh0, b_ih0, b_hh0,          # self.rnn layer 0
    w_ih1, w_hh1, b_ih1, b_hh1,          # self.rnn layer 1
    wq1, bq1, wk1, bk1, wv1, bv1,        # query / key / value
    w_ihf, w_hhf, b_ihf, b_hhf,          # final_rnn
    wq2, bq2, wk2, bk2, wv2, bv2,        # query2 / key2 / value2
    w_ihf2, w_hhf2, b_ihf2, b_hhf2,      # final_rnn2
    wp, bp,                              # proj
    prob_ref, attn_ref,
):
    H = HIDDEN
    x = x_ref[0]            # (T, D)  embedded target sequence
    enc = enc_ref[0]        # (S, H)  encoder hidden states by t
    h0 = h0_ref[0]          # (L, H)  enc_out -> initial hidden of self.rnn
    mask = mask_ref[0]      # (1, S)  1.0 where source position is valid

    # --- self.rnn: 2-layer unidirectional GRU, h0 = enc_out ------------------
    h_l0 = _gru_seq(x, w_ih0[...], w_hh0[...], b_ih0[...], b_hh0[...], h0[0:1])
    dec_hs = _gru_seq(h_l0, w_ih1[...], w_hh1[...], b_ih1[...], b_hh1[...],
                      h0[1:2])                                        # (T, H)

    # --- attention 1 ----------------------------------------------------------
    vec1, _ = _attention(dec_hs, enc, mask,
                         wq1[...], bq1[...], wk1[...], bk1[...], wv1[...], bv1[...])
    cat1 = jnp.concatenate([dec_hs, vec1], axis=-1)                   # (T, 2H)
    # TODO(synk): PackedDropout(emb_dropout) is identity in eval mode.

    # --- final_rnn (1 layer, zero initial hidden) -----------------------------
    zero_h = jnp.zeros((1, H), jnp.float32)
    fr1 = _gru_seq(cat1, w_ihf[...], w_hhf[...], b_ihf[...], b_hhf[...], zero_h)

    # --- attention 2 (these weights are the module's returned attention) ------
    vec2, aw2 = _attention(fr1, enc, mask,
                           wq2[...], bq2[...], wk2[...], bk2[...], wv2[...], bv2[...])
    cat2 = jnp.concatenate([fr1, vec2], axis=-1)                      # (T, 2H)

    # --- final_rnn2 ------------------------------------------------------------
    fr2 = _gru_seq(cat2, w_ihf2[...], w_hhf2[...], b_ihf2[...], b_hhf2[...], zero_h)

    # --- projection + per-head softmax ----------------------------------------
    logit = jnp.dot(fr2, wp[...], preferred_element_type=jnp.float32) + bp[...]
    prob = jnp.concatenate(
        [_softmax_last(logit[:, :SPLIT]), _softmax_last(logit[:, SPLIT:])], axis=-1)

    prob_ref[0] = prob                  # (T, P)
    attn_ref[0] = aw2.T                 # (S, T): softmax over S, torch layout


# ---------------------------------------------------------------------------
# Parameter construction (deterministic, pre-transposed for the kernel)
# ---------------------------------------------------------------------------
def make_params(key):
    keys = jax.random.split(key, 40)
    ki = iter(keys)
    k = 1.0 / math.sqrt(HIDDEN)

    def unif(shape, scale=k):
        return jax.random.uniform(next(ki), shape, jnp.float32, -scale, scale)

    emb_tables = [jax.random.normal(next(ki), (v, e), jnp.float32)
                  for v, e in zip(VOCAB_SIZES.values(), EMB_SIZES)]

    def gru_params(in_size):
        # Pre-transposed: w_ih (in, 3H), w_hh (H, 3H), biases (1, 3H); gates [r|z|n].
        return (unif((in_size, 3 * HIDDEN)), unif((HIDDEN, 3 * HIDDEN)),
                unif((1, 3 * HIDDEN)), unif((1, 3 * HIDDEN)))

    def linear_params(in_size, out_size):
        kk = 1.0 / math.sqrt(in_size)
        return (unif((in_size, out_size), kk), unif((1, out_size), kk))

    return {
        "emb_tables": emb_tables,
        "rnn": [gru_params(TOTAL_EMB), gru_params(HIDDEN)],
        "query": linear_params(HIDDEN, HIDDEN),
        "key": linear_params(HIDDEN, HIDDEN),
        "value": linear_params(HIDDEN, HIDDEN),
        "final_rnn": gru_params(2 * HIDDEN),
        "query2": linear_params(HIDDEN, HIDDEN),
        "key2": linear_params(HIDDEN, HIDDEN),
        "value2": linear_params(HIDDEN, HIDDEN),
        "final_rnn2": gru_params(2 * HIDDEN),
        # TODO(synk): the reference module declares proj = Linear(hidden+gru, P)
        # but feeds it the hidden-wide final_rnn2 output; proj is sized to the
        # tensor that actually reaches it (hidden -> P) so the forward is valid.
        "proj": linear_params(HIDDEN, PROJ_OUT),
    }


# ---------------------------------------------------------------------------
# Forward pass wrapper (embedding gather + one fused pallas_call)
# ---------------------------------------------------------------------------
@jax.jit
def decoder_forward(src_tokens, tgt_tokens, enc_hidden_by_t, enc_out, params):
    """src_tokens (B,S,3) i32, tgt_tokens (B,T,3) i32,
    enc_hidden_by_t (B,S,H) f32, enc_out (L,B,H) f32.
    Returns (prob (B,T,P), attention_weight (B,S,T))."""
    B, T, _ = tgt_tokens.shape
    S = src_tokens.shape[1]

    # MultiEmbedding: per-feature lookup + concat (cheap gather, done in XLA).
    embs = [params["emb_tables"][i][tgt_tokens[..., i]] for i in range(len(EMB_SIZES))]
    x = jnp.concatenate(embs, axis=-1).astype(jnp.float32)             # (B, T, D)

    mask = (src_tokens[..., 1] != 0).astype(jnp.float32)[:, None, :]   # (B, 1, S)
    h0 = jnp.transpose(enc_out, (1, 0, 2)).astype(jnp.float32)         # (B, L, H)
    enc = enc_hidden_by_t.astype(jnp.float32)

    weights = []
    for layer in params["rnn"]:
        weights.extend(layer)
    for name in ("query", "key", "value"):
        weights.extend(params[name])
    weights.extend(params["final_rnn"])
    for name in ("query2", "key2", "value2"):
        weights.extend(params[name])
    weights.extend(params["final_rnn2"])
    weights.extend(params["proj"])

    data_specs = [
        pl.BlockSpec((1, T, TOTAL_EMB), lambda b: (b, 0, 0)),
        pl.BlockSpec((1, S, HIDDEN), lambda b: (b, 0, 0)),
        pl.BlockSpec((1, NUM_LAYERS, HIDDEN), lambda b: (b, 0, 0)),
        pl.BlockSpec((1, 1, S), lambda b: (b, 0, 0)),
    ]
    weight_specs = [pl.BlockSpec(w.shape, lambda b, _n=w.ndim: (0,) * _n)
                    for w in weights]

    grid_spec = pltpu.PrefetchScalarGridSpec(
        num_scalar_prefetch=0,
        grid=(B,),
        in_specs=data_specs + weight_specs,
        out_specs=[
            pl.BlockSpec((1, T, PROJ_OUT), lambda b: (b, 0, 0)),
            pl.BlockSpec((1, S, T), lambda b: (b, 0, 0)),
        ],
    )

    prob, attn_w = pl.pallas_call(
        decoder_kernel,
        out_shape=(jax.ShapeDtypeStruct((B, T, PROJ_OUT), jnp.float32),
                   jax.ShapeDtypeStruct((B, S, T), jnp.float32)),
        grid_spec=grid_spec,
        compiler_params=pltpu.CompilerParams(
            dimension_semantics=("parallel",)),   # v7x: the 2 batch elems -> 2 TCs
    )(x, enc, h0, mask, *weights)

    # TODO(synk): PackedSequence re-packing has no JAX equivalent; prob is
    # returned as a dense padded tensor (full lengths).
    return prob, attn_w


# ---------------------------------------------------------------------------
# Main
# ---------------------------------------------------------------------------
if __name__ == "__main__":
    key = jax.random.PRNGKey(0)
    kp, k_src, k_tgt, k_enc, k_h0 = jax.random.split(key, 5)

    params = make_params(kp)

    B, S, T = 2, 8, 8
    vocab = jnp.array(VOCAB_LIST, jnp.int32)                           # (3,)
    src_tokens = jax.random.randint(k_src, (B, S, 3), 0, 1_000_000,
                                    dtype=jnp.int32) % vocab
    src_tokens = src_tokens.at[:, 0, 1].set(1)    # >=1 unmasked source position
    tgt_tokens = jax.random.randint(k_tgt, (B, T, 3), 0, 1_000_000,
                                    dtype=jnp.int32) % vocab
    enc_hidden_by_t = jax.random.normal(k_enc, (B, S, HIDDEN), jnp.float32)
    enc_out = jax.random.normal(k_h0, (NUM_LAYERS, B, HIDDEN), jnp.float32)

    prob, attn_w = decoder_forward(src_tokens, tgt_tokens, enc_hidden_by_t,
                                   enc_out, params)
    prob = jax.block_until_ready(prob)
    attn_w = jax.block_until_ready(attn_w)

    assert prob.shape == (B, T, PROJ_OUT), prob.shape
    assert attn_w.shape == (B, S, T), attn_w.shape
    assert bool(jnp.all(jnp.isfinite(prob))) and bool(jnp.all(jnp.isfinite(attn_w)))
    # Each softmax head sums to 1; attention weights sum to 1 over the source axis.
    assert bool(jnp.allclose(prob[..., :SPLIT].sum(-1), 1.0, atol=1e-3))
    assert bool(jnp.allclose(prob[..., SPLIT:].sum(-1), 1.0, atol=1e-3))
    assert bool(jnp.allclose(attn_w.sum(axis=1), 1.0, atol=1e-3))

    print("KERNEL_OK")
</pallas_src>

<mosaic_0001>
module attributes {stable_mosaic.version = 11 : i64} {
  func.func @decoder_kernel(%arg0: i32, %arg1: memref<1x8x32xf32, #tpu.memory_space<vmem>>, %arg2: memref<1x8x32xf32, #tpu.memory_space<vmem>>, %arg3: memref<1x2x32xf32, #tpu.memory_space<vmem>>, %arg4: memref<1x1x8xf32, #tpu.memory_space<vmem>>, %arg5: memref<32x96xf32, #tpu.memory_space<vmem>>, %arg6: memref<32x96xf32, #tpu.memory_space<vmem>>, %arg7: memref<1x96xf32, #tpu.memory_space<vmem>>, %arg8: memref<1x96xf32, #tpu.memory_space<vmem>>, %arg9: memref<32x96xf32, #tpu.memory_space<vmem>>, %arg10: memref<32x96xf32, #tpu.memory_space<vmem>>, %arg11: memref<1x96xf32, #tpu.memory_space<vmem>>, %arg12: memref<1x96xf32, #tpu.memory_space<vmem>>, %arg13: memref<32x32xf32, #tpu.memory_space<vmem>>, %arg14: memref<1x32xf32, #tpu.memory_space<vmem>>, %arg15: memref<32x32xf32, #tpu.memory_space<vmem>>, %arg16: memref<1x32xf32, #tpu.memory_space<vmem>>, %arg17: memref<32x32xf32, #tpu.memory_space<vmem>>, %arg18: memref<1x32xf32, #tpu.memory_space<vmem>>, %arg19: memref<64x96xf32, #tpu.memory_space<vmem>>, %arg20: memref<32x96xf32, #tpu.memory_space<vmem>>, %arg21: memref<1x96xf32, #tpu.memory_space<vmem>>, %arg22: memref<1x96xf32, #tpu.memory_space<vmem>>, %arg23: memref<32x32xf32, #tpu.memory_space<vmem>>, %arg24: memref<1x32xf32, #tpu.memory_space<vmem>>, %arg25: memref<32x32xf32, #tpu.memory_space<vmem>>, %arg26: memref<1x32xf32, #tpu.memory_space<vmem>>, %arg27: memref<32x32xf32, #tpu.memory_space<vmem>>, %arg28: memref<1x32xf32, #tpu.memory_space<vmem>>, %arg29: memref<64x96xf32, #tpu.memory_space<vmem>>, %arg30: memref<32x96xf32, #tpu.memory_space<vmem>>, %arg31: memref<1x96xf32, #tpu.memory_space<vmem>>, %arg32: memref<1x96xf32, #tpu.memory_space<vmem>>, %arg33: memref<32x18xf32, #tpu.memory_space<vmem>>, %arg34: memref<1x18xf32, #tpu.memory_space<vmem>>, %arg35: memref<1x8x18xf32, #tpu.memory_space<vmem>>, %arg36: memref<1x8x8xf32, #tpu.memory_space<vmem>>) attributes {dimension_semantics = [#tpu.dimension_semantics<parallel>], iteration_bounds = array<i64: 2>, scalar_prefetch = 0 : i64, scratch_operands = 0 : i64, tpu.core_type = #tpu.core_type<tc>, window_params = [{transform_indices = @transform_0, window_bounds = array<i64: 1, 8, 32>}, {transform_indices = @transform_1, window_bounds = array<i64: 1, 8, 32>}, {transform_indices = @transform_2, window_bounds = array<i64: 1, 2, 32>}, {transform_indices = @transform_3, window_bounds = array<i64: 1, 1, 8>}, {pipeline_mode = #tpu.pipeline_mode<synchronous>, transform_indices = @transform_4, window_bounds = array<i64: 32, 96>}, {pipeline_mode = #tpu.pipeline_mode<synchronous>, transform_indices = @transform_5, window_bounds = array<i64: 32, 96>}, {pipeline_mode = #tpu.pipeline_mode<synchronous>, transform_indices = @transform_6, window_bounds = array<i64: 1, 96>}, {pipeline_mode = #tpu.pipeline_mode<synchronous>, transform_indices = @transform_7, window_bounds = array<i64: 1, 96>}, {pipeline_mode = #tpu.pipeline_mode<synchronous>, transform_indices = @transform_8, window_bounds = array<i64: 32, 96>}, {pipeline_mode = #tpu.pipeline_mode<synchronous>, transform_indices = @transform_9, window_bounds = array<i64: 32, 96>}, {pipeline_mode = #tpu.pipeline_mode<synchronous>, transform_indices = @transform_10, window_bounds = array<i64: 1, 96>}, {pipeline_mode = #tpu.pipeline_mode<synchronous>, transform_indices = @transform_11, window_bounds = array<i64: 1, 96>}, {pipeline_mode = #tpu.pipeline_mode<synchronous>, transform_indices = @transform_12, window_bounds = array<i64: 32, 32>}, {pipeline_mode = #tpu.pipeline_mode<synchronous>, transform_indices = @transform_13, window_bounds = array<i64: 1, 32>}, {pipeline_mode = #tpu.pipeline_mode<synchronous>, transform_indices = @transform_14, window_bounds = array<i64: 32, 32>}, {pipeline_mode = #tpu.pipeline_mode<synchronous>, transform_indices = @transform_15, window_bounds = array<i64: 1, 32>}, {pipeline_mode = #tpu.pipeline_mode<synchronous>, transform_indices = @transform_16, window_bounds = array<i64: 32, 32>}, {pipeline_mode = #tpu.pipeline_mode<synchronous>, transform_indices = @transform_17, window_bounds = array<i64: 1, 32>}, {pipeline_mode = #tpu.pipeline_mode<synchronous>, transform_indices = @transform_18, window_bounds = array<i64: 64, 96>}, {pipeline_mode = #tpu.pipeline_mode<synchronous>, transform_indices = @transform_19, window_bounds = array<i64: 32, 96>}, {pipeline_mode = #tpu.pipeline_mode<synchronous>, transform_indices = @transform_20, window_bounds = array<i64: 1, 96>}, {pipeline_mode = #tpu.pipeline_mode<synchronous>, transform_indices = @transform_21, window_bounds = array<i64: 1, 96>}, {pipeline_mode = #tpu.pipeline_mode<synchronous>, transform_indices = @transform_22, window_bounds = array<i64: 32, 32>}, {pipeline_mode = #tpu.pipeline_mode<synchronous>, transform_indices = @transform_23, window_bounds = array<i64: 1, 32>}, {pipeline_mode = #tpu.pipeline_mode<synchronous>, transform_indices = @transform_24, window_bounds = array<i64: 32, 32>}, {pipeline_mode = #tpu.pipeline_mode<synchronous>, transform_indices = @transform_25, window_bounds = array<i64: 1, 32>}, {pipeline_mode = #tpu.pipeline_mode<synchronous>, transform_indices = @transform_26, window_bounds = array<i64: 32, 32>}, {pipeline_mode = #tpu.pipeline_mode<synchronous>, transform_indices = @transform_27, window_bounds = array<i64: 1, 32>}, {pipeline_mode = #tpu.pipeline_mode<synchronous>, transform_indices = @transform_28, window_bounds = array<i64: 64, 96>}, {pipeline_mode = #tpu.pipeline_mode<synchronous>, transform_indices = @transform_29, window_bounds = array<i64: 32, 96>}, {pipeline_mode = #tpu.pipeline_mode<synchronous>, transform_indices = @transform_30, window_bounds = array<i64: 1, 96>}, {pipeline_mode = #tpu.pipeline_mode<synchronous>, transform_indices = @transform_31, window_bounds = array<i64: 1, 96>}, {pipeline_mode = #tpu.pipeline_mode<synchronous>, transform_indices = @transform_32, window_bounds = array<i64: 32, 18>}, {pipeline_mode = #tpu.pipeline_mode<synchronous>, transform_indices = @transform_33, window_bounds = array<i64: 1, 18>}, {transform_indices = @transform_34, window_bounds = array<i64: 1, 8, 18>}, {transform_indices = @transform_35, window_bounds = array<i64: 1, 8, 8>}]} {
    %c0 = arith.constant 0 : index
    %c0_0 = arith.constant 0 : index
    %c0_1 = arith.constant 0 : index
    %0 = vector.load %arg1[%c0, %c0_0, %c0_1] : memref<1x8x32xf32, #tpu.memory_space<vmem>>, vector<1x8x32xf32>
    %1 = vector.shape_cast %0 : vector<1x8x32xf32> to vector<8x32xf32>
    %c0_2 = arith.constant 0 : index
    %c0_3 = arith.constant 0 : index
    %c0_4 = arith.constant 0 : index
    %2 = vector.load %arg2[%c0_2, %c0_3, %c0_4] : memref<1x8x32xf32, #tpu.memory_space<vmem>>, vector<1x8x32xf32>
    %3 = vector.shape_cast %2 : vector<1x8x32xf32> to vector<8x32xf32>
    %c0_5 = arith.constant 0 : index
    %c0_6 = arith.constant 0 : index
    %c0_7 = arith.constant 0 : index
    %4 = vector.load %arg3[%c0_5, %c0_6, %c0_7] : memref<1x2x32xf32, #tpu.memory_space<vmem>>, vector<1x2x32xf32>
    %5 = vector.shape_cast %4 : vector<1x2x32xf32> to vector<2x32xf32>
    %c0_8 = arith.constant 0 : index
    %c0_9 = arith.constant 0 : index
    %c0_10 = arith.constant 0 : index
    %6 = vector.load %arg4[%c0_8, %c0_9, %c0_10] : memref<1x1x8xf32, #tpu.memory_space<vmem>>, vector<1x1x8xf32>
    %7 = vector.shape_cast %6 : vector<1x1x8xf32> to vector<1x8xf32>
    %c0_11 = arith.constant 0 : index
    %c0_12 = arith.constant 0 : index
    %8 = vector.load %arg5[%c0_11, %c0_12] : memref<32x96xf32, #tpu.memory_space<vmem>>, vector<32x96xf32>
    %c0_13 = arith.constant 0 : index
    %c0_14 = arith.constant 0 : index
    %9 = vector.load %arg6[%c0_13, %c0_14] : memref<32x96xf32, #tpu.memory_space<vmem>>, vector<32x96xf32>
    %c0_15 = arith.constant 0 : index
    %c0_16 = arith.constant 0 : index
    %10 = vector.load %arg7[%c0_15, %c0_16] : memref<1x96xf32, #tpu.memory_space<vmem>>, vector<1x96xf32>
    %c0_17 = arith.constant 0 : index
    %c0_18 = arith.constant 0 : index
    %11 = vector.load %arg8[%c0_17, %c0_18] : memref<1x96xf32, #tpu.memory_space<vmem>>, vector<1x96xf32>
    %12 = vector.extract_strided_slice %5 {offsets = [0, 0], sizes = [1, 32], strides = [1, 1]} : vector<2x32xf32> to vector<1x32xf32>
    %cst = arith.constant dense<0.000000e+00> : vector<8x96xf32>
    %13 = tpu.matmul %1, %8, %cst {dimension_numbers = #tpu.dot_dimension_numbers<[1], [0], [0], [1], [0, 0, 1, 1], [], []>} : vector<8x32xf32>, vector<32x96xf32>, vector<8x96xf32> -> vector<8x96xf32>
    %14 = vector.broadcast %10 : vector<1x96xf32> to vector<8x96xf32>
    %15 = arith.addf %13, %14 : vector<8x96xf32>
    %16 = vector.extract_strided_slice %15 {offsets = [0, 0], sizes = [1, 96], strides = [1, 1]} : vector<8x96xf32> to vector<1x96xf32>
    %cst_19 = arith.constant dense<0.000000e+00> : vector<1x96xf32>
    %17 = tpu.matmul %12, %9, %cst_19 {dimension_numbers = #tpu.dot_dimension_numbers<[1], [0], [0], [1], [0, 0, 1, 1], [], []>} : vector<1x32xf32>, vector<32x96xf32>, vector<1x96xf32> -> vector<1x96xf32>
    %18 = arith.addf %17, %11 : vector<1x96xf32>
    %19 = vector.extract_strided_slice %16 {offsets = [0, 0], sizes = [1, 32], strides = [1, 1]} : vector<1x96xf32> to vector<1x32xf32>
    %20 = vector.extract_strided_slice %18 {offsets = [0, 0], sizes = [1, 32], strides = [1, 1]} : vector<1x96xf32> to vector<1x32xf32>
    %21 = arith.addf %19, %20 : vector<1x32xf32>
    %22 = arith.negf %21 : vector<1x32xf32>
    %23 = math.exp %22 : vector<1x32xf32>
    %cst_20 = arith.constant 1.000000e+00 : f32
    %24 = vector.broadcast %cst_20 : f32 to vector<1x32xf32>
    %25 = arith.addf %24, %23 : vector<1x32xf32>
    %26 = arith.divf %24, %25 : vector<1x32xf32>
    %27 = vector.extract_strided_slice %16 {offsets = [0, 32], sizes = [1, 32], strides = [1, 1]} : vector<1x96xf32> to vector<1x32xf32>
    %28 = vector.extract_strided_slice %18 {offsets = [0, 32], sizes = [1, 32], strides = [1, 1]} : vector<1x96xf32> to vector<1x32xf32>
    %29 = arith.addf %27, %28 : vector<1x32xf32>
    %30 = arith.negf %29 : vector<1x32xf32>
    %31 = math.exp %30 : vector<1x32xf32>
    %cst_21 = arith.constant 1.000000e+00 : f32
    %32 = vector.broadcast %cst_21 : f32 to vector<1x32xf32>
    %33 = arith.addf %32, %31 : vector<1x32xf32>
    %34 = arith.divf %32, %33 : vector<1x32xf32>
    %35 = vector.extract_strided_slice %16 {offsets = [0, 64], sizes = [1, 32], strides = [1, 1]} : vector<1x96xf32> to vector<1x32xf32>
    %36 = vector.extract_strided_slice %18 {offsets = [0, 64], sizes = [1, 32], strides = [1, 1]} : vector<1x96xf32> to vector<1x32xf32>
    %37 = arith.mulf %26, %36 : vector<1x32xf32>
    %38 = arith.addf %35, %37 : vector<1x32xf32>
    %39 = math.tanh %38 : vector<1x32xf32>
    %cst_22 = arith.constant 1.000000e+00 : f32
    %40 = vector.broadcast %cst_22 : f32 to vector<1x32xf32>
    %41 = arith.subf %40, %34 : vector<1x32xf32>
    %42 = arith.mulf %41, %39 : vector<1x32xf32>
    %43 = arith.mulf %34, %12 : vector<1x32xf32>
    %44 = arith.addf %42, %43 : vector<1x32xf32>
    %45 = vector.extract_strided_slice %15 {offsets = [1, 0], sizes = [1, 96], strides = [1, 1]} : vector<8x96xf32> to vector<1x96xf32>
    %cst_23 = arith.constant dense<0.000000e+00> : vector<1x96xf32>
    %46 = tpu.matmul %44, %9, %cst_23 {dimension_numbers = #tpu.dot_dimension_numbers<[1], [0], [0], [1], [0, 0, 1, 1], [], []>} : vector<1x32xf32>, vector<32x96xf32>, vector<1x96xf32> -> vector<1x96xf32>
    %47 = arith.addf %46, %11 : vector<1x96xf32>
    %48 = vector.extract_strided_slice %45 {offsets = [0, 0], sizes = [1, 32], strides = [1, 1]} : vector<1x96xf32> to vector<1x32xf32>
    %49 = vector.extract_strided_slice %47 {offsets = [0, 0], sizes = [1, 32], strides = [1, 1]} : vector<1x96xf32> to vector<1x32xf32>
    %50 = arith.addf %48, %49 : vector<1x32xf32>
    %51 = arith.negf %50 : vector<1x32xf32>
    %52 = math.exp %51 : vector<1x32xf32>
    %cst_24 = arith.constant 1.000000e+00 : f32
    %53 = vector.broadcast %cst_24 : f32 to vector<1x32xf32>
    %54 = arith.addf %53, %52 : vector<1x32xf32>
    %55 = arith.divf %53, %54 : vector<1x32xf32>
    %56 = vector.extract_strided_slice %45 {offsets = [0, 32], sizes = [1, 32], strides = [1, 1]} : vector<1x96xf32> to vector<1x32xf32>
    %57 = vector.extract_strided_slice %47 {offsets = [0, 32], sizes = [1, 32], strides = [1, 1]} : vector<1x96xf32> to vector<1x32xf32>
    %58 = arith.addf %56, %57 : vector<1x32xf32>
    %59 = arith.negf %58 : vector<1x32xf32>
    %60 = math.exp %59 : vector<1x32xf32>
    %cst_25 = arith.constant 1.000000e+00 : f32
    %61 = vector.broadcast %cst_25 : f32 to vector<1x32xf32>
    %62 = arith.addf %61, %60 : vector<1x32xf32>
    %63 = arith.divf %61, %62 : vector<1x32xf32>
    %64 = vector.extract_strided_slice %45 {offsets = [0, 64], sizes = [1, 32], strides = [1, 1]} : vector<1x96xf32> to vector<1x32xf32>
    %65 = vector.extract_strided_slice %47 {offsets = [0, 64], sizes = [1, 32], strides = [1, 1]} : vector<1x96xf32> to vector<1x32xf32>
    %66 = arith.mulf %55, %65 : vector<1x32xf32>
    %67 = arith.addf %64, %66 : vector<1x32xf32>
    %68 = math.tanh %67 : vector<1x32xf32>
    %cst_26 = arith.constant 1.000000e+00 : f32
    %69 = vector.broadcast %cst_26 : f32 to vector<1x32xf32>
    %70 = arith.subf %69, %63 : vector<1x32xf32>
    %71 = arith.mulf %70, %68 : vector<1x32xf32>
    %72 = arith.mulf %63, %44 : vector<1x32xf32>
    %73 = arith.addf %71, %72 : vector<1x32xf32>
    %74 = vector.extract_strided_slice %15 {offsets = [2, 0], sizes = [1, 96], strides = [1, 1]} : vector<8x96xf32> to vector<1x96xf32>
    %cst_27 = arith.constant dense<0.000000e+00> : vector<1x96xf32>
    %75 = tpu.matmul %73, %9, %cst_27 {dimension_numbers = #tpu.dot_dimension_numbers<[1], [0], [0], [1], [0, 0, 1, 1], [], []>} : vector<1x32xf32>, vector<32x96xf32>, vector<1x96xf32> -> vector<1x96xf32>
    %76 = arith.addf %75, %11 : vector<1x96xf32>
    %77 = vector.extract_strided_slice %74 {offsets = [0, 0], sizes = [1, 32], strides = [1, 1]} : vector<1x96xf32> to vector<1x32xf32>
    %78 = vector.extract_strided_slice %76 {offsets = [0, 0], sizes = [1, 32], strides = [1, 1]} : vector<1x96xf32> to vector<1x32xf32>
    %79 = arith.addf %77, %78 : vector<1x32xf32>
    %80 = arith.negf %79 : vector<1x32xf32>
    %81 = math.exp %80 : vector<1x32xf32>
    %cst_28 = arith.constant 1.000000e+00 : f32
    %82 = vector.broadcast %cst_28 : f32 to vector<1x32xf32>
    %83 = arith.addf %82, %81 : vector<1x32xf32>
    %84 = arith.divf %82, %83 : vector<1x32xf32>
    %85 = vector.extract_strided_slice %74 {offsets = [0, 32], sizes = [1, 32], strides = [1, 1]} : vector<1x96xf32> to vector<1x32xf32>
    %86 = vector.extract_strided_slice %76 {offsets = [0, 32], sizes = [1, 32], strides = [1, 1]} : vector<1x96xf32> to vector<1x32xf32>
    %87 = arith.addf %85, %86 : vector<1x32xf32>
    %88 = arith.negf %87 : vector<1x32xf32>
    %89 = math.exp %88 : vector<1x32xf32>
    %cst_29 = arith.constant 1.000000e+00 : f32
    %90 = vector.broadcast %cst_29 : f32 to vector<1x32xf32>
    %91 = arith.addf %90, %89 : vector<1x32xf32>
    %92 = arith.divf %90, %91 : vector<1x32xf32>
    %93 = vector.extract_strided_slice %74 {offsets = [0, 64], sizes = [1, 32], strides = [1, 1]} : vector<1x96xf32> to vector<1x32xf32>
    %94 = vector.extract_strided_slice %76 {offsets = [0, 64], sizes = [1, 32], strides = [1, 1]} : vector<1x96xf32> to vector<1x32xf32>
    %95 = arith.mulf %84, %94 : vector<1x32xf32>
    %96 = arith.addf %93, %95 : vector<1x32xf32>
    %97 = math.tanh %96 : vector<1x32xf32>
    %cst_30 = arith.constant 1.000000e+00 : f32
    %98 = vector.broadcast %cst_30 : f32 to vector<1x32xf32>
    %99 = arith.subf %98, %92 : vector<1x32xf32>
    %100 = arith.mulf %99, %97 : vector<1x32xf32>
    %101 = arith.mulf %92, %73 : vector<1x32xf32>
    %102 = arith.addf %100, %101 : vector<1x32xf32>
    %103 = vector.extract_strided_slice %15 {offsets = [3, 0], sizes = [1, 96], strides = [1, 1]} : vector<8x96xf32> to vector<1x96xf32>
    %cst_31 = arith.constant dense<0.000000e+00> : vector<1x96xf32>
    %104 = tpu.matmul %102, %9, %cst_31 {dimension_numbers = #tpu.dot_dimension_numbers<[1], [0], [0], [1], [0, 0, 1, 1], [], []>} : vector<1x32xf32>, vector<32x96xf32>, vector<1x96xf32> -> vector<1x96xf32>
    %105 = arith.addf %104, %11 : vector<1x96xf32>
    %106 = vector.extract_strided_slice %103 {offsets = [0, 0], sizes = [1, 32], strides = [1, 1]} : vector<1x96xf32> to vector<1x32xf32>
    %107 = vector.extract_strided_slice %105 {offsets = [0, 0], sizes = [1, 32], strides = [1, 1]} : vector<1x96xf32> to vector<1x32xf32>
    %108 = arith.addf %106, %107 : vector<1x32xf32>
    %109 = arith.negf %108 : vector<1x32xf32>
    %110 = math.exp %109 : vector<1x32xf32>
    %cst_32 = arith.constant 1.000000e+00 : f32
    %111 = vector.broadcast %cst_32 : f32 to vector<1x32xf32>
    %112 = arith.addf %111, %110 : vector<1x32xf32>
    %113 = arith.divf %111, %112 : vector<1x32xf32>
    %114 = vector.extract_strided_slice %103 {offsets = [0, 32], sizes = [1, 32], strides = [1, 1]} : vector<1x96xf32> to vector<1x32xf32>
    %115 = vector.extract_strided_slice %105 {offsets = [0, 32], sizes = [1, 32], strides = [1, 1]} : vector<1x96xf32> to vector<1x32xf32>
    %116 = arith.addf %114, %115 : vector<1x32xf32>
    %117 = arith.negf %116 : vector<1x32xf32>
    %118 = math.exp %117 : vector<1x32xf32>
    %cst_33 = arith.constant 1.000000e+00 : f32
    %119 = vector.broadcast %cst_33 : f32 to vector<1x32xf32>
    %120 = arith.addf %119, %118 : vector<1x32xf32>
    %121 = arith.divf %119, %120 : vector<1x32xf32>
    %122 = vector.extract_strided_slice %103 {offsets = [0, 64], sizes = [1, 32], strides = [1, 1]} : vector<1x96xf32> to vector<1x32xf32>
    %123 = vector.extract_strided_slice %105 {offsets = [0, 64], sizes = [1, 32], strides = [1, 1]} : vector<1x96xf32> to vector<1x32xf32>
    %124 = arith.mulf %113, %123 : vector<1x32xf32>
    %125 = arith.addf %122, %124 : vector<1x32xf32>
    %126 = math.tanh %125 : vector<1x32xf32>
    %cst_34 = arith.constant 1.000000e+00 : f32
    %127 = vector.broadcast %cst_34 : f32 to vector<1x32xf32>
    %128 = arith.subf %127, %121 : vector<1x32xf32>
    %129 = arith.mulf %128, %126 : vector<1x32xf32>
    %130 = arith.mulf %121, %102 : vector<1x32xf32>
    %131 = arith.addf %129, %130 : vector<1x32xf32>
    %132 = vector.extract_strided_slice %15 {offsets = [4, 0], sizes = [1, 96], strides = [1, 1]} : vector<8x96xf32> to vector<1x96xf32>
    %cst_35 = arith.constant dense<0.000000e+00> : vector<1x96xf32>
    %133 = tpu.matmul %131, %9, %cst_35 {dimension_numbers = #tpu.dot_dimension_numbers<[1], [0], [0], [1], [0, 0, 1, 1], [], []>} : vector<1x32xf32>, vector<32x96xf32>, vector<1x96xf32> -> vector<1x96xf32>
    %134 = arith.addf %133, %11 : vector<1x96xf32>
    %135 = vector.extract_strided_slice %132 {offsets = [0, 0], sizes = [1, 32], strides = [1, 1]} : vector<1x96xf32> to vector<1x32xf32>
    %136 = vector.extract_strided_slice %134 {offsets = [0, 0], sizes = [1, 32], strides = [1, 1]} : vector<1x96xf32> to vector<1x32xf32>
    %137 = arith.addf %135, %136 : vector<1x32xf32>
    %138 = arith.negf %137 : vector<1x32xf32>
    %139 = math.exp %138 : vector<1x32xf32>
    %cst_36 = arith.constant 1.000000e+00 : f32
    %140 = vector.broadcast %cst_36 : f32 to vector<1x32xf32>
    %141 = arith.addf %140, %139 : vector<1x32xf32>
    %142 = arith.divf %140, %141 : vector<1x32xf32>
    %143 = vector.extract_strided_slice %132 {offsets = [0, 32], sizes = [1, 32], strides = [1, 1]} : vector<1x96xf32> to vector<1x32xf32>
    %144 = vector.extract_strided_slice %134 {offsets = [0, 32], sizes = [1, 32], strides = [1, 1]} : vector<1x96xf32> to vector<1x32xf32>
    %145 = arith.addf %143, %144 : vector<1x32xf32>
    %146 = arith.negf %145 : vector<1x32xf32>
    %147 = math.exp %146 : vector<1x32xf32>
    %cst_37 = arith.constant 1.000000e+00 : f32
    %148 = vector.broadcast %cst_37 : f32 to vector<1x32xf32>
    %149 = arith.addf %148, %147 : vector<1x32xf32>
    %150 = arith.divf %148, %149 : vector<1x32xf32>
    %151 = vector.extract_strided_slice %132 {offsets = [0, 64], sizes = [1, 32], strides = [1, 1]} : vector<1x96xf32> to vector<1x32xf32>
    %152 = vector.extract_strided_slice %134 {offsets = [0, 64], sizes = [1, 32], strides = [1, 1]} : vector<1x96xf32> to vector<1x32xf32>
    %153 = arith.mulf %142, %152 : vector<1x32xf32>
    %154 = arith.addf %151, %153 : vector<1x32xf32>
    %155 = math.tanh %154 : vector<1x32xf32>
    %cst_38 = arith.constant 1.000000e+00 : f32
    %156 = vector.broadcast %cst_38 : f32 to vector<1x32xf32>
    %157 = arith.subf %156, %150 : vector<1x32xf32>
    %158 = arith.mulf %157, %155 : vector<1x32xf32>
    %159 = arith.mulf %150, %131 : vector<1x32xf32>
    %160 = arith.addf %158, %159 : vector<1x32xf32>
    %161 = vector.extract_strided_slice %15 {offsets = [5, 0], sizes = [1, 96], strides = [1, 1]} : vector<8x96xf32> to vector<1x96xf32>
    %cst_39 = arith.constant dense<0.000000e+00> : vector<1x96xf32>
    %162 = tpu.matmul %160, %9, %cst_39 {dimension_numbers = #tpu.dot_dimension_numbers<[1], [0], [0], [1], [0, 0, 1, 1], [], []>} : vector<1x32xf32>, vector<32x96xf32>, vector<1x96xf32> -> vector<1x96xf32>
    %163 = arith.addf %162, %11 : vector<1x96xf32>
    %164 = vector.extract_strided_slice %161 {offsets = [0, 0], sizes = [1, 32], strides = [1, 1]} : vector<1x96xf32> to vector<1x32xf32>
    %165 = vector.extract_strided_slice %163 {offsets = [0, 0], sizes = [1, 32], strides = [1, 1]} : vector<1x96xf32> to vector<1x32xf32>
    %166 = arith.addf %164, %165 : vector<1x32xf32>
    %167 = arith.negf %166 : vector<1x32xf32>
    %168 = math.exp %167 : vector<1x32xf32>
    %cst_40 = arith.constant 1.000000e+00 : f32
    %169 = vector.broadcast %cst_40 : f32 to vector<1x32xf32>
    %170 = arith.addf %169, %168 : vector<1x32xf32>
    %171 = arith.divf %169, %170 : vector<1x32xf32>
    %172 = vector.extract_strided_slice %161 {offsets = [0, 32], sizes = [1, 32], strides = [1, 1]} : vector<1x96xf32> to vector<1x32xf32>
    %173 = vector.extract_strided_slice %163 {offsets = [0, 32], sizes = [1, 32], strides = [1, 1]} : vector<1x96xf32> to vector<1x32xf32>
    %174 = arith.addf %172, %173 : vector<1x32xf32>
    %175 = arith.negf %174 : vector<1x32xf32>
    %176 = math.exp %175 : vector<1x32xf32>
    %cst_41 = arith.constant 1.000000e+00 : f32
    %177 = vector.broadcast %cst_41 : f32 to vector<1x32xf32>
    %178 = arith.addf %177, %176 : vector<1x32xf32>
    %179 = arith.divf %177, %178 : vector<1x32xf32>
    %180 = vector.extract_strided_slice %161 {offsets = [0, 64], sizes = [1, 32], strides = [1, 1]} : vector<1x96xf32> to vector<1x32xf32>
    %181 = vector.extract_strided_slice %163 {offsets = [0, 64], sizes = [1, 32], strides = [1, 1]} : vector<1x96xf32> to vector<1x32xf32>
    %182 = arith.mulf %171, %181 : vector<1x32xf32>
    %183 = arith.addf %180, %182 : vector<1x32xf32>
    %184 = math.tanh %183 : vector<1x32xf32>
    %cst_42 = arith.constant 1.000000e+00 : f32
    %185 = vector.broadcast %cst_42 : f32 to vector<1x32xf32>
    %186 = arith.subf %185, %179 : vector<1x32xf32>
    %187 = arith.mulf %186, %184 : vector<1x32xf32>
    %188 = arith.mulf %179, %160 : vector<1x32xf32>
    %189 = arith.addf %187, %188 : vector<1x32xf32>
    %190 = vector.extract_strided_slice %15 {offsets = [6, 0], sizes = [1, 96], strides = [1, 1]} : vector<8x96xf32> to vector<1x96xf32>
    %cst_43 = arith.constant dense<0.000000e+00> : vector<1x96xf32>
    %191 = tpu.matmul %189, %9, %cst_43 {dimension_numbers = #tpu.dot_dimension_numbers<[1], [0], [0], [1], [0, 0, 1, 1], [], []>} : vector<1x32xf32>, vector<32x96xf32>, vector<1x96xf32> -> vector<1x96xf32>
    %192 = arith.addf %191, %11 : vector<1x96xf32>
    %193 = vector.extract_strided_slice %190 {offsets = [0, 0], sizes = [1, 32], strides = [1, 1]} : vector<1x96xf32> to vector<1x32xf32>
    %194 = vector.extract_strided_slice %192 {offsets = [0, 0], sizes = [1, 32], strides = [1, 1]} : vector<1x96xf32> to vector<1x32xf32>
    %195 = arith.addf %193, %194 : vector<1x32xf32>
    %196 = arith.negf %195 : vector<1x32xf32>
    %197 = math.exp %196 : vector<1x32xf32>
    %cst_44 = arith.constant 1.000000e+00 : f32
    %198 = vector.broadcast %cst_44 : f32 to vector<1x32xf32>
    %199 = arith.addf %198, %197 : vector<1x32xf32>
    %200 = arith.divf %198, %199 : vector<1x32xf32>
    %201 = vector.extract_strided_slice %190 {offsets = [0, 32], sizes = [1, 32], strides = [1, 1]} : vector<1x96xf32> to vector<1x32xf32>
    %202 = vector.extract_strided_slice %192 {offsets = [0, 32], sizes = [1, 32], strides = [1, 1]} : vector<1x96xf32> to vector<1x32xf32>
    %203 = arith.addf %201, %202 : vector<1x32xf32>
    %204 = arith.negf %203 : vector<1x32xf32>
    %205 = math.exp %204 : vector<1x32xf32>
    %cst_45 = arith.constant 1.000000e+00 : f32
    %206 = vector.broadcast %cst_45 : f32 to vector<1x32xf32>
    %207 = arith.addf %206, %205 : vector<1x32xf32>
    %208 = arith.divf %206, %207 : vector<1x32xf32>
    %209 = vector.extract_strided_slice %190 {offsets = [0, 64], sizes = [1, 32], strides = [1, 1]} : vector<1x96xf32> to vector<1x32xf32>
    %210 = vector.extract_strided_slice %192 {offsets = [0, 64], sizes = [1, 32], strides = [1, 1]} : vector<1x96xf32> to vector<1x32xf32>
    %211 = arith.mulf %200, %210 : vector<1x32xf32>
    %212 = arith.addf %209, %211 : vector<1x32xf32>
    %213 = math.tanh %212 : vector<1x32xf32>
    %cst_46 = arith.constant 1.000000e+00 : f32
    %214 = vector.broadcast %cst_46 : f32 to vector<1x32xf32>
    %215 = arith.subf %214, %208 : vector<1x32xf32>
    %216 = arith.mulf %215, %213 : vector<1x32xf32>
    %217 = arith.mulf %208, %189 : vector<1x32xf32>
    %218 = arith.addf %216, %217 : vector<1x32xf32>
    %219 = vector.extract_strided_slice %15 {offsets = [7, 0], sizes = [1, 96], strides = [1, 1]} : vector<8x96xf32> to vector<1x96xf32>
    %cst_47 = arith.constant dense<0.000000e+00> : vector<1x96xf32>
    %220 = tpu.matmul %218, %9, %cst_47 {dimension_numbers = #tpu.dot_dimension_numbers<[1], [0], [0], [1], [0, 0, 1, 1], [], []>} : vector<1x32xf32>, vector<32x96xf32>, vector<1x96xf32> -> vector<1x96xf32>
    %221 = arith.addf %220, %11 : vector<1x96xf32>
    %222 = vector.extract_strided_slice %219 {offsets = [0, 0], sizes = [1, 32], strides = [1, 1]} : vector<1x96xf32> to vector<1x32xf32>
    %223 = vector.extract_strided_slice %221 {offsets = [0, 0], sizes = [1, 32], strides = [1, 1]} : vector<1x96xf32> to vector<1x32xf32>
    %224 = arith.addf %222, %223 : vector<1x32xf32>
    %225 = arith.negf %224 : vector<1x32xf32>
    %226 = math.exp %225 : vector<1x32xf32>
    %cst_48 = arith.constant 1.000000e+00 : f32
    %227 = vector.broadcast %cst_48 : f32 to vector<1x32xf32>
    %228 = arith.addf %227, %226 : vector<1x32xf32>
    %229 = arith.divf %227, %228 : vector<1x32xf32>
    %230 = vector.extract_strided_slice %219 {offsets = [0, 32], sizes = [1, 32], strides = [1, 1]} : vector<1x96xf32> to vector<1x32xf32>
    %231 = vector.extract_strided_slice %221 {offsets = [0, 32], sizes = [1, 32], strides = [1, 1]} : vector<1x96xf32> to vector<1x32xf32>
    %232 = arith.addf %230, %231 : vector<1x32xf32>
    %233 = arith.negf %232 : vector<1x32xf32>
    %234 = math.exp %233 : vector<1x32xf32>
    %cst_49 = arith.constant 1.000000e+00 : f32
    %235 = vector.broadcast %cst_49 : f32 to vector<1x32xf32>
    %236 = arith.addf %235, %234 : vector<1x32xf32>
    %237 = arith.divf %235, %236 : vector<1x32xf32>
    %238 = vector.extract_strided_slice %219 {offsets = [0, 64], sizes = [1, 32], strides = [1, 1]} : vector<1x96xf32> to vector<1x32xf32>
    %239 = vector.extract_strided_slice %221 {offsets = [0, 64], sizes = [1, 32], strides = [1, 1]} : vector<1x96xf32> to vector<1x32xf32>
    %240 = arith.mulf %229, %239 : vector<1x32xf32>
    %241 = arith.addf %238, %240 : vector<1x32xf32>
    %242 = math.tanh %241 : vector<1x32xf32>
    %cst_50 = arith.constant 1.000000e+00 : f32
    %243 = vector.broadcast %cst_50 : f32 to vector<1x32xf32>
    %244 = arith.subf %243, %237 : vector<1x32xf32>
    %245 = arith.mulf %244, %242 : vector<1x32xf32>
    %246 = arith.mulf %237, %218 : vector<1x32xf32>
    %247 = arith.addf %245, %246 : vector<1x32xf32>
    %248 = tpu.concatenate %44, %73, %102, %131, %160, %189, %218, %247 in 0 : vector<1x32xf32>, vector<1x32xf32>, vector<1x32xf32>, vector<1x32xf32>, vector<1x32xf32>, vector<1x32xf32>, vector<1x32xf32>, vector<1x32xf32> -> vector<8x32xf32>
    %c0_51 = arith.constant 0 : index
    %c0_52 = arith.constant 0 : index
    %249 = vector.load %arg9[%c0_51, %c0_52] : memref<32x96xf32, #tpu.memory_space<vmem>>, vector<32x96xf32>
    %c0_53 = arith.constant 0 : index
    %c0_54 = arith.constant 0 : index
    %250 = vector.load %arg10[%c0_53, %c0_54] : memref<32x96xf32, #tpu.memory_space<vmem>>, vector<32x96xf32>
    %c0_55 = arith.constant 0 : index
    %c0_56 = arith.constant 0 : index
    %251 = vector.load %arg11[%c0_55, %c0_56] : memref<1x96xf32, #tpu.memory_space<vmem>>, vector<1x96xf32>
    %c0_57 = arith.constant 0 : index
    %c0_58 = arith.constant 0 : index
    %252 = vector.load %arg12[%c0_57, %c0_58] : memref<1x96xf32, #tpu.memory_space<vmem>>, vector<1x96xf32>
    %253 = vector.extract_strided_slice %5 {offsets = [1, 0], sizes = [1, 32], strides = [1, 1]} : vector<2x32xf32> to vector<1x32xf32>
    %cst_59 = arith.constant dense<0.000000e+00> : vector<8x96xf32>
    %254 = tpu.matmul %248, %249, %cst_59 {dimension_numbers = #tpu.dot_dimension_numbers<[1], [0], [0], [1], [0, 0, 1, 1], [], []>} : vector<8x32xf32>, vector<32x96xf32>, vector<8x96xf32> -> vector<8x96xf32>
    %255 = vector.broadcast %251 : vector<1x96xf32> to vector<8x96xf32>
    %256 = arith.addf %254, %255 : vector<8x96xf32>
    %257 = vector.extract_strided_slice %256 {offsets = [0, 0], sizes = [1, 96], strides = [1, 1]} : vector<8x96xf32> to vector<1x96xf32>
    %cst_60 = arith.constant dense<0.000000e+00> : vector<1x96xf32>
    %258 = tpu.matmul %253, %250, %cst_60 {dimension_numbers = #tpu.dot_dimension_numbers<[1], [0], [0], [1], [0, 0, 1, 1], [], []>} : vector<1x32xf32>, vector<32x96xf32>, vector<1x96xf32> -> vector<1x96xf32>
    %259 = arith.addf %258, %252 : vector<1x96xf32>
    %260 = vector.extract_strided_slice %257 {offsets = [0, 0], sizes = [1, 32], strides = [1, 1]} : vector<1x96xf32> to vector<1x32xf32>
    %261 = vector.extract_strided_slice %259 {offsets = [0, 0], sizes = [1, 32], strides = [1, 1]} : vector<1x96xf32> to vector<1x32xf32>
    %262 = arith.addf %260, %261 : vector<1x32xf32>
    %263 = arith.negf %262 : vector<1x32xf32>
    %264 = math.exp %263 : vector<1x32xf32>
    %cst_61 = arith.constant 1.000000e+00 : f32
    %265 = vector.broadcast %cst_61 : f32 to vector<1x32xf32>
    %266 = arith.addf %265, %264 : vector<1x32xf32>
    %267 = arith.divf %265, %266 : vector<1x32xf32>
    %268 = vector.extract_strided_slice %257 {offsets = [0, 32], sizes = [1, 32], strides = [1, 1]} : vector<1x96xf32> to vector<1x32xf32>
    %269 = vector.extract_strided_slice %259 {offsets = [0, 32], sizes = [1, 32], strides = [1, 1]} : vector<1x96xf32> to vector<1x32xf32>
    %270 = arith.addf %268, %269 : vector<1x32xf32>
    %271 = arith.negf %270 : vector<1x32xf32>
    %272 = math.exp %271 : vector<1x32xf32>
    %cst_62 = arith.constant 1.000000e+00 : f32
    %273 = vector.broadcast %cst_62 : f32 to vector<1x32xf32>
    %274 = arith.addf %273, %272 : vector<1x32xf32>
    %275 = arith.divf %273, %274 : vector<1x32xf32>
    %276 = vector.extract_strided_slice %257 {offsets = [0, 64], sizes = [1, 32], strides = [1, 1]} : vector<1x96xf32> to vector<1x32xf32>
    %277 = vector.extract_strided_slice %259 {offsets = [0, 64], sizes = [1, 32], strides = [1, 1]} : vector<1x96xf32> to vector<1x32xf32>
    %278 = arith.mulf %267, %277 : vector<1x32xf32>
    %279 = arith.addf %276, %278 : vector<1x32xf32>
    %280 = math.tanh %279 : vector<1x32xf32>
    %cst_63 = arith.constant 1.000000e+00 : f32
    %281 = vector.broadcast %cst_63 : f32 to vector<1x32xf32>
    %282 = arith.subf %281, %275 : vector<1x32xf32>
    %283 = arith.mulf %282, %280 : vector<1x32xf32>
    %284 = arith.mulf %275, %253 : vector<1x32xf32>
    %285 = arith.addf %283, %284 : vector<1x32xf32>
    %286 = vector.extract_strided_slice %256 {offsets = [1, 0], sizes = [1, 96], strides = [1, 1]} : vector<8x96xf32> to vector<1x96xf32>
    %cst_64 = arith.constant dense<0.000000e+00> : vector<1x96xf32>
    %287 = tpu.matmul %285, %250, %cst_64 {dimension_numbers = #tpu.dot_dimension_numbers<[1], [0], [0], [1], [0, 0, 1, 1], [], []>} : vector<1x32xf32>, vector<32x96xf32>, vector<1x96xf32> -> vector<1x96xf32>
    %288 = arith.addf %287, %252 : vector<1x96xf32>
    %289 = vector.extract_strided_slice %286 {offsets = [0, 0], sizes = [1, 32], strides = [1, 1]} : vector<1x96xf32> to vector<1x32xf32>
    %290 = vector.extract_strided_slice %288 {offsets = [0, 0], sizes = [1, 32], strides = [1, 1]} : vector<1x96xf32> to vector<1x32xf32>
    %291 = arith.addf %289, %290 : vector<1x32xf32>
    %292 = arith.negf %291 : vector<1x32xf32>
    %293 = math.exp %292 : vector<1x32xf32>
    %cst_65 = arith.constant 1.000000e+00 : f32
    %294 = vector.broadcast %cst_65 : f32 to vector<1x32xf32>
    %295 = arith.addf %294, %293 : vector<1x32xf32>
    %296 = arith.divf %294, %295 : vector<1x32xf32>
    %297 = vector.extract_strided_slice %286 {offsets = [0, 32], sizes = [1, 32], strides = [1, 1]} : vector<1x96xf32> to vector<1x32xf32>
    %298 = vector.extract_strided_slice %288 {offsets = [0, 32], sizes = [1, 32], strides = [1, 1]} : vector<1x96xf32> to vector<1x32xf32>
    %299 = arith.addf %297, %298 : vector<1x32xf32>
    %300 = arith.negf %299 : vector<1x32xf32>
    %301 = math.exp %300 : vector<1x32xf32>
    %cst_66 = arith.constant 1.000000e+00 : f32
    %302 = vector.broadcast %cst_66 : f32 to vector<1x32xf32>
    %303 = arith.addf %302, %301 : vector<1x32xf32>
    %304 = arith.divf %302, %303 : vector<1x32xf32>
    %305 = vector.extract_strided_slice %286 {offsets = [0, 64], sizes = [1, 32], strides = [1, 1]} : vector<1x96xf32> to vector<1x32xf32>
    %306 = vector.extract_strided_slice %288 {offsets = [0, 64], sizes = [1, 32], strides = [1, 1]} : vector<1x96xf32> to vector<1x32xf32>
    %307 = arith.mulf %296, %306 : vector<1x32xf32>
    %308 = arith.addf %305, %307 : vector<1x32xf32>
    %309 = math.tanh %308 : vector<1x32xf32>
    %cst_67 = arith.constant 1.000000e+00 : f32
    %310 = vector.broadcast %cst_67 : f32 to vector<1x32xf32>
    %311 = arith.subf %310, %304 : vector<1x32xf32>
    %312 = arith.mulf %311, %309 : vector<1x32xf32>
    %313 = arith.mulf %304, %285 : vector<1x32xf32>
    %314 = arith.addf %312, %313 : vector<1x32xf32>
    %315 = vector.extract_strided_slice %256 {offsets = [2, 0], sizes = [1, 96], strides = [1, 1]} : vector<8x96xf32> to vector<1x96xf32>
    %cst_68 = arith.constant dense<0.000000e+00> : vector<1x96xf32>
    %316 = tpu.matmul %314, %250, %cst_68 {dimension_numbers = #tpu.dot_dimension_numbers<[1], [0], [0], [1], [0, 0, 1, 1], [], []>} : vector<1x32xf32>, vector<32x96xf32>, vector<1x96xf32> -> vector<1x96xf32>
    %317 = arith.addf %316, %252 : vector<1x96xf32>
    %318 = vector.extract_strided_slice %315 {offsets = [0, 0], sizes = [1, 32], strides = [1, 1]} : vector<1x96xf32> to vector<1x32xf32>
    %319 = vector.extract_strided_slice %317 {offsets = [0, 0], sizes = [1, 32], strides = [1, 1]} : vector<1x96xf32> to vector<1x32xf32>
    %320 = arith.addf %318, %319 : vector<1x32xf32>
    %321 = arith.negf %320 : vector<1x32xf32>
    %322 = math.exp %321 : vector<1x32xf32>
    %cst_69 = arith.constant 1.000000e+00 : f32
    %323 = vector.broadcast %cst_69 : f32 to vector<1x32xf32>
    %324 = arith.addf %323, %322 : vector<1x32xf32>
    %325 = arith.divf %323, %324 : vector<1x32xf32>
    %326 = vector.extract_strided_slice %315 {offsets = [0, 32], sizes = [1, 32], strides = [1, 1]} : vector<1x96xf32> to vector<1x32xf32>
    %327 = vector.extract_strided_slice %317 {offsets = [0, 32], sizes = [1, 32], strides = [1, 1]} : vector<1x96xf32> to vector<1x32xf32>
    %328 = arith.addf %326, %327 : vector<1x32xf32>
    %329 = arith.negf %328 : vector<1x32xf32>
    %330 = math.exp %329 : vector<1x32xf32>
    %cst_70 = arith.constant 1.000000e+00 : f32
    %331 = vector.broadcast %cst_70 : f32 to vector<1x32xf32>
    %332 = arith.addf %331, %330 : vector<1x32xf32>
    %333 = arith.divf %331, %332 : vector<1x32xf32>
    %334 = vector.extract_strided_slice %315 {offsets = [0, 64], sizes = [1, 32], strides = [1, 1]} : vector<1x96xf32> to vector<1x32xf32>
    %335 = vector.extract_strided_slice %317 {offsets = [0, 64], sizes = [1, 32], strides = [1, 1]} : vector<1x96xf32> to vector<1x32xf32>
    %336 = arith.mulf %325, %335 : vector<1x32xf32>
    %337 = arith.addf %334, %336 : vector<1x32xf32>
    %338 = math.tanh %337 : vector<1x32xf32>
    %cst_71 = arith.constant 1.000000e+00 : f32
    %339 = vector.broadcast %cst_71 : f32 to vector<1x32xf32>
    %340 = arith.subf %339, %333 : vector<1x32xf32>
    %341 = arith.mulf %340, %338 : vector<1x32xf32>
    %342 = arith.mulf %333, %314 : vector<1x32xf32>
    %343 = arith.addf %341, %342 : vector<1x32xf32>
    %344 = vector.extract_strided_slice %256 {offsets = [3, 0], sizes = [1, 96], strides = [1, 1]} : vector<8x96xf32> to vector<1x96xf32>
    %cst_72 = arith.constant dense<0.000000e+00> : vector<1x96xf32>
    %345 = tpu.matmul %343, %250, %cst_72 {dimension_numbers = #tpu.dot_dimension_numbers<[1], [0], [0], [1], [0, 0, 1, 1], [], []>} : vector<1x32xf32>, vector<32x96xf32>, vector<1x96xf32> -> vector<1x96xf32>
    %346 = arith.addf %345, %252 : vector<1x96xf32>
    %347 = vector.extract_strided_slice %344 {offsets = [0, 0], sizes = [1, 32], strides = [1, 1]} : vector<1x96xf32> to vector<1x32xf32>
    %348 = vector.extract_strided_slice %346 {offsets = [0, 0], sizes = [1, 32], strides = [1, 1]} : vector<1x96xf32> to vector<1x32xf32>
    %349 = arith.addf %347, %348 : vector<1x32xf32>
    %350 = arith.negf %349 : vector<1x32xf32>
    %351 = math.exp %350 : vector<1x32xf32>
    %cst_73 = arith.constant 1.000000e+00 : f32
    %352 = vector.broadcast %cst_73 : f32 to vector<1x32xf32>
    %353 = arith.addf %352, %351 : vector<1x32xf32>
    %354 = arith.divf %352, %353 : vector<1x32xf32>
    %355 = vector.extract_strided_slice %344 {offsets = [0, 32], sizes = [1, 32], strides = [1, 1]} : vector<1x96xf32> to vector<1x32xf32>
    %356 = vector.extract_strided_slice %346 {offsets = [0, 32], sizes = [1, 32], strides = [1, 1]} : vector<1x96xf32> to vector<1x32xf32>
    %357 = arith.addf %355, %356 : vector<1x32xf32>
    %358 = arith.negf %357 : vector<1x32xf32>
    %359 = math.exp %358 : vector<1x32xf32>
    %cst_74 = arith.constant 1.000000e+00 : f32
    %360 = vector.broadcast %cst_74 : f32 to vector<1x32xf32>
    %361 = arith.addf %360, %359 : vector<1x32xf32>
    %362 = arith.divf %360, %361 : vector<1x32xf32>
    %363 = vector.extract_strided_slice %344 {offsets = [0, 64], sizes = [1, 32], strides = [1, 1]} : vector<1x96xf32> to vector<1x32xf32>
    %364 = vector.extract_strided_slice %346 {offsets = [0, 64], sizes = [1, 32], strides = [1, 1]} : vector<1x96xf32> to vector<1x32xf32>
    %365 = arith.mulf %354, %364 : vector<1x32xf32>
    %366 = arith.addf %363, %365 : vector<1x32xf32>
    %367 = math.tanh %366 : vector<1x32xf32>
    %cst_75 = arith.constant 1.000000e+00 : f32
    %368 = vector.broadcast %cst_75 : f32 to vector<1x32xf32>
    %369 = arith.subf %368, %362 : vector<1x32xf32>
    %370 = arith.mulf %369, %367 : vector<1x32xf32>
    %371 = arith.mulf %362, %343 : vector<1x32xf32>
    %372 = arith.addf %370, %371 : vector<1x32xf32>
    %373 = vector.extract_strided_slice %256 {offsets = [4, 0], sizes = [1, 96], strides = [1, 1]} : vector<8x96xf32> to vector<1x96xf32>
    %cst_76 = arith.constant dense<0.000000e+00> : vector<1x96xf32>
    %374 = tpu.matmul %372, %250, %cst_76 {dimension_numbers = #tpu.dot_dimension_numbers<[1], [0], [0], [1], [0, 0, 1, 1], [], []>} : vector<1x32xf32>, vector<32x96xf32>, vector<1x96xf32> -> vector<1x96xf32>
    %375 = arith.addf %374, %252 : vector<1x96xf32>
    %376 = vector.extract_strided_slice %373 {offsets = [0, 0], sizes = [1, 32], strides = [1, 1]} : vector<1x96xf32> to vector<1x32xf32>
    %377 = vector.extract_strided_slice %375 {offsets = [0, 0], sizes = [1, 32], strides = [1, 1]} : vector<1x96xf32> to vector<1x32xf32>
    %378 = arith.addf %376, %377 : vector<1x32xf32>
    %379 = arith.negf %378 : vector<1x32xf32>
    %380 = math.exp %379 : vector<1x32xf32>
    %cst_77 = arith.constant 1.000000e+00 : f32
    %381 = vector.broadcast %cst_77 : f32 to vector<1x32xf32>
    %382 = arith.addf %381, %380 : vector<1x32xf32>
    %383 = arith.divf %381, %382 : vector<1x32xf32>
    %384 = vector.extract_strided_slice %373 {offsets = [0, 32], sizes = [1, 32], strides = [1, 1]} : vector<1x96xf32> to vector<1x32xf32>
    %385 = vector.extract_strided_slice %375 {offsets = [0, 32], sizes = [1, 32], strides = [1, 1]} : vector<1x96xf32> to vector<1x32xf32>
    %386 = arith.addf %384, %385 : vector<1x32xf32>
    %387 = arith.negf %386 : vector<1x32xf32>
    %388 = math.exp %387 : vector<1x32xf32>
    %cst_78 = arith.constant 1.000000e+00 : f32
    %389 = vector.broadcast %cst_78 : f32 to vector<1x32xf32>
    %390 = arith.addf %389, %388 : vector<1x32xf32>
    %391 = arith.divf %389, %390 : vector<1x32xf32>
    %392 = vector.extract_strided_slice %373 {offsets = [0, 64], sizes = [1, 32], strides = [1, 1]} : vector<1x96xf32> to vector<1x32xf32>
    %393 = vector.extract_strided_slice %375 {offsets = [0, 64], sizes = [1, 32], strides = [1, 1]} : vector<1x96xf32> to vector<1x32xf32>
    %394 = arith.mulf %383, %393 : vector<1x32xf32>
    %395 = arith.addf %392, %394 : vector<1x32xf32>
    %396 = math.tanh %395 : vector<1x32xf32>
    %cst_79 = arith.constant 1.000000e+00 : f32
    %397 = vector.broadcast %cst_79 : f32 to vector<1x32xf32>
    %398 = arith.subf %397, %391 : vector<1x32xf32>
    %399 = arith.mulf %398, %396 : vector<1x32xf32>
    %400 = arith.mulf %391, %372 : vector<1x32xf32>
    %401 = arith.addf %399, %400 : vector<1x32xf32>
    %402 = vector.extract_strided_slice %256 {offsets = [5, 0], sizes = [1, 96], strides = [1, 1]} : vector<8x96xf32> to vector<1x96xf32>
    %cst_80 = arith.constant dense<0.000000e+00> : vector<1x96xf32>
    %403 = tpu.matmul %401, %250, %cst_80 {dimension_numbers = #tpu.dot_dimension_numbers<[1], [0], [0], [1], [0, 0, 1, 1], [], []>} : vector<1x32xf32>, vector<32x96xf32>, vector<1x96xf32> -> vector<1x96xf32>
    %404 = arith.addf %403, %252 : vector<1x96xf32>
    %405 = vector.extract_strided_slice %402 {offsets = [0, 0], sizes = [1, 32], strides = [1, 1]} : vector<1x96xf32> to vector<1x32xf32>
    %406 = vector.extract_strided_slice %404 {offsets = [0, 0], sizes = [1, 32], strides = [1, 1]} : vector<1x96xf32> to vector<1x32xf32>
    %407 = arith.addf %405, %406 : vector<1x32xf32>
    %408 = arith.negf %407 : vector<1x32xf32>
    %409 = math.exp %408 : vector<1x32xf32>
    %cst_81 = arith.constant 1.000000e+00 : f32
    %410 = vector.broadcast %cst_81 : f32 to vector<1x32xf32>
    %411 = arith.addf %410, %409 : vector<1x32xf32>
    %412 = arith.divf %410, %411 : vector<1x32xf32>
    %413 = vector.extract_strided_slice %402 {offsets = [0, 32], sizes = [1, 32], strides = [1, 1]} : vector<1x96xf32> to vector<1x32xf32>
    %414 = vector.extract_strided_slice %404 {offsets = [0, 32], sizes = [1, 32], strides = [1, 1]} : vector<1x96xf32> to vector<1x32xf32>
    %415 = arith.addf %413, %414 : vector<1x32xf32>
    %416 = arith.negf %415 : vector<1x32xf32>
    %417 = math.exp %416 : vector<1x32xf32>
    %cst_82 = arith.constant 1.000000e+00 : f32
    %418 = vector.broadcast %cst_82 : f32 to vector<1x32xf32>
    %419 = arith.addf %418, %417 : vector<1x32xf32>
    %420 = arith.divf %418, %419 : vector<1x32xf32>
    %421 = vector.extract_strided_slice %402 {offsets = [0, 64], sizes = [1, 32], strides = [1, 1]} : vector<1x96xf32> to vector<1x32xf32>
    %422 = vector.extract_strided_slice %404 {offsets = [0, 64], sizes = [1, 32], strides = [1, 1]} : vector<1x96xf32> to vector<1x32xf32>
    %423 = arith.mulf %412, %422 : vector<1x32xf32>
    %424 = arith.addf %421, %423 : vector<1x32xf32>
    %425 = math.tanh %424 : vector<1x32xf32>
    %cst_83 = arith.constant 1.000000e+00 : f32
    %426 = vector.broadcast %cst_83 : f32 to vector<1x32xf32>
    %427 = arith.subf %426, %420 : vector<1x32xf32>
    %428 = arith.mulf %427, %425 : vector<1x32xf32>
    %429 = arith.mulf %420, %401 : vector<1x32xf32>
    %430 = arith.addf %428, %429 : vector<1x32xf32>
    %431 = vector.extract_strided_slice %256 {offsets = [6, 0], sizes = [1, 96], strides = [1, 1]} : vector<8x96xf32> to vector<1x96xf32>
    %cst_84 = arith.constant dense<0.000000e+00> : vector<1x96xf32>
    %432 = tpu.matmul %430, %250, %cst_84 {dimension_numbers = #tpu.dot_dimension_numbers<[1], [0], [0], [1], [0, 0, 1, 1], [], []>} : vector<1x32xf32>, vector<32x96xf32>, vector<1x96xf32> -> vector<1x96xf32>
    %433 = arith.addf %432, %252 : vector<1x96xf32>
    %434 = vector.extract_strided_slice %431 {offsets = [0, 0], sizes = [1, 32], strides = [1, 1]} : vector<1x96xf32> to vector<1x32xf32>
    %435 = vector.extract_strided_slice %433 {offsets = [0, 0], sizes = [1, 32], strides = [1, 1]} : vector<1x96xf32> to vector<1x32xf32>
    %436 = arith.addf %434, %435 : vector<1x32xf32>
    %437 = arith.negf %436 : vector<1x32xf32>
    %438 = math.exp %437 : vector<1x32xf32>
    %cst_85 = arith.constant 1.000000e+00 : f32
    %439 = vector.broadcast %cst_85 : f32 to vector<1x32xf32>
    %440 = arith.addf %439, %438 : vector<1x32xf32>
    %441 = arith.divf %439, %440 : vector<1x32xf32>
    %442 = vector.extract_strided_slice %431 {offsets = [0, 32], sizes = [1, 32], strides = [1, 1]} : vector<1x96xf32> to vector<1x32xf32>
    %443 = vector.extract_strided_slice %433 {offsets = [0, 32], sizes = [1, 32], strides = [1, 1]} : vector<1x96xf32> to vector<1x32xf32>
    %444 = arith.addf %442, %443 : vector<1x32xf32>
    %445 = arith.negf %444 : vector<1x32xf32>
    %446 = math.exp %445 : vector<1x32xf32>
    %cst_86 = arith.constant 1.000000e+00 : f32
    %447 = vector.broadcast %cst_86 : f32 to vector<1x32xf32>
    %448 = arith.addf %447, %446 : vector<1x32xf32>
    %449 = arith.divf %447, %448 : vector<1x32xf32>
    %450 = vector.extract_strided_slice %431 {offsets = [0, 64], sizes = [1, 32], strides = [1, 1]} : vector<1x96xf32> to vector<1x32xf32>
    %451 = vector.extract_strided_slice %433 {offsets = [0, 64], sizes = [1, 32], strides = [1, 1]} : vector<1x96xf32> to vector<1x32xf32>
    %452 = arith.mulf %441, %451 : vector<1x32xf32>
    %453 = arith.addf %450, %452 : vector<1x32xf32>
    %454 = math.tanh %453 : vector<1x32xf32>
    %cst_87 = arith.constant 1.000000e+00 : f32
    %455 = vector.broadcast %cst_87 : f32 to vector<1x32xf32>
    %456 = arith.subf %455, %449 : vector<1x32xf32>
    %457 = arith.mulf %456, %454 : vector<1x32xf32>
    %458 = arith.mulf %449, %430 : vector<1x32xf32>
    %459 = arith.addf %457, %458 : vector<1x32xf32>
    %460 = vector.extract_strided_slice %256 {offsets = [7, 0], sizes = [1, 96], strides = [1, 1]} : vector<8x96xf32> to vector<1x96xf32>
    %cst_88 = arith.constant dense<0.000000e+00> : vector<1x96xf32>
    %461 = tpu.matmul %459, %250, %cst_88 {dimension_numbers = #tpu.dot_dimension_numbers<[1], [0], [0], [1], [0, 0, 1, 1], [], []>} : vector<1x32xf32>, vector<32x96xf32>, vector<1x96xf32> -> vector<1x96xf32>
    %462 = arith.addf %461, %252 : vector<1x96xf32>
    %463 = vector.extract_strided_slice %460 {offsets = [0, 0], sizes = [1, 32], strides = [1, 1]} : vector<1x96xf32> to vector<1x32xf32>
    %464 = vector.extract_strided_slice %462 {offsets = [0, 0], sizes = [1, 32], strides = [1, 1]} : vector<1x96xf32> to vector<1x32xf32>
    %465 = arith.addf %463, %464 : vector<1x32xf32>
    %466 = arith.negf %465 : vector<1x32xf32>
    %467 = math.exp %466 : vector<1x32xf32>
    %cst_89 = arith.constant 1.000000e+00 : f32
    %468 = vector.broadcast %cst_89 : f32 to vector<1x32xf32>
    %469 = arith.addf %468, %467 : vector<1x32xf32>
    %470 = arith.divf %468, %469 : vector<1x32xf32>
    %471 = vector.extract_strided_slice %460 {offsets = [0, 32], sizes = [1, 32], strides = [1, 1]} : vector<1x96xf32> to vector<1x32xf32>
    %472 = vector.extract_strided_slice %462 {offsets = [0, 32], sizes = [1, 32], strides = [1, 1]} : vector<1x96xf32> to vector<1x32xf32>
    %473 = arith.addf %471, %472 : vector<1x32xf32>
    %474 = arith.negf %473 : vector<1x32xf32>
    %475 = math.exp %474 : vector<1x32xf32>
    %cst_90 = arith.constant 1.000000e+00 : f32
    %476 = vector.broadcast %cst_90 : f32 to vector<1x32xf32>
    %477 = arith.addf %476, %475 : vector<1x32xf32>
    %478 = arith.divf %476, %477 : vector<1x32xf32>
    %479 = vector.extract_strided_slice %460 {offsets = [0, 64], sizes = [1, 32], strides = [1, 1]} : vector<1x96xf32> to vector<1x32xf32>
    %480 = vector.extract_strided_slice %462 {offsets = [0, 64], sizes = [1, 32], strides = [1, 1]} : vector<1x96xf32> to vector<1x32xf32>
    %481 = arith.mulf %470, %480 : vector<1x32xf32>
    %482 = arith.addf %479, %481 : vector<1x32xf32>
    %483 = math.tanh %482 : vector<1x32xf32>
    %cst_91 = arith.constant 1.000000e+00 : f32
    %484 = vector.broadcast %cst_91 : f32 to vector<1x32xf32>
    %485 = arith.subf %484, %478 : vector<1x32xf32>
    %486 = arith.mulf %485, %483 : vector<1x32xf32>
    %487 = arith.mulf %478, %459 : vector<1x32xf32>
    %488 = arith.addf %486, %487 : vector<1x32xf32>
    %489 = tpu.concatenate %285, %314, %343, %372, %401, %430, %459, %488 in 0 : vector<1x32xf32>, vector<1x32xf32>, vector<1x32xf32>, vector<1x32xf32>, vector<1x32xf32>, vector<1x32xf32>, vector<1x32xf32>, vector<1x32xf32> -> vector<8x32xf32>
    %c0_92 = arith.constant 0 : index
    %c0_93 = arith.constant 0 : index
    %490 = vector.load %arg13[%c0_92, %c0_93] : memref<32x32xf32, #tpu.memory_space<vmem>>, vector<32x32xf32>
    %c0_94 = arith.constant 0 : index
    %c0_95 = arith.constant 0 : index
    %491 = vector.load %arg14[%c0_94, %c0_95] : memref<1x32xf32, #tpu.memory_space<vmem>>, vector<1x32xf32>
    %c0_96 = arith.constant 0 : index
    %c0_97 = arith.constant 0 : index
    %492 = vector.load %arg15[%c0_96, %c0_97] : memref<32x32xf32, #tpu.memory_space<vmem>>, vector<32x32xf32>
    %c0_98 = arith.constant 0 : index
    %c0_99 = arith.constant 0 : index
    %493 = vector.load %arg16[%c0_98, %c0_99] : memref<1x32xf32, #tpu.memory_space<vmem>>, vector<1x32xf32>
    %c0_100 = arith.constant 0 : index
    %c0_101 = arith.constant 0 : index
    %494 = vector.load %arg17[%c0_100, %c0_101] : memref<32x32xf32, #tpu.memory_space<vmem>>, vector<32x32xf32>
    %c0_102 = arith.constant 0 : index
    %c0_103 = arith.constant 0 : index
    %495 = vector.load %arg18[%c0_102, %c0_103] : memref<1x32xf32, #tpu.memory_space<vmem>>, vector<1x32xf32>
    %cst_104 = arith.constant dense<0.000000e+00> : vector<8x32xf32>
    %496 = tpu.matmul %489, %490, %cst_104 {dimension_numbers = #tpu.dot_dimension_numbers<[1], [0], [0], [1], [0, 0, 1, 1], [], []>} : vector<8x32xf32>, vector<32x32xf32>, vector<8x32xf32> -> vector<8x32xf32>
    %497 = vector.broadcast %491 : vector<1x32xf32> to vector<8x32xf32>
    %498 = arith.addf %496, %497 : vector<8x32xf32>
    %cst_105 = arith.constant dense<0.000000e+00> : vector<8x32xf32>
    %499 = tpu.matmul %3, %492, %cst_105 {dimension_numbers = #tpu.dot_dimension_numbers<[1], [0], [0], [1], [0, 0, 1, 1], [], []>} : vector<8x32xf32>, vector<32x32xf32>, vector<8x32xf32> -> vector<8x32xf32>
    %500 = vector.broadcast %493 : vector<1x32xf32> to vector<8x32xf32>
    %501 = arith.addf %499, %500 : vector<8x32xf32>
    %cst_106 = arith.constant dense<0.000000e+00> : vector<8x32xf32>
    %502 = tpu.matmul %3, %494, %cst_106 {dimension_numbers = #tpu.dot_dimension_numbers<[1], [0], [0], [1], [0, 0, 1, 1], [], []>} : vector<8x32xf32>, vector<32x32xf32>, vector<8x32xf32> -> vector<8x32xf32>
    %503 = vector.broadcast %495 : vector<1x32xf32> to vector<8x32xf32>
    %504 = arith.addf %502, %503 : vector<8x32xf32>
    %cst_107 = arith.constant dense<0.000000e+00> : vector<8x8xf32>
    %505 = tpu.matmul %498, %501, %cst_107 {dimension_numbers = #tpu.dot_dimension_numbers<[1], [1], [0], [0], [0, 0, 1, 0], [], []>} : vector<8x32xf32>, vector<8x32xf32>, vector<8x8xf32> -> vector<8x8xf32>
    %cst_108 = arith.constant 5.000000e-01 : f32
    %506 = vector.broadcast %cst_108 : f32 to vector<1x8xf32>
    %507 = arith.cmpf ogt, %7, %506 : vector<1x8xf32>
    %cst_109 = arith.constant -1.000000e+30 : f32
    %508 = vector.shape_cast %507 : vector<1x8xi1> to vector<1x8xi1>
    %509 = vector.broadcast %508 : vector<1x8xi1> to vector<8x8xi1>
    %510 = vector.broadcast %cst_109 : f32 to vector<8x8xf32>
    %511 = arith.select %509, %505, %510 : vector<8x8xi1>, vector<8x8xf32>
    %cst_110 = arith.constant dense<0xFF800000> : vector<8xf32>
    %512 = vector.multi_reduction <maximumf>, %511, %cst_110 [1] : vector<8x8xf32> to vector<8xf32>
    %513 = vector.shape_cast %512 : vector<8xf32> to vector<8x1xf32>
    %514 = vector.broadcast %513 : vector<8x1xf32> to vector<8x8xf32>
    %515 = arith.subf %511, %514 : vector<8x8xf32>
    %516 = math.exp %515 : vector<8x8xf32>
    %cst_111 = arith.constant dense<0.000000e+00> : vector<8xf32>
    %517 = vector.multi_reduction <add>, %516, %cst_111 [1] : vector<8x8xf32> to vector<8xf32>
    %518 = vector.shape_cast %517 : vector<8xf32> to vector<8x1xf32>
    %519 = vector.broadcast %518 : vector<8x1xf32> to vector<8x8xf32>
    %520 = arith.divf %516, %519 : vector<8x8xf32>
    %cst_112 = arith.constant dense<0.000000e+00> : vector<8x32xf32>
    %521 = tpu.matmul %520, %504, %cst_112 {dimension_numbers = #tpu.dot_dimension_numbers<[1], [0], [0], [1], [0, 0, 1, 1], [], []>} : vector<8x8xf32>, vector<8x32xf32>, vector<8x32xf32> -> vector<8x32xf32>
    %522 = tpu.concatenate %489, %521 in 1 : vector<8x32xf32>, vector<8x32xf32> -> vector<8x64xf32>
    %cst_113 = arith.constant 0.000000e+00 : f32
    %523 = vector.broadcast %cst_113 : f32 to vector<1x32xf32>
    %c0_114 = arith.constant 0 : index
    %c0_115 = arith.constant 0 : index
    %524 = vector.load %arg19[%c0_114, %c0_115] : memref<64x96xf32, #tpu.memory_space<vmem>>, vector<64x96xf32>
    %c0_116 = arith.constant 0 : index
    %c0_117 = arith.constant 0 : index
    %525 = vector.load %arg20[%c0_116, %c0_117] : memref<32x96xf32, #tpu.memory_space<vmem>>, vector<32x96xf32>
    %c0_118 = arith.constant 0 : index
    %c0_119 = arith.constant 0 : index
    %526 = vector.load %arg21[%c0_118, %c0_119] : memref<1x96xf32, #tpu.memory_space<vmem>>, vector<1x96xf32>
    %c0_120 = arith.constant 0 : index
    %c0_121 = arith.constant 0 : index
    %527 = vector.load %arg22[%c0_120, %c0_121] : memref<1x96xf32, #tpu.memory_space<vmem>>, vector<1x96xf32>
    %cst_122 = arith.constant dense<0.000000e+00> : vector<8x96xf32>
    %528 = tpu.matmul %522, %524, %cst_122 {dimension_numbers = #tpu.dot_dimension_numbers<[1], [0], [0], [1], [0, 0, 1, 1], [], []>} : vector<8x64xf32>, vector<64x96xf32>, vector<8x96xf32> -> vector<8x96xf32>
    %529 = vector.broadcast %526 : vector<1x96xf32> to vector<8x96xf32>
    %530 = arith.addf %528, %529 : vector<8x96xf32>
    %531 = vector.extract_strided_slice %530 {offsets = [0, 0], sizes = [1, 96], strides = [1, 1]} : vector<8x96xf32> to vector<1x96xf32>
    %cst_123 = arith.constant dense<0.000000e+00> : vector<1x96xf32>
    %532 = tpu.matmul %523, %525, %cst_123 {dimension_numbers = #tpu.dot_dimension_numbers<[1], [0], [0], [1], [0, 0, 1, 1], [], []>} : vector<1x32xf32>, vector<32x96xf32>, vector<1x96xf32> -> vector<1x96xf32>
    %533 = arith.addf %532, %527 : vector<1x96xf32>
    %534 = vector.extract_strided_slice %531 {offsets = [0, 0], sizes = [1, 32], strides = [1, 1]} : vector<1x96xf32> to vector<1x32xf32>
    %535 = vector.extract_strided_slice %533 {offsets = [0, 0], sizes = [1, 32], strides = [1, 1]} : vector<1x96xf32> to vector<1x32xf32>
    %536 = arith.addf %534, %535 : vector<1x32xf32>
    %537 = arith.negf %536 : vector<1x32xf32>
    %538 = math.exp %537 : vector<1x32xf32>
    %cst_124 = arith.constant 1.000000e+00 : f32
    %539 = vector.broadcast %cst_124 : f32 to vector<1x32xf32>
    %540 = arith.addf %539, %538 : vector<1x32xf32>
    %541 = arith.divf %539, %540 : vector<1x32xf32>
    %542 = vector.extract_strided_slice %531 {offsets = [0, 32], sizes = [1, 32], strides = [1, 1]} : vector<1x96xf32> to vector<1x32xf32>
    %543 = vector.extract_strided_slice %533 {offsets = [0, 32], sizes = [1, 32], strides = [1, 1]} : vector<1x96xf32> to vector<1x32xf32>
    %544 = arith.addf %542, %543 : vector<1x32xf32>
    %545 = arith.negf %544 : vector<1x32xf32>
    %546 = math.exp %545 : vector<1x32xf32>
    %cst_125 = arith.constant 1.000000e+00 : f32
    %547 = vector.broadcast %cst_125 : f32 to vector<1x32xf32>
    %548 = arith.addf %547, %546 : vector<1x32xf32>
    %549 = arith.divf %547, %548 : vector<1x32xf32>
    %550 = vector.extract_strided_slice %531 {offsets = [0, 64], sizes = [1, 32], strides = [1, 1]} : vector<1x96xf32> to vector<1x32xf32>
    %551 = vector.extract_strided_slice %533 {offsets = [0, 64], sizes = [1, 32], strides = [1, 1]} : vector<1x96xf32> to vector<1x32xf32>
    %552 = arith.mulf %541, %551 : vector<1x32xf32>
    %553 = arith.addf %550, %552 : vector<1x32xf32>
    %554 = math.tanh %553 : vector<1x32xf32>
    %cst_126 = arith.constant 1.000000e+00 : f32
    %555 = vector.broadcast %cst_126 : f32 to vector<1x32xf32>
    %556 = arith.subf %555, %549 : vector<1x32xf32>
    %557 = arith.mulf %556, %554 : vector<1x32xf32>
    %558 = arith.mulf %549, %523 : vector<1x32xf32>
    %559 = arith.addf %557, %558 : vector<1x32xf32>
    %560 = vector.extract_strided_slice %530 {offsets = [1, 0], sizes = [1, 96], strides = [1, 1]} : vector<8x96xf32> to vector<1x96xf32>
    %cst_127 = arith.constant dense<0.000000e+00> : vector<1x96xf32>
    %561 = tpu.matmul %559, %525, %cst_127 {dimension_numbers = #tpu.dot_dimension_numbers<[1], [0], [0], [1], [0, 0, 1, 1], [], []>} : vector<1x32xf32>, vector<32x96xf32>, vector<1x96xf32> -> vector<1x96xf32>
    %562 = arith.addf %561, %527 : vector<1x96xf32>
    %563 = vector.extract_strided_slice %560 {offsets = [0, 0], sizes = [1, 32], strides = [1, 1]} : vector<1x96xf32> to vector<1x32xf32>
    %564 = vector.extract_strided_slice %562 {offsets = [0, 0], sizes = [1, 32], strides = [1, 1]} : vector<1x96xf32> to vector<1x32xf32>
    %565 = arith.addf %563, %564 : vector<1x32xf32>
    %566 = arith.negf %565 : vector<1x32xf32>
    %567 = math.exp %566 : vector<1x32xf32>
    %cst_128 = arith.constant 1.000000e+00 : f32
    %568 = vector.broadcast %cst_128 : f32 to vector<1x32xf32>
    %569 = arith.addf %568, %567 : vector<1x32xf32>
    %570 = arith.divf %568, %569 : vector<1x32xf32>
    %571 = vector.extract_strided_slice %560 {offsets = [0, 32], sizes = [1, 32], strides = [1, 1]} : vector<1x96xf32> to vector<1x32xf32>
    %572 = vector.extract_strided_slice %562 {offsets = [0, 32], sizes = [1, 32], strides = [1, 1]} : vector<1x96xf32> to vector<1x32xf32>
    %573 = arith.addf %571, %572 : vector<1x32xf32>
    %574 = arith.negf %573 : vector<1x32xf32>
    %575 = math.exp %574 : vector<1x32xf32>
    %cst_129 = arith.constant 1.000000e+00 : f32
    %576 = vector.broadcast %cst_129 : f32 to vector<1x32xf32>
    %577 = arith.addf %576, %575 : vector<1x32xf32>
    %578 = arith.divf %576, %577 : vector<1x32xf32>
    %579 = vector.extract_strided_slice %560 {offsets = [0, 64], sizes = [1, 32], strides = [1, 1]} : vector<1x96xf32> to vector<1x32xf32>
    %580 = vector.extract_strided_slice %562 {offsets = [0, 64], sizes = [1, 32], strides = [1, 1]} : vector<1x96xf32> to vector<1x32xf32>
    %581 = arith.mulf %570, %580 : vector<1x32xf32>
    %582 = arith.addf %579, %581 : vector<1x32xf32>
    %583 = math.tanh %582 : vector<1x32xf32>
    %cst_130 = arith.constant 1.000000e+00 : f32
    %584 = vector.broadcast %cst_130 : f32 to vector<1x32xf32>
    %585 = arith.subf %584, %578 : vector<1x32xf32>
    %586 = arith.mulf %585, %583 : vector<1x32xf32>
    %587 = arith.mulf %578, %559 : vector<1x32xf32>
    %588 = arith.addf %586, %587 : vector<1x32xf32>
    %589 = vector.extract_strided_slice %530 {offsets = [2, 0], sizes = [1, 96], strides = [1, 1]} : vector<8x96xf32> to vector<1x96xf32>
    %cst_131 = arith.constant dense<0.000000e+00> : vector<1x96xf32>
    %590 = tpu.matmul %588, %525, %cst_131 {dimension_numbers = #tpu.dot_dimension_numbers<[1], [0], [0], [1], [0, 0, 1, 1], [], []>} : vector<1x32xf32>, vector<32x96xf32>, vector<1x96xf32> -> vector<1x96xf32>
    %591 = arith.addf %590, %527 : vector<1x96xf32>
    %592 = vector.extract_strided_slice %589 {offsets = [0, 0], sizes = [1, 32], strides = [1, 1]} : vector<1x96xf32> to vector<1x32xf32>
    %593 = vector.extract_strided_slice %591 {offsets = [0, 0], sizes = [1, 32], strides = [1, 1]} : vector<1x96xf32> to vector<1x32xf32>
    %594 = arith.addf %592, %593 : vector<1x32xf32>
    %595 = arith.negf %594 : vector<1x32xf32>
    %596 = math.exp %595 : vector<1x32xf32>
    %cst_132 = arith.constant 1.000000e+00 : f32
    %597 = vector.broadcast %cst_132 : f32 to vector<1x32xf32>
    %598 = arith.addf %597, %596 : vector<1x32xf32>
    %599 = arith.divf %597, %598 : vector<1x32xf32>
    %600 = vector.extract_strided_slice %589 {offsets = [0, 32], sizes = [1, 32], strides = [1, 1]} : vector<1x96xf32> to vector<1x32xf32>
    %601 = vector.extract_strided_slice %591 {offsets = [0, 32], sizes = [1, 32], strides = [1, 1]} : vector<1x96xf32> to vector<1x32xf32>
    %602 = arith.addf %600, %601 : vector<1x32xf32>
    %603 = arith.negf %602 : vector<1x32xf32>
    %604 = math.exp %603 : vector<1x32xf32>
    %cst_133 = arith.constant 1.000000e+00 : f32
    %605 = vector.broadcast %cst_133 : f32 to vector<1x32xf32>
    %606 = arith.addf %605, %604 : vector<1x32xf32>
    %607 = arith.divf %605, %606 : vector<1x32xf32>
    %608 = vector.extract_strided_slice %589 {offsets = [0, 64], sizes = [1, 32], strides = [1, 1]} : vector<1x96xf32> to vector<1x32xf32>
    %609 = vector.extract_strided_slice %591 {offsets = [0, 64], sizes = [1, 32], strides = [1, 1]} : vector<1x96xf32> to vector<1x32xf32>
    %610 = arith.mulf %599, %609 : vector<1x32xf32>
    %611 = arith.addf %608, %610 : vector<1x32xf32>
    %612 = math.tanh %611 : vector<1x32xf32>
    %cst_134 = arith.constant 1.000000e+00 : f32
    %613 = vector.broadcast %cst_134 : f32 to vector<1x32xf32>
    %614 = arith.subf %613, %607 : vector<1x32xf32>
    %615 = arith.mulf %614, %612 : vector<1x32xf32>
    %616 = arith.mulf %607, %588 : vector<1x32xf32>
    %617 = arith.addf %615, %616 : vector<1x32xf32>
    %618 = vector.extract_strided_slice %530 {offsets = [3, 0], sizes = [1, 96], strides = [1, 1]} : vector<8x96xf32> to vector<1x96xf32>
    %cst_135 = arith.constant dense<0.000000e+00> : vector<1x96xf32>
    %619 = tpu.matmul %617, %525, %cst_135 {dimension_numbers = #tpu.dot_dimension_numbers<[1], [0], [0], [1], [0, 0, 1, 1], [], []>} : vector<1x32xf32>, vector<32x96xf32>, vector<1x96xf32> -> vector<1x96xf32>
    %620 = arith.addf %619, %527 : vector<1x96xf32>
    %621 = vector.extract_strided_slice %618 {offsets = [0, 0], sizes = [1, 32], strides = [1, 1]} : vector<1x96xf32> to vector<1x32xf32>
    %622 = vector.extract_strided_slice %620 {offsets = [0, 0], sizes = [1, 32], strides = [1, 1]} : vector<1x96xf32> to vector<1x32xf32>
    %623 = arith.addf %621, %622 : vector<1x32xf32>
    %624 = arith.negf %623 : vector<1x32xf32>
    %625 = math.exp %624 : vector<1x32xf32>
    %cst_136 = arith.constant 1.000000e+00 : f32
    %626 = vector.broadcast %cst_136 : f32 to vector<1x32xf32>
    %627 = arith.addf %626, %625 : vector<1x32xf32>
    %628 = arith.divf %626, %627 : vector<1x32xf32>
    %629 = vector.extract_strided_slice %618 {offsets = [0, 32], sizes = [1, 32], strides = [1, 1]} : vector<1x96xf32> to vector<1x32xf32>
    %630 = vector.extract_strided_slice %620 {offsets = [0, 32], sizes = [1, 32], strides = [1, 1]} : vector<1x96xf32> to vector<1x32xf32>
    %631 = arith.addf %629, %630 : vector<1x32xf32>
    %632 = arith.negf %631 : vector<1x32xf32>
    %633 = math.exp %632 : vector<1x32xf32>
    %cst_137 = arith.constant 1.000000e+00 : f32
    %634 = vector.broadcast %cst_137 : f32 to vector<1x32xf32>
    %635 = arith.addf %634, %633 : vector<1x32xf32>
    %636 = arith.divf %634, %635 : vector<1x32xf32>
    %637 = vector.extract_strided_slice %618 {offsets = [0, 64], sizes = [1, 32], strides = [1, 1]} : vector<1x96xf32> to vector<1x32xf32>
    %638 = vector.extract_strided_slice %620 {offsets = [0, 64], sizes = [1, 32], strides = [1, 1]} : vector<1x96xf32> to vector<1x32xf32>
    %639 = arith.mulf %628, %638 : vector<1x32xf32>
    %640 = arith.addf %637, %639 : vector<1x32xf32>
    %641 = math.tanh %640 : vector<1x32xf32>
    %cst_138 = arith.constant 1.000000e+00 : f32
    %642 = vector.broadcast %cst_138 : f32 to vector<1x32xf32>
    %643 = arith.subf %642, %636 : vector<1x32xf32>
    %644 = arith.mulf %643, %641 : vector<1x32xf32>
    %645 = arith.mulf %636, %617 : vector<1x32xf32>
    %646 = arith.addf %644, %645 : vector<1x32xf32>
    %647 = vector.extract_strided_slice %530 {offsets = [4, 0], sizes = [1, 96], strides = [1, 1]} : vector<8x96xf32> to vector<1x96xf32>
    %cst_139 = arith.constant dense<0.000000e+00> : vector<1x96xf32>
    %648 = tpu.matmul %646, %525, %cst_139 {dimension_numbers = #tpu.dot_dimension_numbers<[1], [0], [0], [1], [0, 0, 1, 1], [], []>} : vector<1x32xf32>, vector<32x96xf32>, vector<1x96xf32> -> vector<1x96xf32>
    %649 = arith.addf %648, %527 : vector<1x96xf32>
    %650 = vector.extract_strided_slice %647 {offsets = [0, 0], sizes = [1, 32], strides = [1, 1]} : vector<1x96xf32> to vector<1x32xf32>
    %651 = vector.extract_strided_slice %649 {offsets = [0, 0], sizes = [1, 32], strides = [1, 1]} : vector<1x96xf32> to vector<1x32xf32>
    %652 = arith.addf %650, %651 : vector<1x32xf32>
    %653 = arith.negf %652 : vector<1x32xf32>
    %654 = math.exp %653 : vector<1x32xf32>
    %cst_140 = arith.constant 1.000000e+00 : f32
    %655 = vector.broadcast %cst_140 : f32 to vector<1x32xf32>
    %656 = arith.addf %655, %654 : vector<1x32xf32>
    %657 = arith.divf %655, %656 : vector<1x32xf32>
    %658 = vector.extract_strided_slice %647 {offsets = [0, 32], sizes = [1, 32], strides = [1, 1]} : vector<1x96xf32> to vector<1x32xf32>
    %659 = vector.extract_strided_slice %649 {offsets = [0, 32], sizes = [1, 32], strides = [1, 1]} : vector<1x96xf32> to vector<1x32xf32>
    %660 = arith.addf %658, %659 : vector<1x32xf32>
    %661 = arith.negf %660 : vector<1x32xf32>
    %662 = math.exp %661 : vector<1x32xf32>
    %cst_141 = arith.constant 1.000000e+00 : f32
    %663 = vector.broadcast %cst_141 : f32 to vector<1x32xf32>
    %664 = arith.addf %663, %662 : vector<1x32xf32>
    %665 = arith.divf %663, %664 : vector<1x32xf32>
    %666 = vector.extract_strided_slice %647 {offsets = [0, 64], sizes = [1, 32], strides = [1, 1]} : vector<1x96xf32> to vector<1x32xf32>
    %667 = vector.extract_strided_slice %649 {offsets = [0, 64], sizes = [1, 32], strides = [1, 1]} : vector<1x96xf32> to vector<1x32xf32>
    %668 = arith.mulf %657, %667 : vector<1x32xf32>
    %669 = arith.addf %666, %668 : vector<1x32xf32>
    %670 = math.tanh %669 : vector<1x32xf32>
    %cst_142 = arith.constant 1.000000e+00 : f32
    %671 = vector.broadcast %cst_142 : f32 to vector<1x32xf32>
    %672 = arith.subf %671, %665 : vector<1x32xf32>
    %673 = arith.mulf %672, %670 : vector<1x32xf32>
    %674 = arith.mulf %665, %646 : vector<1x32xf32>
    %675 = arith.addf %673, %674 : vector<1x32xf32>
    %676 = vector.extract_strided_slice %530 {offsets = [5, 0], sizes = [1, 96], strides = [1, 1]} : vector<8x96xf32> to vector<1x96xf32>
    %cst_143 = arith.constant dense<0.000000e+00> : vector<1x96xf32>
    %677 = tpu.matmul %675, %525, %cst_143 {dimension_numbers = #tpu.dot_dimension_numbers<[1], [0], [0], [1], [0, 0, 1, 1], [], []>} : vector<1x32xf32>, vector<32x96xf32>, vector<1x96xf32> -> vector<1x96xf32>
    %678 = arith.addf %677, %527 : vector<1x96xf32>
    %679 = vector.extract_strided_slice %676 {offsets = [0, 0], sizes = [1, 32], strides = [1, 1]} : vector<1x96xf32> to vector<1x32xf32>
    %680 = vector.extract_strided_slice %678 {offsets = [0, 0], sizes = [1, 32], strides = [1, 1]} : vector<1x96xf32> to vector<1x32xf32>
    %681 = arith.addf %679, %680 : vector<1x32xf32>
    %682 = arith.negf %681 : vector<1x32xf32>
    %683 = math.exp %682 : vector<1x32xf32>
    %cst_144 = arith.constant 1.000000e+00 : f32
    %684 = vector.broadcast %cst_144 : f32 to vector<1x32xf32>
    %685 = arith.addf %684, %683 : vector<1x32xf32>
    %686 = arith.divf %684, %685 : vector<1x32xf32>
    %687 = vector.extract_strided_slice %676 {offsets = [0, 32], sizes = [1, 32], strides = [1, 1]} : vector<1x96xf32> to vector<1x32xf32>
    %688 = vector.extract_strided_slice %678 {offsets = [0, 32], sizes = [1, 32], strides = [1, 1]} : vector<1x96xf32> to vector<1x32xf32>
    %689 = arith.addf %687, %688 : vector<1x32xf32>
    %690 = arith.negf %689 : vector<1x32xf32>
    %691 = math.exp %690 : vector<1x32xf32>
    %cst_145 = arith.constant 1.000000e+00 : f32
    %692 = vector.broadcast %cst_145 : f32 to vector<1x32xf32>
    %693 = arith.addf %692, %691 : vector<1x32xf32>
    %694 = arith.divf %692, %693 : vector<1x32xf32>
    %695 = vector.extract_strided_slice %676 {offsets = [0, 64], sizes = [1, 32], strides = [1, 1]} : vector<1x96xf32> to vector<1x32xf32>
    %696 = vector.extract_strided_slice %678 {offsets = [0, 64], sizes = [1, 32], strides = [1, 1]} : vector<1x96xf32> to vector<1x32xf32>
    %697 = arith.mulf %686, %696 : vector<1x32xf32>
    %698 = arith.addf %695, %697 : vector<1x32xf32>
    %699 = math.tanh %698 : vector<1x32xf32>
    %cst_146 = arith.constant 1.000000e+00 : f32
    %700 = vector.broadcast %cst_146 : f32 to vector<1x32xf32>
    %701 = arith.subf %700, %694 : vector<1x32xf32>
    %702 = arith.mulf %701, %699 : vector<1x32xf32>
    %703 = arith.mulf %694, %675 : vector<1x32xf32>
    %704 = arith.addf %702, %703 : vector<1x32xf32>
    %705 = vector.extract_strided_slice %530 {offsets = [6, 0], sizes = [1, 96], strides = [1, 1]} : vector<8x96xf32> to vector<1x96xf32>
    %cst_147 = arith.constant dense<0.000000e+00> : vector<1x96xf32>
    %706 = tpu.matmul %704, %525, %cst_147 {dimension_numbers = #tpu.dot_dimension_numbers<[1], [0], [0], [1], [0, 0, 1, 1], [], []>} : vector<1x32xf32>, vector<32x96xf32>, vector<1x96xf32> -> vector<1x96xf32>
    %707 = arith.addf %706, %527 : vector<1x96xf32>
    %708 = vector.extract_strided_slice %705 {offsets = [0, 0], sizes = [1, 32], strides = [1, 1]} : vector<1x96xf32> to vector<1x32xf32>
    %709 = vector.extract_strided_slice %707 {offsets = [0, 0], sizes = [1, 32], strides = [1, 1]} : vector<1x96xf32> to vector<1x32xf32>
    %710 = arith.addf %708, %709 : vector<1x32xf32>
    %711 = arith.negf %710 : vector<1x32xf32>
    %712 = math.exp %711 : vector<1x32xf32>
    %cst_148 = arith.constant 1.000000e+00 : f32
    %713 = vector.broadcast %cst_148 : f32 to vector<1x32xf32>
    %714 = arith.addf %713, %712 : vector<1x32xf32>
    %715 = arith.divf %713, %714 : vector<1x32xf32>
    %716 = vector.extract_strided_slice %705 {offsets = [0, 32], sizes = [1, 32], strides = [1, 1]} : vector<1x96xf32> to vector<1x32xf32>
    %717 = vector.extract_strided_slice %707 {offsets = [0, 32], sizes = [1, 32], strides = [1, 1]} : vector<1x96xf32> to vector<1x32xf32>
    %718 = arith.addf %716, %717 : vector<1x32xf32>
    %719 = arith.negf %718 : vector<1x32xf32>
    %720 = math.exp %719 : vector<1x32xf32>
    %cst_149 = arith.constant 1.000000e+00 : f32
    %721 = vector.broadcast %cst_149 : f32 to vector<1x32xf32>
    %722 = arith.addf %721, %720 : vector<1x32xf32>
    %723 = arith.divf %721, %722 : vector<1x32xf32>
    %724 = vector.extract_strided_slice %705 {offsets = [0, 64], sizes = [1, 32], strides = [1, 1]} : vector<1x96xf32> to vector<1x32xf32>
    %725 = vector.extract_strided_slice %707 {offsets = [0, 64], sizes = [1, 32], strides = [1, 1]} : vector<1x96xf32> to vector<1x32xf32>
    %726 = arith.mulf %715, %725 : vector<1x32xf32>
    %727 = arith.addf %724, %726 : vector<1x32xf32>
    %728 = math.tanh %727 : vector<1x32xf32>
    %cst_150 = arith.constant 1.000000e+00 : f32
    %729 = vector.broadcast %cst_150 : f32 to vector<1x32xf32>
    %730 = arith.subf %729, %723 : vector<1x32xf32>
    %731 = arith.mulf %730, %728 : vector<1x32xf32>
    %732 = arith.mulf %723, %704 : vector<1x32xf32>
    %733 = arith.addf %731, %732 : vector<1x32xf32>
    %734 = vector.extract_strided_slice %530 {offsets = [7, 0], sizes = [1, 96], strides = [1, 1]} : vector<8x96xf32> to vector<1x96xf32>
    %cst_151 = arith.constant dense<0.000000e+00> : vector<1x96xf32>
    %735 = tpu.matmul %733, %525, %cst_151 {dimension_numbers = #tpu.dot_dimension_numbers<[1], [0], [0], [1], [0, 0, 1, 1], [], []>} : vector<1x32xf32>, vector<32x96xf32>, vector<1x96xf32> -> vector<1x96xf32>
    %736 = arith.addf %735, %527 : vector<1x96xf32>
    %737 = vector.extract_strided_slice %734 {offsets = [0, 0], sizes = [1, 32], strides = [1, 1]} : vector<1x96xf32> to vector<1x32xf32>
    %738 = vector.extract_strided_slice %736 {offsets = [0, 0], sizes = [1, 32], strides = [1, 1]} : vector<1x96xf32> to vector<1x32xf32>
    %739 = arith.addf %737, %738 : vector<1x32xf32>
    %740 = arith.negf %739 : vector<1x32xf32>
    %741 = math.exp %740 : vector<1x32xf32>
    %cst_152 = arith.constant 1.000000e+00 : f32
    %742 = vector.broadcast %cst_152 : f32 to vector<1x32xf32>
    %743 = arith.addf %742, %741 : vector<1x32xf32>
    %744 = arith.divf %742, %743 : vector<1x32xf32>
    %745 = vector.extract_strided_slice %734 {offsets = [0, 32], sizes = [1, 32], strides = [1, 1]} : vector<1x96xf32> to vector<1x32xf32>
    %746 = vector.extract_strided_slice %736 {offsets = [0, 32], sizes = [1, 32], strides = [1, 1]} : vector<1x96xf32> to vector<1x32xf32>
    %747 = arith.addf %745, %746 : vector<1x32xf32>
    %748 = arith.negf %747 : vector<1x32xf32>
    %749 = math.exp %748 : vector<1x32xf32>
    %cst_153 = arith.constant 1.000000e+00 : f32
    %750 = vector.broadcast %cst_153 : f32 to vector<1x32xf32>
    %751 = arith.addf %750, %749 : vector<1x32xf32>
    %752 = arith.divf %750, %751 : vector<1x32xf32>
    %753 = vector.extract_strided_slice %734 {offsets = [0, 64], sizes = [1, 32], strides = [1, 1]} : vector<1x96xf32> to vector<1x32xf32>
    %754 = vector.extract_strided_slice %736 {offsets = [0, 64], sizes = [1, 32], strides = [1, 1]} : vector<1x96xf32> to vector<1x32xf32>
    %755 = arith.mulf %744, %754 : vector<1x32xf32>
    %756 = arith.addf %753, %755 : vector<1x32xf32>
    %757 = math.tanh %756 : vector<1x32xf32>
    %cst_154 = arith.constant 1.000000e+00 : f32
    %758 = vector.broadcast %cst_154 : f32 to vector<1x32xf32>
    %759 = arith.subf %758, %752 : vector<1x32xf32>
    %760 = arith.mulf %759, %757 : vector<1x32xf32>
    %761 = arith.mulf %752, %733 : vector<1x32xf32>
    %762 = arith.addf %760, %761 : vector<1x32xf32>
    %763 = tpu.concatenate %559, %588, %617, %646, %675, %704, %733, %762 in 0 : vector<1x32xf32>, vector<1x32xf32>, vector<1x32xf32>, vector<1x32xf32>, vector<1x32xf32>, vector<1x32xf32>, vector<1x32xf32>, vector<1x32xf32> -> vector<8x32xf32>
    %c0_155 = arith.constant 0 : index
    %c0_156 = arith.constant 0 : index
    %764 = vector.load %arg23[%c0_155, %c0_156] : memref<32x32xf32, #tpu.memory_space<vmem>>, vector<32x32xf32>
    %c0_157 = arith.constant 0 : index
    %c0_158 = arith.constant 0 : index
    %765 = vector.load %arg24[%c0_157, %c0_158] : memref<1x32xf32, #tpu.memory_space<vmem>>, vector<1x32xf32>
    %c0_159 = arith.constant 0 : index
    %c0_160 = arith.constant 0 : index
    %766 = vector.load %arg25[%c0_159, %c0_160] : memref<32x32xf32, #tpu.memory_space<vmem>>, vector<32x32xf32>
    %c0_161 = arith.constant 0 : index
    %c0_162 = arith.constant 0 : index
    %767 = vector.load %arg26[%c0_161, %c0_162] : memref<1x32xf32, #tpu.memory_space<vmem>>, vector<1x32xf32>
    %c0_163 = arith.constant 0 : index
    %c0_164 = arith.constant 0 : index
    %768 = vector.load %arg27[%c0_163, %c0_164] : memref<32x32xf32, #tpu.memory_space<vmem>>, vector<32x32xf32>
    %c0_165 = arith.constant 0 : index
    %c0_166 = arith.constant 0 : index
    %769 = vector.load %arg28[%c0_165, %c0_166] : memref<1x32xf32, #tpu.memory_space<vmem>>, vector<1x32xf32>
    %cst_167 = arith.constant dense<0.000000e+00> : vector<8x32xf32>
    %770 = tpu.matmul %763, %764, %cst_167 {dimension_numbers = #tpu.dot_dimension_numbers<[1], [0], [0], [1], [0, 0, 1, 1], [], []>} : vector<8x32xf32>, vector<32x32xf32>, vector<8x32xf32> -> vector<8x32xf32>
    %771 = vector.broadcast %765 : vector<1x32xf32> to vector<8x32xf32>
    %772 = arith.addf %770, %771 : vector<8x32xf32>
    %cst_168 = arith.constant dense<0.000000e+00> : vector<8x32xf32>
    %773 = tpu.matmul %3, %766, %cst_168 {dimension_numbers = #tpu.dot_dimension_numbers<[1], [0], [0], [1], [0, 0, 1, 1], [], []>} : vector<8x32xf32>, vector<32x32xf32>, vector<8x32xf32> -> vector<8x32xf32>
    %774 = vector.broadcast %767 : vector<1x32xf32> to vector<8x32xf32>
    %775 = arith.addf %773, %774 : vector<8x32xf32>
    %cst_169 = arith.constant dense<0.000000e+00> : vector<8x32xf32>
    %776 = tpu.matmul %3, %768, %cst_169 {dimension_numbers = #tpu.dot_dimension_numbers<[1], [0], [0], [1], [0, 0, 1, 1], [], []>} : vector<8x32xf32>, vector<32x32xf32>, vector<8x32xf32> -> vector<8x32xf32>
    %777 = vector.broadcast %769 : vector<1x32xf32> to vector<8x32xf32>
    %778 = arith.addf %776, %777 : vector<8x32xf32>
    %cst_170 = arith.constant dense<0.000000e+00> : vector<8x8xf32>
    %779 = tpu.matmul %772, %775, %cst_170 {dimension_numbers = #tpu.dot_dimension_numbers<[1], [1], [0], [0], [0, 0, 1, 0], [], []>} : vector<8x32xf32>, vector<8x32xf32>, vector<8x8xf32> -> vector<8x8xf32>
    %cst_171 = arith.constant 5.000000e-01 : f32
    %780 = vector.broadcast %cst_171 : f32 to vector<1x8xf32>
    %781 = arith.cmpf ogt, %7, %780 : vector<1x8xf32>
    %cst_172 = arith.constant -1.000000e+30 : f32
    %782 = vector.shape_cast %781 : vector<1x8xi1> to vector<1x8xi1>
    %783 = vector.broadcast %782 : vector<1x8xi1> to vector<8x8xi1>
    %784 = vector.broadcast %cst_172 : f32 to vector<8x8xf32>
    %785 = arith.select %783, %779, %784 : vector<8x8xi1>, vector<8x8xf32>
    %cst_173 = arith.constant dense<0xFF800000> : vector<8xf32>
    %786 = vector.multi_reduction <maximumf>, %785, %cst_173 [1] : vector<8x8xf32> to vector<8xf32>
    %787 = vector.shape_cast %786 : vector<8xf32> to vector<8x1xf32>
    %788 = vector.broadcast %787 : vector<8x1xf32> to vector<8x8xf32>
    %789 = arith.subf %785, %788 : vector<8x8xf32>
    %790 = math.exp %789 : vector<8x8xf32>
    %cst_174 = arith.constant dense<0.000000e+00> : vector<8xf32>
    %791 = vector.multi_reduction <add>, %790, %cst_174 [1] : vector<8x8xf32> to vector<8xf32>
    %792 = vector.shape_cast %791 : vector<8xf32> to vector<8x1xf32>
    %793 = vector.broadcast %792 : vector<8x1xf32> to vector<8x8xf32>
    %794 = arith.divf %790, %793 : vector<8x8xf32>
    %cst_175 = arith.constant dense<0.000000e+00> : vector<8x32xf32>
    %795 = tpu.matmul %794, %778, %cst_175 {dimension_numbers = #tpu.dot_dimension_numbers<[1], [0], [0], [1], [0, 0, 1, 1], [], []>} : vector<8x8xf32>, vector<8x32xf32>, vector<8x32xf32> -> vector<8x32xf32>
    %796 = tpu.concatenate %763, %795 in 1 : vector<8x32xf32>, vector<8x32xf32> -> vector<8x64xf32>
    %c0_176 = arith.constant 0 : index
    %c0_177 = arith.constant 0 : index
    %797 = vector.load %arg29[%c0_176, %c0_177] : memref<64x96xf32, #tpu.memory_space<vmem>>, vector<64x96xf32>
    %c0_178 = arith.constant 0 : index
    %c0_179 = arith.constant 0 : index
    %798 = vector.load %arg30[%c0_178, %c0_179] : memref<32x96xf32, #tpu.memory_space<vmem>>, vector<32x96xf32>
    %c0_180 = arith.constant 0 : index
    %c0_181 = arith.constant 0 : index
    %799 = vector.load %arg31[%c0_180, %c0_181] : memref<1x96xf32, #tpu.memory_space<vmem>>, vector<1x96xf32>
    %c0_182 = arith.constant 0 : index
    %c0_183 = arith.constant 0 : index
    %800 = vector.load %arg32[%c0_182, %c0_183] : memref<1x96xf32, #tpu.memory_space<vmem>>, vector<1x96xf32>
    %cst_184 = arith.constant dense<0.000000e+00> : vector<8x96xf32>
    %801 = tpu.matmul %796, %797, %cst_184 {dimension_numbers = #tpu.dot_dimension_numbers<[1], [0], [0], [1], [0, 0, 1, 1], [], []>} : vector<8x64xf32>, vector<64x96xf32>, vector<8x96xf32> -> vector<8x96xf32>
    %802 = vector.broadcast %799 : vector<1x96xf32> to vector<8x96xf32>
    %803 = arith.addf %801, %802 : vector<8x96xf32>
    %804 = vector.extract_strided_slice %803 {offsets = [0, 0], sizes = [1, 96], strides = [1, 1]} : vector<8x96xf32> to vector<1x96xf32>
    %cst_185 = arith.constant dense<0.000000e+00> : vector<1x96xf32>
    %805 = tpu.matmul %523, %798, %cst_185 {dimension_numbers = #tpu.dot_dimension_numbers<[1], [0], [0], [1], [0, 0, 1, 1], [], []>} : vector<1x32xf32>, vector<32x96xf32>, vector<1x96xf32> -> vector<1x96xf32>
    %806 = arith.addf %805, %800 : vector<1x96xf32>
    %807 = vector.extract_strided_slice %804 {offsets = [0, 0], sizes = [1, 32], strides = [1, 1]} : vector<1x96xf32> to vector<1x32xf32>
    %808 = vector.extract_strided_slice %806 {offsets = [0, 0], sizes = [1, 32], strides = [1, 1]} : vector<1x96xf32> to vector<1x32xf32>
    %809 = arith.addf %807, %808 : vector<1x32xf32>
    %810 = arith.negf %809 : vector<1x32xf32>
    %811 = math.exp %810 : vector<1x32xf32>
    %cst_186 = arith.constant 1.000000e+00 : f32
    %812 = vector.broadcast %cst_186 : f32 to vector<1x32xf32>
    %813 = arith.addf %812, %811 : vector<1x32xf32>
    %814 = arith.divf %812, %813 : vector<1x32xf32>
    %815 = vector.extract_strided_slice %804 {offsets = [0, 32], sizes = [1, 32], strides = [1, 1]} : vector<1x96xf32> to vector<1x32xf32>
    %816 = vector.extract_strided_slice %806 {offsets = [0, 32], sizes = [1, 32], strides = [1, 1]} : vector<1x96xf32> to vector<1x32xf32>
    %817 = arith.addf %815, %816 : vector<1x32xf32>
    %818 = arith.negf %817 : vector<1x32xf32>
    %819 = math.exp %818 : vector<1x32xf32>
    %cst_187 = arith.constant 1.000000e+00 : f32
    %820 = vector.broadcast %cst_187 : f32 to vector<1x32xf32>
    %821 = arith.addf %820, %819 : vector<1x32xf32>
    %822 = arith.divf %820, %821 : vector<1x32xf32>
    %823 = vector.extract_strided_slice %804 {offsets = [0, 64], sizes = [1, 32], strides = [1, 1]} : vector<1x96xf32> to vector<1x32xf32>
    %824 = vector.extract_strided_slice %806 {offsets = [0, 64], sizes = [1, 32], strides = [1, 1]} : vector<1x96xf32> to vector<1x32xf32>
    %825 = arith.mulf %814, %824 : vector<1x32xf32>
    %826 = arith.addf %823, %825 : vector<1x32xf32>
    %827 = math.tanh %826 : vector<1x32xf32>
    %cst_188 = arith.constant 1.000000e+00 : f32
    %828 = vector.broadcast %cst_188 : f32 to vector<1x32xf32>
    %829 = arith.subf %828, %822 : vector<1x32xf32>
    %830 = arith.mulf %829, %827 : vector<1x32xf32>
    %831 = arith.mulf %822, %523 : vector<1x32xf32>
    %832 = arith.addf %830, %831 : vector<1x32xf32>
    %833 = vector.extract_strided_slice %803 {offsets = [1, 0], sizes = [1, 96], strides = [1, 1]} : vector<8x96xf32> to vector<1x96xf32>
    %cst_189 = arith.constant dense<0.000000e+00> : vector<1x96xf32>
    %834 = tpu.matmul %832, %798, %cst_189 {dimension_numbers = #tpu.dot_dimension_numbers<[1], [0], [0], [1], [0, 0, 1, 1], [], []>} : vector<1x32xf32>, vector<32x96xf32>, vector<1x96xf32> -> vector<1x96xf32>
    %835 = arith.addf %834, %800 : vector<1x96xf32>
    %836 = vector.extract_strided_slice %833 {offsets = [0, 0], sizes = [1, 32], strides = [1, 1]} : vector<1x96xf32> to vector<1x32xf32>
    %837 = vector.extract_strided_slice %835 {offsets = [0, 0], sizes = [1, 32], strides = [1, 1]} : vector<1x96xf32> to vector<1x32xf32>
    %838 = arith.addf %836, %837 : vector<1x32xf32>
    %839 = arith.negf %838 : vector<1x32xf32>
    %840 = math.exp %839 : vector<1x32xf32>
    %cst_190 = arith.constant 1.000000e+00 : f32
    %841 = vector.broadcast %cst_190 : f32 to vector<1x32xf32>
    %842 = arith.addf %841, %840 : vector<1x32xf32>
    %843 = arith.divf %841, %842 : vector<1x32xf32>
    %844 = vector.extract_strided_slice %833 {offsets = [0, 32], sizes = [1, 32], strides = [1, 1]} : vector<1x96xf32> to vector<1x32xf32>
    %845 = vector.extract_strided_slice %835 {offsets = [0, 32], sizes = [1, 32], strides = [1, 1]} : vector<1x96xf32> to vector<1x32xf32>
    %846 = arith.addf %844, %845 : vector<1x32xf32>
    %847 = arith.negf %846 : vector<1x32xf32>
    %848 = math.exp %847 : vector<1x32xf32>
    %cst_191 = arith.constant 1.000000e+00 : f32
    %849 = vector.broadcast %cst_191 : f32 to vector<1x32xf32>
    %850 = arith.addf %849, %848 : vector<1x32xf32>
    %851 = arith.divf %849, %850 : vector<1x32xf32>
    %852 = vector.extract_strided_slice %833 {offsets = [0, 64], sizes = [1, 32], strides = [1, 1]} : vector<1x96xf32> to vector<1x32xf32>
    %853 = vector.extract_strided_slice %835 {offsets = [0, 64], sizes = [1, 32], strides = [1, 1]} : vector<1x96xf32> to vector<1x32xf32>
    %854 = arith.mulf %843, %853 : vector<1x32xf32>
    %855 = arith.addf %852, %854 : vector<1x32xf32>
    %856 = math.tanh %855 : vector<1x32xf32>
    %cst_192 = arith.constant 1.000000e+00 : f32
    %857 = vector.broadcast %cst_192 : f32 to vector<1x32xf32>
    %858 = arith.subf %857, %851 : vector<1x32xf32>
    %859 = arith.mulf %858, %856 : vector<1x32xf32>
    %860 = arith.mulf %851, %832 : vector<1x32xf32>
    %861 = arith.addf %859, %860 : vector<1x32xf32>
    %862 = vector.extract_strided_slice %803 {offsets = [2, 0], sizes = [1, 96], strides = [1, 1]} : vector<8x96xf32> to vector<1x96xf32>
    %cst_193 = arith.constant dense<0.000000e+00> : vector<1x96xf32>
    %863 = tpu.matmul %861, %798, %cst_193 {dimension_numbers = #tpu.dot_dimension_numbers<[1], [0], [0], [1], [0, 0, 1, 1], [], []>} : vector<1x32xf32>, vector<32x96xf32>, vector<1x96xf32> -> vector<1x96xf32>
    %864 = arith.addf %863, %800 : vector<1x96xf32>
    %865 = vector.extract_strided_slice %862 {offsets = [0, 0], sizes = [1, 32], strides = [1, 1]} : vector<1x96xf32> to vector<1x32xf32>
    %866 = vector.extract_strided_slice %864 {offsets = [0, 0], sizes = [1, 32], strides = [1, 1]} : vector<1x96xf32> to vector<1x32xf32>
    %867 = arith.addf %865, %866 : vector<1x32xf32>
    %868 = arith.negf %867 : vector<1x32xf32>
    %869 = math.exp %868 : vector<1x32xf32>
    %cst_194 = arith.constant 1.000000e+00 : f32
    %870 = vector.broadcast %cst_194 : f32 to vector<1x32xf32>
    %871 = arith.addf %870, %869 : vector<1x32xf32>
    %872 = arith.divf %870, %871 : vector<1x32xf32>
    %873 = vector.extract_strided_slice %862 {offsets = [0, 32], sizes = [1, 32], strides = [1, 1]} : vector<1x96xf32> to vector<1x32xf32>
    %874 = vector.extract_strided_slice %864 {offsets = [0, 32], sizes = [1, 32], strides = [1, 1]} : vector<1x96xf32> to vector<1x32xf32>
    %875 = arith.addf %873, %874 : vector<1x32xf32>
    %876 = arith.negf %875 : vector<1x32xf32>
    %877 = math.exp %876 : vector<1x32xf32>
    %cst_195 = arith.constant 1.000000e+00 : f32
    %878 = vector.broadcast %cst_195 : f32 to vector<1x32xf32>
    %879 = arith.addf %878, %877 : vector<1x32xf32>
    %880 = arith.divf %878, %879 : vector<1x32xf32>
    %881 = vector.extract_strided_slice %862 {offsets = [0, 64], sizes = [1, 32], strides = [1, 1]} : vector<1x96xf32> to vector<1x32xf32>
    %882 = vector.extract_strided_slice %864 {offsets = [0, 64], sizes = [1, 32], strides = [1, 1]} : vector<1x96xf32> to vector<1x32xf32>
    %883 = arith.mulf %872, %882 : vector<1x32xf32>
    %884 = arith.addf %881, %883 : vector<1x32xf32>
    %885 = math.tanh %884 : vector<1x32xf32>
    %cst_196 = arith.constant 1.000000e+00 : f32
    %886 = vector.broadcast %cst_196 : f32 to vector<1x32xf32>
    %887 = arith.subf %886, %880 : vector<1x32xf32>
    %888 = arith.mulf %887, %885 : vector<1x32xf32>
    %889 = arith.mulf %880, %861 : vector<1x32xf32>
    %890 = arith.addf %888, %889 : vector<1x32xf32>
    %891 = vector.extract_strided_slice %803 {offsets = [3, 0], sizes = [1, 96], strides = [1, 1]} : vector<8x96xf32> to vector<1x96xf32>
    %cst_197 = arith.constant dense<0.000000e+00> : vector<1x96xf32>
    %892 = tpu.matmul %890, %798, %cst_197 {dimension_numbers = #tpu.dot_dimension_numbers<[1], [0], [0], [1], [0, 0, 1, 1], [], []>} : vector<1x32xf32>, vector<32x96xf32>, vector<1x96xf32> -> vector<1x96xf32>
    %893 = arith.addf %892, %800 : vector<1x96xf32>
    %894 = vector.extract_strided_slice %891 {offsets = [0, 0], sizes = [1, 32], strides = [1, 1]} : vector<1x96xf32> to vector<1x32xf32>
    %895 = vector.extract_strided_slice %893 {offsets = [0, 0], sizes = [1, 32], strides = [1, 1]} : vector<1x96xf32> to vector<1x32xf32>
    %896 = arith.addf %894, %895 : vector<1x32xf32>
    %897 = arith.negf %896 : vector<1x32xf32>
    %898 = math.exp %897 : vector<1x32xf32>
    %cst_198 = arith.constant 1.000000e+00 : f32
    %899 = vector.broadcast %cst_198 : f32 to vector<1x32xf32>
    %900 = arith.addf %899, %898 : vector<1x32xf32>
    %901 = arith.divf %899, %900 : vector<1x32xf32>
    %902 = vector.extract_strided_slice %891 {offsets = [0, 32], sizes = [1, 32], strides = [1, 1]} : vector<1x96xf32> to vector<1x32xf32>
    %903 = vector.extract_strided_slice %893 {offsets = [0, 32], sizes = [1, 32], strides = [1, 1]} : vector<1x96xf32> to vector<1x32xf32>
    %904 = arith.addf %902, %903 : vector<1x32xf32>
    %905 = arith.negf %904 : vector<1x32xf32>
    %906 = math.exp %905 : vector<1x32xf32>
    %cst_199 = arith.constant 1.000000e+00 : f32
    %907 = vector.broadcast %cst_199 : f32 to vector<1x32xf32>
    %908 = arith.addf %907, %906 : vector<1x32xf32>
    %909 = arith.divf %907, %908 : vector<1x32xf32>
    %910 = vector.extract_strided_slice %891 {offsets = [0, 64], sizes = [1, 32], strides = [1, 1]} : vector<1x96xf32> to vector<1x32xf32>
    %911 = vector.extract_strided_slice %893 {offsets = [0, 64], sizes = [1, 32], strides = [1, 1]} : vector<1x96xf32> to vector<1x32xf32>
    %912 = arith.mulf %901, %911 : vector<1x32xf32>
    %913 = arith.addf %910, %912 : vector<1x32xf32>
    %914 = math.tanh %913 : vector<1x32xf32>
    %cst_200 = arith.constant 1.000000e+00 : f32
    %915 = vector.broadcast %cst_200 : f32 to vector<1x32xf32>
    %916 = arith.subf %915, %909 : vector<1x32xf32>
    %917 = arith.mulf %916, %914 : vector<1x32xf32>
    %918 = arith.mulf %909, %890 : vector<1x32xf32>
    %919 = arith.addf %917, %918 : vector<1x32xf32>
    %920 = vector.extract_strided_slice %803 {offsets = [4, 0], sizes = [1, 96], strides = [1, 1]} : vector<8x96xf32> to vector<1x96xf32>
    %cst_201 = arith.constant dense<0.000000e+00> : vector<1x96xf32>
    %921 = tpu.matmul %919, %798, %cst_201 {dimension_numbers = #tpu.dot_dimension_numbers<[1], [0], [0], [1], [0, 0, 1, 1], [], []>} : vector<1x32xf32>, vector<32x96xf32>, vector<1x96xf32> -> vector<1x96xf32>
    %922 = arith.addf %921, %800 : vector<1x96xf32>
    %923 = vector.extract_strided_slice %920 {offsets = [0, 0], sizes = [1, 32], strides = [1, 1]} : vector<1x96xf32> to vector<1x32xf32>
    %924 = vector.extract_strided_slice %922 {offsets = [0, 0], sizes = [1, 32], strides = [1, 1]} : vector<1x96xf32> to vector<1x32xf32>
    %925 = arith.addf %923, %924 : vector<1x32xf32>
    %926 = arith.negf %925 : vector<1x32xf32>
    %927 = math.exp %926 : vector<1x32xf32>
    %cst_202 = arith.constant 1.000000e+00 : f32
    %928 = vector.broadcast %cst_202 : f32 to vector<1x32xf32>
    %929 = arith.addf %928, %927 : vector<1x32xf32>
    %930 = arith.divf %928, %929 : vector<1x32xf32>
    %931 = vector.extract_strided_slice %920 {offsets = [0, 32], sizes = [1, 32], strides = [1, 1]} : vector<1x96xf32> to vector<1x32xf32>
    %932 = vector.extract_strided_slice %922 {offsets = [0, 32], sizes = [1, 32], strides = [1, 1]} : vector<1x96xf32> to vector<1x32xf32>
    %933 = arith.addf %931, %932 : vector<1x32xf32>
    %934 = arith.negf %933 : vector<1x32xf32>
    %935 = math.exp %934 : vector<1x32xf32>
    %cst_203 = arith.constant 1.000000e+00 : f32
    %936 = vector.broadcast %cst_203 : f32 to vector<1x32xf32>
    %937 = arith.addf %936, %935 : vector<1x32xf32>
    %938 = arith.divf %936, %937 : vector<1x32xf32>
    %939 = vector.extract_strided_slice %920 {offsets = [0, 64], sizes = [1, 32], strides = [1, 1]} : vector<1x96xf32> to vector<1x32xf32>
    %940 = vector.extract_strided_slice %922 {offsets = [0, 64], sizes = [1, 32], strides = [1, 1]} : vector<1x96xf32> to vector<1x32xf32>
    %941 = arith.mulf %930, %940 : vector<1x32xf32>
    %942 = arith.addf %939, %941 : vector<1x32xf32>
    %943 = math.tanh %942 : vector<1x32xf32>
    %cst_204 = arith.constant 1.000000e+00 : f32
    %944 = vector.broadcast %cst_204 : f32 to vector<1x32xf32>
    %945 = arith.subf %944, %938 : vector<1x32xf32>
    %946 = arith.mulf %945, %943 : vector<1x32xf32>
    %947 = arith.mulf %938, %919 : vector<1x32xf32>
    %948 = arith.addf %946, %947 : vector<1x32xf32>
    %949 = vector.extract_strided_slice %803 {offsets = [5, 0], sizes = [1, 96], strides = [1, 1]} : vector<8x96xf32> to vector<1x96xf32>
    %cst_205 = arith.constant dense<0.000000e+00> : vector<1x96xf32>
    %950 = tpu.matmul %948, %798, %cst_205 {dimension_numbers = #tpu.dot_dimension_numbers<[1], [0], [0], [1], [0, 0, 1, 1], [], []>} : vector<1x32xf32>, vector<32x96xf32>, vector<1x96xf32> -> vector<1x96xf32>
    %951 = arith.addf %950, %800 : vector<1x96xf32>
    %952 = vector.extract_strided_slice %949 {offsets = [0, 0], sizes = [1, 32], strides = [1, 1]} : vector<1x96xf32> to vector<1x32xf32>
    %953 = vector.extract_strided_slice %951 {offsets = [0, 0], sizes = [1, 32], strides = [1, 1]} : vector<1x96xf32> to vector<1x32xf32>
    %954 = arith.addf %952, %953 : vector<1x32xf32>
    %955 = arith.negf %954 : vector<1x32xf32>
    %956 = math.exp %955 : vector<1x32xf32>
    %cst_206 = arith.constant 1.000000e+00 : f32
    %957 = vector.broadcast %cst_206 : f32 to vector<1x32xf32>
    %958 = arith.addf %957, %956 : vector<1x32xf32>
    %959 = arith.divf %957, %958 : vector<1x32xf32>
    %960 = vector.extract_strided_slice %949 {offsets = [0, 32], sizes = [1, 32], strides = [1, 1]} : vector<1x96xf32> to vector<1x32xf32>
    %961 = vector.extract_strided_slice %951 {offsets = [0, 32], sizes = [1, 32], strides = [1, 1]} : vector<1x96xf32> to vector<1x32xf32>
    %962 = arith.addf %960, %961 : vector<1x32xf32>
    %963 = arith.negf %962 : vector<1x32xf32>
    %964 = math.exp %963 : vector<1x32xf32>
    %cst_207 = arith.constant 1.000000e+00 : f32
    %965 = vector.broadcast %cst_207 : f32 to vector<1x32xf32>
    %966 = arith.addf %965, %964 : vector<1x32xf32>
    %967 = arith.divf %965, %966 : vector<1x32xf32>
    %968 = vector.extract_strided_slice %949 {offsets = [0, 64], sizes = [1, 32], strides = [1, 1]} : vector<1x96xf32> to vector<1x32xf32>
    %969 = vector.extract_strided_slice %951 {offsets = [0, 64], sizes = [1, 32], strides = [1, 1]} : vector<1x96xf32> to vector<1x32xf32>
    %970 = arith.mulf %959, %969 : vector<1x32xf32>
    %971 = arith.addf %968, %970 : vector<1x32xf32>
    %972 = math.tanh %971 : vector<1x32xf32>
    %cst_208 = arith.constant 1.000000e+00 : f32
    %973 = vector.broadcast %cst_208 : f32 to vector<1x32xf32>
    %974 = arith.subf %973, %967 : vector<1x32xf32>
    %975 = arith.mulf %974, %972 : vector<1x32xf32>
    %976 = arith.mulf %967, %948 : vector<1x32xf32>
    %977 = arith.addf %975, %976 : vector<1x32xf32>
    %978 = vector.extract_strided_slice %803 {offsets = [6, 0], sizes = [1, 96], strides = [1, 1]} : vector<8x96xf32> to vector<1x96xf32>
    %cst_209 = arith.constant dense<0.000000e+00> : vector<1x96xf32>
    %979 = tpu.matmul %977, %798, %cst_209 {dimension_numbers = #tpu.dot_dimension_numbers<[1], [0], [0], [1], [0, 0, 1, 1], [], []>} : vector<1x32xf32>, vector<32x96xf32>, vector<1x96xf32> -> vector<1x96xf32>
    %980 = arith.addf %979, %800 : vector<1x96xf32>
    %981 = vector.extract_strided_slice %978 {offsets = [0, 0], sizes = [1, 32], strides = [1, 1]} : vector<1x96xf32> to vector<1x32xf32>
    %982 = vector.extract_strided_slice %980 {offsets = [0, 0], sizes = [1, 32], strides = [1, 1]} : vector<1x96xf32> to vector<1x32xf32>
    %983 = arith.addf %981, %982 : vector<1x32xf32>
    %984 = arith.negf %983 : vector<1x32xf32>
    %985 = math.exp %984 : vector<1x32xf32>
    %cst_210 = arith.constant 1.000000e+00 : f32
    %986 = vector.broadcast %cst_210 : f32 to vector<1x32xf32>
    %987 = arith.addf %986, %985 : vector<1x32xf32>
    %988 = arith.divf %986, %987 : vector<1x32xf32>
    %989 = vector.extract_strided_slice %978 {offsets = [0, 32], sizes = [1, 32], strides = [1, 1]} : vector<1x96xf32> to vector<1x32xf32>
    %990 = vector.extract_strided_slice %980 {offsets = [0, 32], sizes = [1, 32], strides = [1, 1]} : vector<1x96xf32> to vector<1x32xf32>
    %991 = arith.addf %989, %990 : vector<1x32xf32>
    %992 = arith.negf %991 : vector<1x32xf32>
    %993 = math.exp %992 : vector<1x32xf32>
    %cst_211 = arith.constant 1.000000e+00 : f32
    %994 = vector.broadcast %cst_211 : f32 to vector<1x32xf32>
    %995 = arith.addf %994, %993 : vector<1x32xf32>
    %996 = arith.divf %994, %995 : vector<1x32xf32>
    %997 = vector.extract_strided_slice %978 {offsets = [0, 64], sizes = [1, 32], strides = [1, 1]} : vector<1x96xf32> to vector<1x32xf32>
    %998 = vector.extract_strided_slice %980 {offsets = [0, 64], sizes = [1, 32], strides = [1, 1]} : vector<1x96xf32> to vector<1x32xf32>
    %999 = arith.mulf %988, %998 : vector<1x32xf32>
    %1000 = arith.addf %997, %999 : vector<1x32xf32>
    %1001 = math.tanh %1000 : vector<1x32xf32>
    %cst_212 = arith.constant 1.000000e+00 : f32
    %1002 = vector.broadcast %cst_212 : f32 to vector<1x32xf32>
    %1003 = arith.subf %1002, %996 : vector<1x32xf32>
    %1004 = arith.mulf %1003, %1001 : vector<1x32xf32>
    %1005 = arith.mulf %996, %977 : vector<1x32xf32>
    %1006 = arith.addf %1004, %1005 : vector<1x32xf32>
    %1007 = vector.extract_strided_slice %803 {offsets = [7, 0], sizes = [1, 96], strides = [1, 1]} : vector<8x96xf32> to vector<1x96xf32>
    %cst_213 = arith.constant dense<0.000000e+00> : vector<1x96xf32>
    %1008 = tpu.matmul %1006, %798, %cst_213 {dimension_numbers = #tpu.dot_dimension_numbers<[1], [0], [0], [1], [0, 0, 1, 1], [], []>} : vector<1x32xf32>, vector<32x96xf32>, vector<1x96xf32> -> vector<1x96xf32>
    %1009 = arith.addf %1008, %800 : vector<1x96xf32>
    %1010 = vector.extract_strided_slice %1007 {offsets = [0, 0], sizes = [1, 32], strides = [1, 1]} : vector<1x96xf32> to vector<1x32xf32>
    %1011 = vector.extract_strided_slice %1009 {offsets = [0, 0], sizes = [1, 32], strides = [1, 1]} : vector<1x96xf32> to vector<1x32xf32>
    %1012 = arith.addf %1010, %1011 : vector<1x32xf32>
    %1013 = arith.negf %1012 : vector<1x32xf32>
    %1014 = math.exp %1013 : vector<1x32xf32>
    %cst_214 = arith.constant 1.000000e+00 : f32
    %1015 = vector.broadcast %cst_214 : f32 to vector<1x32xf32>
    %1016 = arith.addf %1015, %1014 : vector<1x32xf32>
    %1017 = arith.divf %1015, %1016 : vector<1x32xf32>
    %1018 = vector.extract_strided_slice %1007 {offsets = [0, 32], sizes = [1, 32], strides = [1, 1]} : vector<1x96xf32> to vector<1x32xf32>
    %1019 = vector.extract_strided_slice %1009 {offsets = [0, 32], sizes = [1, 32], strides = [1, 1]} : vector<1x96xf32> to vector<1x32xf32>
    %1020 = arith.addf %1018, %1019 : vector<1x32xf32>
    %1021 = arith.negf %1020 : vector<1x32xf32>
    %1022 = math.exp %1021 : vector<1x32xf32>
    %cst_215 = arith.constant 1.000000e+00 : f32
    %1023 = vector.broadcast %cst_215 : f32 to vector<1x32xf32>
    %1024 = arith.addf %1023, %1022 : vector<1x32xf32>
    %1025 = arith.divf %1023, %1024 : vector<1x32xf32>
    %1026 = vector.extract_strided_slice %1007 {offsets = [0, 64], sizes = [1, 32], strides = [1, 1]} : vector<1x96xf32> to vector<1x32xf32>
    %1027 = vector.extract_strided_slice %1009 {offsets = [0, 64], sizes = [1, 32], strides = [1, 1]} : vector<1x96xf32> to vector<1x32xf32>
    %1028 = arith.mulf %1017, %1027 : vector<1x32xf32>
    %1029 = arith.addf %1026, %1028 : vector<1x32xf32>
    %1030 = math.tanh %1029 : vector<1x32xf32>
    %cst_216 = arith.constant 1.000000e+00 : f32
    %1031 = vector.broadcast %cst_216 : f32 to vector<1x32xf32>
    %1032 = arith.subf %1031, %1025 : vector<1x32xf32>
    %1033 = arith.mulf %1032, %1030 : vector<1x32xf32>
    %1034 = arith.mulf %1025, %1006 : vector<1x32xf32>
    %1035 = arith.addf %1033, %1034 : vector<1x32xf32>
    %1036 = tpu.concatenate %832, %861, %890, %919, %948, %977, %1006, %1035 in 0 : vector<1x32xf32>, vector<1x32xf32>, vector<1x32xf32>, vector<1x32xf32>, vector<1x32xf32>, vector<1x32xf32>, vector<1x32xf32>, vector<1x32xf32> -> vector<8x32xf32>
    %c0_217 = arith.constant 0 : index
    %c0_218 = arith.constant 0 : index
    %1037 = vector.load %arg33[%c0_217, %c0_218] : memref<32x18xf32, #tpu.memory_space<vmem>>, vector<32x18xf32>
    %cst_219 = arith.constant dense<0.000000e+00> : vector<8x18xf32>
    %1038 = tpu.matmul %1036, %1037, %cst_219 {dimension_numbers = #tpu.dot_dimension_numbers<[1], [0], [0], [1], [0, 0, 1, 1], [], []>} : vector<8x32xf32>, vector<32x18xf32>, vector<8x18xf32> -> vector<8x18xf32>
    %c0_220 = arith.constant 0 : index
    %c0_221 = arith.constant 0 : index
    %1039 = vector.load %arg34[%c0_220, %c0_221] : memref<1x18xf32, #tpu.memory_space<vmem>>, vector<1x18xf32>
    %1040 = vector.broadcast %1039 : vector<1x18xf32> to vector<8x18xf32>
    %1041 = arith.addf %1038, %1040 : vector<8x18xf32>
    %1042 = vector.extract_strided_slice %1041 {offsets = [0, 0], sizes = [8, 11], strides = [1, 1]} : vector<8x18xf32> to vector<8x11xf32>
    %cst_222 = arith.constant dense<0xFF800000> : vector<8xf32>
    %1043 = vector.multi_reduction <maximumf>, %1042, %cst_222 [1] : vector<8x11xf32> to vector<8xf32>
    %1044 = vector.shape_cast %1043 : vector<8xf32> to vector<8x1xf32>
    %1045 = vector.broadcast %1044 : vector<8x1xf32> to vector<8x11xf32>
    %1046 = arith.subf %1042, %1045 : vector<8x11xf32>
    %1047 = math.exp %1046 : vector<8x11xf32>
    %cst_223 = arith.constant dense<0.000000e+00> : vector<8xf32>
    %1048 = vector.multi_reduction <add>, %1047, %cst_223 [1] : vector<8x11xf32> to vector<8xf32>
    %1049 = vector.shape_cast %1048 : vector<8xf32> to vector<8x1xf32>
    %1050 = vector.broadcast %1049 : vector<8x1xf32> to vector<8x11xf32>
    %1051 = arith.divf %1047, %1050 : vector<8x11xf32>
    %1052 = vector.extract_strided_slice %1041 {offsets = [0, 11], sizes = [8, 7], strides = [1, 1]} : vector<8x18xf32> to vector<8x7xf32>
    %cst_224 = arith.constant dense<0xFF800000> : vector<8xf32>
    %1053 = vector.multi_reduction <maximumf>, %1052, %cst_224 [1] : vector<8x7xf32> to vector<8xf32>
    %1054 = vector.shape_cast %1053 : vector<8xf32> to vector<8x1xf32>
    %1055 = vector.broadcast %1054 : vector<8x1xf32> to vector<8x7xf32>
    %1056 = arith.subf %1052, %1055 : vector<8x7xf32>
    %1057 = math.exp %1056 : vector<8x7xf32>
    %cst_225 = arith.constant dense<0.000000e+00> : vector<8xf32>
    %1058 = vector.multi_reduction <add>, %1057, %cst_225 [1] : vector<8x7xf32> to vector<8xf32>
    %1059 = vector.shape_cast %1058 : vector<8xf32> to vector<8x1xf32>
    %1060 = vector.broadcast %1059 : vector<8x1xf32> to vector<8x7xf32>
    %1061 = arith.divf %1057, %1060 : vector<8x7xf32>
    %1062 = tpu.concatenate %1051, %1061 in 1 : vector<8x11xf32>, vector<8x7xf32> -> vector<8x18xf32>
    %c0_226 = arith.constant 0 : index
    %c0_227 = arith.constant 0 : index
    %c0_228 = arith.constant 0 : index
    %1063 = vector.load %arg35[%c0_226, %c0_227, %c0_228] : memref<1x8x18xf32, #tpu.memory_space<vmem>>, vector<1x8x18xf32>
    %1064 = vector.shape_cast %1063 : vector<1x8x18xf32> to vector<8x18xf32>
    %1065 = vector.shape_cast %1062 : vector<8x18xf32> to vector<1x8x18xf32>
    tpu.vector_store %arg35[%c0_226, %c0_227, %c0_228], %1065 {strides = array<i32>} : memref<1x8x18xf32, #tpu.memory_space<vmem>>, vector<1x8x18xf32>,
    %1066 = tpu.transpose %794, [1, 0] : vector<8x8xf32> -> vector<8x8xf32>
    %c0_229 = arith.constant 0 : index
    %c0_230 = arith.constant 0 : index
    %c0_231 = arith.constant 0 : index
    %1067 = vector.load %arg36[%c0_229, %c0_230, %c0_231] : memref<1x8x8xf32, #tpu.memory_space<vmem>>, vector<1x8x8xf32>
    %1068 = vector.shape_cast %1067 : vector<1x8x8xf32> to vector<8x8xf32>
    %1069 = vector.shape_cast %1066 : vector<8x8xf32> to vector<1x8x8xf32>
    tpu.vector_store %arg36[%c0_229, %c0_230, %c0_231], %1069 {strides = array<i32>} : memref<1x8x8xf32, #tpu.memory_space<vmem>>, vector<1x8x8xf32>,
    return
  }
  func.func @transform_0(%arg0: i32) -> (i32, i32, i32) {
    %c0_i32 = arith.constant 0 : i32
    %c0_i32_0 = arith.constant 0 : i32
    %c0_i32_1 = arith.constant 0 : i32
    return %arg0, %c0_i32, %c0_i32_0 : i32, i32, i32
  }
  func.func @transform_1(%arg0: i32) -> (i32, i32, i32) {
    %c0_i32 = arith.constant 0 : i32
    %c0_i32_0 = arith.constant 0 : i32
    %c0_i32_1 = arith.constant 0 : i32
    return %arg0, %c0_i32, %c0_i32_0 : i32, i32, i32
  }
  func.func @transform_2(%arg0: i32) -> (i32, i32, i32) {
    %c0_i32 = arith.constant 0 : i32
    %c0_i32_0 = arith.constant 0 : i32
    %c0_i32_1 = arith.constant 0 : i32
    return %arg0, %c0_i32, %c0_i32_0 : i32, i32, i32
  }
  func.func @transform_3(%arg0: i32) -> (i32, i32, i32) {
    %c0_i32 = arith.constant 0 : i32
    %c0_i32_0 = arith.constant 0 : i32
    %c0_i32_1 = arith.constant 0 : i32
    return %arg0, %c0_i32, %c0_i32_0 : i32, i32, i32
  }
  func.func @transform_4(%arg0: i32) -> (i32, i32) {
    %c0_i32 = arith.constant 0 : i32
    %c0_i32_0 = arith.constant 0 : i32
    %c0_i32_1 = arith.constant 0 : i32
    return %c0_i32, %c0_i32_0 : i32, i32
  }
  func.func @transform_5(%arg0: i32) -> (i32, i32) {
    %c0_i32 = arith.constant 0 : i32
    %c0_i32_0 = arith.constant 0 : i32
    %c0_i32_1 = arith.constant 0 : i32
    return %c0_i32, %c0_i32_0 : i32, i32
  }
  func.func @transform_6(%arg0: i32) -> (i32, i32) {
    %c0_i32 = arith.constant 0 : i32
    %c0_i32_0 = arith.constant 0 : i32
    %c0_i32_1 = arith.constant 0 : i32
    return %c0_i32, %c0_i32_0 : i32, i32
  }
  func.func @transform_7(%arg0: i32) -> (i32, i32) {
    %c0_i32 = arith.constant 0 : i32
    %c0_i32_0 = arith.constant 0 : i32
    %c0_i32_1 = arith.constant 0 : i32
    return %c0_i32, %c0_i32_0 : i32, i32
  }
  func.func @transform_8(%arg0: i32) -> (i32, i32) {
    %c0_i32 = arith.constant 0 : i32
    %c0_i32_0 = arith.constant 0 : i32
    %c0_i32_1 = arith.constant 0 : i32
    return %c0_i32, %c0_i32_0 : i32, i32
  }
  func.func @transform_9(%arg0: i32) -> (i32, i32) {
    %c0_i32 = arith.constant 0 : i32
    %c0_i32_0 = arith.constant 0 : i32
    %c0_i32_1 = arith.constant 0 : i32
    return %c0_i32, %c0_i32_0 : i32, i32
  }
  func.func @transform_10(%arg0: i32) -> (i32, i32) {
    %c0_i32 = arith.constant 0 : i32
    %c0_i32_0 = arith.constant 0 : i32
    %c0_i32_1 = arith.constant 0 : i32
    return %c0_i32, %c0_i32_0 : i32, i32
  }
  func.func @transform_11(%arg0: i32) -> (i32, i32) {
    %c0_i32 = arith.constant 0 : i32
    %c0_i32_0 = arith.constant 0 : i32
    %c0_i32_1 = arith.constant 0 : i32
    return %c0_i32, %c0_i32_0 : i32, i32
  }
  func.func @transform_12(%arg0: i32) -> (i32, i32) {
    %c0_i32 = arith.constant 0 : i32
    %c0_i32_0 = arith.constant 0 : i32
    %c0_i32_1 = arith.constant 0 : i32
    return %c0_i32, %c0_i32_0 : i32, i32
  }
  func.func @transform_13(%arg0: i32) -> (i32, i32) {
    %c0_i32 = arith.constant 0 : i32
    %c0_i32_0 = arith.constant 0 : i32
    %c0_i32_1 = arith.constant 0 : i32
    return %c0_i32, %c0_i32_0 : i32, i32
  }
  func.func @transform_14(%arg0: i32) -> (i32, i32) {
    %c0_i32 = arith.constant 0 : i32
    %c0_i32_0 = arith.constant 0 : i32
    %c0_i32_1 = arith.constant 0 : i32
    return %c0_i32, %c0_i32_0 : i32, i32
  }
  func.func @transform_15(%arg0: i32) -> (i32, i32) {
    %c0_i32 = arith.constant 0 : i32
    %c0_i32_0 = arith.constant 0 : i32
    %c0_i32_1 = arith.constant 0 : i32
    return %c0_i32, %c0_i32_0 : i32, i32
  }
  func.func @transform_16(%arg0: i32) -> (i32, i32) {
    %c0_i32 = arith.constant 0 : i32
    %c0_i32_0 = arith.constant 0 : i32
    %c0_i32_1 = arith.constant 0 : i32
    return %c0_i32, %c0_i32_0 : i32, i32
  }
  func.func @transform_17(%arg0: i32) -> (i32, i32) {
    %c0_i32 = arith.constant 0 : i32
    %c0_i32_0 = arith.constant 0 : i32
    %c0_i32_1 = arith.constant 0 : i32
    return %c0_i32, %c0_i32_0 : i32, i32
  }
  func.func @transform_18(%arg0: i32) -> (i32, i32) {
    %c0_i32 = arith.constant 0 : i32
    %c0_i32_0 = arith.constant 0 : i32
    %c0_i32_1 = arith.constant 0 : i32
    return %c0_i32, %c0_i32_0 : i32, i32
  }
  func.func @transform_19(%arg0: i32) -> (i32, i32) {
    %c0_i32 = arith.constant 0 : i32
    %c0_i32_0 = arith.constant 0 : i32
    %c0_i32_1 = arith.constant 0 : i32
    return %c0_i32, %c0_i32_0 : i32, i32
  }
  func.func @transform_20(%arg0: i32) -> (i32, i32) {
    %c0_i32 = arith.constant 0 : i32
    %c0_i32_0 = arith.constant 0 : i32
    %c0_i32_1 = arith.constant 0 : i32
    return %c0_i32, %c0_i32_0 : i32, i32
  }
  func.func @transform_21(%arg0: i32) -> (i32, i32) {
    %c0_i32 = arith.constant 0 : i32
    %c0_i32_0 = arith.constant 0 : i32
    %c0_i32_1 = arith.constant 0 : i32
    return %c0_i32, %c0_i32_0 : i32, i32
  }
  func.func @transform_22(%arg0: i32) -> (i32, i32) {
    %c0_i32 = arith.constant 0 : i32
    %c0_i32_0 = arith.constant 0 : i32
    %c0_i32_1 = arith.constant 0 : i32
    return %c0_i32, %c0_i32_0 : i32, i32
  }
  func.func @transform_23(%arg0: i32) -> (i32, i32) {
    %c0_i32 = arith.constant 0 : i32
    %c0_i32_0 = arith.constant 0 : i32
    %c0_i32_1 = arith.constant 0 : i32
    return %c0_i32, %c0_i32_0 : i32, i32
  }
  func.func @transform_24(%arg0: i32) -> (i32, i32) {
    %c0_i32 = arith.constant 0 : i32
    %c0_i32_0 = arith.constant 0 : i32
    %c0_i32_1 = arith.constant 0 : i32
    return %c0_i32, %c0_i32_0 : i32, i32
  }
  func.func @transform_25(%arg0: i32) -> (i32, i32) {
    %c0_i32 = arith.constant 0 : i32
    %c0_i32_0 = arith.constant 0 : i32
    %c0_i32_1 = arith.constant 0 : i32
    return %c0_i32, %c0_i32_0 : i32, i32
  }
  func.func @transform_26(%arg0: i32) -> (i32, i32) {
    %c0_i32 = arith.constant 0 : i32
    %c0_i32_0 = arith.constant 0 : i32
    %c0_i32_1 = arith.constant 0 : i32
    return %c0_i32, %c0_i32_0 : i32, i32
  }
  func.func @transform_27(%arg0: i32) -> (i32, i32) {
    %c0_i32 = arith.constant 0 : i32
    %c0_i32_0 = arith.constant 0 : i32
    %c0_i32_1 = arith.constant 0 : i32
    return %c0_i32, %c0_i32_0 : i32, i32
  }
  func.func @transform_28(%arg0: i32) -> (i32, i32) {
    %c0_i32 = arith.constant 0 : i32
    %c0_i32_0 = arith.constant 0 : i32
    %c0_i32_1 = arith.constant 0 : i32
    return %c0_i32, %c0_i32_0 : i32, i32
  }
  func.func @transform_29(%arg0: i32) -> (i32, i32) {
    %c0_i32 = arith.constant 0 : i32
    %c0_i32_0 = arith.constant 0 : i32
    %c0_i32_1 = arith.constant 0 : i32
    return %c0_i32, %c0_i32_0 : i32, i32
  }
  func.func @transform_30(%arg0: i32) -> (i32, i32) {
    %c0_i32 = arith.constant 0 : i32
    %c0_i32_0 = arith.constant 0 : i32
    %c0_i32_1 = arith.constant 0 : i32
    return %c0_i32, %c0_i32_0 : i32, i32
  }
  func.func @transform_31(%arg0: i32) -> (i32, i32) {
    %c0_i32 = arith.constant 0 : i32
    %c0_i32_0 = arith.constant 0 : i32
    %c0_i32_1 = arith.constant 0 : i32
    return %c0_i32, %c0_i32_0 : i32, i32
  }
  func.func @transform_32(%arg0: i32) -> (i32, i32) {
    %c0_i32 = arith.constant 0 : i32
    %c0_i32_0 = arith.constant 0 : i32
    %c0_i32_1 = arith.constant 0 : i32
    return %c0_i32, %c0_i32_0 : i32, i32
  }
  func.func @transform_33(%arg0: i32) -> (i32, i32) {
    %c0_i32 = arith.constant 0 : i32
    %c0_i32_0 = arith.constant 0 : i32
    %c0_i32_1 = arith.constant 0 : i32
    return %c0_i32, %c0_i32_0 : i32, i32
  }
  func.func @transform_34(%arg0: i32) -> (i32, i32, i32) {
    %c0_i32 = arith.constant 0 : i32
    %c0_i32_0 = arith.constant 0 : i32
    %c0_i32_1 = arith.constant 0 : i32
    return %arg0, %c0_i32, %c0_i32_0 : i32, i32, i32
  }
  func.func @transform_35(%arg0: i32) -> (i32, i32, i32) {
    %c0_i32 = arith.constant 0 : i32
    %c0_i32_0 = arith.constant 0 : i32
    %c0_i32_1 = arith.constant 0 : i32
    return %arg0, %c0_i32, %c0_i32_0 : i32, i32, i32
  }
}

</mosaic_0001>

<bundles_post_ra>
// kernel: decoder_forward.1
= control target key start
LH: loop header
LB: loop body
LE: loop exit
PB: predicated region body
PF: predicated region fallthrough
CT: control target
= control target key end

     0   :  { %s7309_s6 = smov 1   ;;  %s7310_s10 = smov 2   ;;  %s8577_s0 = inlined_call_operand.smem [shape: u32[36], index: -1, kind: input, shape index: {}] }
   0x1   :  { %s7361_s5 = sld [smem:[%s8577_s0]]   ;;  %s7311_s14 = smov 3  }
   0x2   :  { %s7366_s9 = sld [smem:[%s8577_s0 + %s7309_s6]]   ;;  %s7312_s18 = smov 4  }
   0x3   :  { %s7371_s13 = sld [smem:[%s8577_s0 + %s7310_s10]]   ;;  %s7313_s22 = smov 5  }
   0x4   :  { %s7376_s17 = sld [smem:[%s8577_s0 + %s7311_s14]]   ;;  %s7314_s26 = smov 6  }
   0x5   :  { %s7381_s21 = sld [smem:[%s8577_s0 + %s7312_s18]]   ;;  %s7315_s30 = smov 7  }
   0x6   :  { %s7386_s25 = sld [smem:[%s8577_s0 + %s7313_s22]]   ;;  %s7316_s4 = smov 8  }
   0x7   :  { %8605 = sst [smem:[#allocation8_spill]] %s7361_s5  ;;  %s7317_s10 = smov 9  }
   0x8   :  { %8606 = sst [smem:[#allocation9_spill]] %s7366_s9  ;;  %s7318_s15 = smov 10  }
   0x9   :  { %8607 = sst [smem:[#allocation10_spill]] %s7371_s13  ;;  %s7319_s20 = smov 11  }
   0xa   :  { %8608 = sst [smem:[#allocation11_spill]] %s7376_s17  ;;  %s7321_s1 = smov 13  }
   0xb   :  { %s7391_s29 = sld [smem:[%s8577_s0 + %s7314_s26]]   ;;  %s7320_s26 = smov 12  }
   0xc   :  { %s7396_s3 = sld [smem:[%s8577_s0 + %s7315_s30]]   ;;  %s7322_s7 = smov 14  }
   0xd   :  { %s7401_s8 = sld [smem:[%s8577_s0 + %s7316_s4]]   ;;  %s7324_s22 = smov 16  }
   0xe   :  { %s7406_s14 = sld [smem:[%s8577_s0 + %s7317_s10]]   ;;  %s7325_s28 = smov 17  }
   0xf   :  { %s7411_s19 = sld [smem:[%s8577_s0 + %s7318_s15]]   ;;  %s7323_s15 = smov 15  }
  0x10   :  { %s7416_s24 = sld [smem:[%s8577_s0 + %s7319_s20]]  }
  0x11   :  { %s7421_s30 = sld [smem:[%s8577_s0 + %s7320_s26]]  }
  0x12   :  { %8609 = sst [smem:[#allocation12_spill]] %s7396_s3 }
  0x13   :  { %8610 = sst [smem:[#allocation13_spill]] %s7401_s8 }
  0x14   :  { %8611 = sst [smem:[#allocation14_spill]] %s7406_s14 }
  0x15   :  { %s7426_s6 = sld [smem:[%s8577_s0 + %s7321_s1]]  }
  0x16   :  { %s7431_s12 = sld [smem:[%s8577_s0 + %s7322_s7]]   ;;  %s7326_s7 = smov 18  }
  0x17   :  { %s7436_s20 = sld [smem:[%s8577_s0 + %s7323_s15]]   ;;  %s7327_s15 = smov 19  }
  0x18   :  { %s7441_s27 = sld [smem:[%s8577_s0 + %s7324_s22]]   ;;  %s7328_s22 = smov 20  }
  0x19   :  { %s7446_s4 = sld [smem:[%s8577_s0 + %s7325_s28]]   ;;  %s7329_s28 = smov 21  }
  0x1a   :  { %s7451_s17 = sld [smem:[%s8577_s0 + %s7326_s7]]   ;;  %s7330_s7 = smov 22  }
  0x1b   :  { %8612 = sst [smem:[#allocation15_spill]] %s7426_s6 }
  0x1c   :  { %8613 = sst [smem:[#allocation16_spill]] %s7431_s12 }
  0x1d   :  { %s7456_s6 = sld [smem:[%s8577_s0 + %s7327_s15]]   ;;  %s7331_s15 = smov 23  }
  0x1e   :  { %8614 = sst [smem:[#allocation17_spill]] %s7441_s27 }
  0x1f   :  { %8615 = sst [smem:[#allocation18_spill]] %s7446_s4 }
  0x20   :  { %8616 = sst [smem:[#allocation19_spill]] %s7451_s17 }
  0x21   :  { %s7461_s27 = sld [smem:[%s8577_s0 + %s7328_s22]]   ;;  %s7332_s22 = smov 24  }
  0x22   :  { %s7466_s4 = sld [smem:[%s8577_s0 + %s7329_s28]]   ;;  %s7333_s28 = smov 25  }
  0x23   :  { %8617 = sst [smem:[#allocation20_spill]] %s7456_s6 }
  0x24   :  { %s7471_s17 = sld [smem:[%s8577_s0 + %s7330_s7]]   ;;  %s7334_s7 = smov 26  }
  0x25   :  { %s7476_s6 = sld [smem:[%s8577_s0 + %s7331_s15]]   ;;  %s7335_s15 = smov 27  }
  0x27   :  { %8618 = sst [smem:[#allocation21_spill]] %s7461_s27 }
  0x28   :  { %8619 = sst [smem:[#allocation22_spill]] %s7466_s4 }
  0x29   :  { %s7481_s27 = sld [smem:[%s8577_s0 + %s7332_s22]]   ;;  %s7336_s22 = smov 28  }
  0x2a   :  { %8620 = sst [smem:[#allocation23_spill]] %s7471_s17 }
  0x2b   :  { %8621 = sst [smem:[#allocation24_spill]] %s7476_s6 }
  0x2c   :  { %s7486_s4 = sld [smem:[%s8577_s0 + %s7333_s28]]   ;;  %s7337_s28 = smov 29  }
  0x2d   :  { %s7491_s17 = sld [smem:[%s8577_s0 + %s7334_s7]]   ;;  %s7338_s7 = smov 30  }
  0x2e   :  { %s7496_s6 = sld [smem:[%s8577_s0 + %s7335_s15]]   ;;  %s7339_s15 = smov 31  }
  0x2f   :  { %8622 = sst [smem:[#allocation25_spill]] %s7481_s27 }
  0x30   :  { %s7501_s27 = sld [smem:[%s8577_s0 + %s7336_s22]]   ;;  %s7340_s22 = smov 32  }
  0x32   :  { %8623 = sst [smem:[#allocation26_spill]] %s7486_s4 }
  0x33   :  { %8624 = sst [smem:[#allocation27_spill]] %s7491_s17 }
  0x34   :  { %8625 = sst [smem:[#allocation28_spill]] %s7496_s6 }
  0x35   :  { %s7506_s4 = sld [smem:[%s8577_s0 + %s7337_s28]]   ;;  %s7341_s28 = smov 33  }
  0x36   :  { %8626 = sst [smem:[#allocation29_spill]] %s7501_s27 }
  0x37   :  { %s7511_s17 = sld [smem:[%s8577_s0 + %s7338_s7]]   ;;  %s7342_s7 = smov 34  }
  0x38   :  { %s7516_s6 = sld [smem:[%s8577_s0 + %s7339_s15]]   ;;  %s7343_s15 = smov 35  }
  0x39   :  { %s7521_s27 = sld [smem:[%s8577_s0 + %s7340_s22]]  }
  0x3b   :  { %8627 = sst [smem:[#allocation30_spill]] %s7506_s4 }
  0x3c   :  { %s7526_s4 = sld [smem:[%s8577_s0 + %s7341_s28]]  }
  0x3d   :  { %8628 = sst [smem:[#allocation31_spill]] %s7511_s17 }
  0x3e   :  { %8629 = sst [smem:[#allocation32_spill]] %s7516_s6 }
  0x3f   :  { %s7531_s17 = sld [smem:[%s8577_s0 + %s7342_s7]]  }
  0x40   :  { %s7536_s6 = sld [smem:[%s8577_s0 + %s7343_s15]]  }
  0x42   :  { %8630 = sst [smem:[#allocation33_spill]] %s7526_s4 }
  0x45   :  { %8631 = sst [smem:[#allocation34_spill]] %s7531_s17 }
  0x46   :  { %77 = vsyncpa [#allocation3], 0 }
  0x47   :  { %79 = vsyncpa [#allocation3 + $0x1], 0 }
  0x48   :  { %80 = vsyncpa [#allocation5], 0 }
  0x49   :  { %82 = vsyncpa [#allocation5 + $0x1], 0  ;;  %s7538_s22 = smov 0   ;;  %s7540_s23 = smov 0  }
  0x4a   :  { %s7542_s26 = smov 0   ;;  %s7544_s28 = smov 0  }
  0x4b LB: > { %s8632_s17 = sld [smem:[#allocation34_spill]]  ;;  %s7559_s0 = sadd.s32 4294967295, %s7307_s28   ;;  %s7307_s28 = sphi %s7544_s28, %s8671_s28   ;;  %s7303_s26 = sphi %s7542_s26, %s8670_s26   ;;  %s7299_s23 = sphi %s7540_s23, %s8669_s23   ;;  %s7295_s22 = sphi %s7538_s22, %s8668_s22  }
  0x4c   : > { %s8633_s14 = sld [smem:[#allocation14_spill]]  ;;  %s6078_s1 = sadd.s32 4294967294, %s7307_s28  }
  0x4d   : > { %s8634_s12 = sld [smem:[#allocation16_spill]]  ;;  %s7563_s2 = sadd.s32 1, %s7307_s28  }
  0x4e   : > { %s8635_s8 = sld [smem:[#allocation13_spill]]  ;;  %s829_s7 = sadd.s32 1, %s7303_s26 }
  0x4f   : > { %s826_s10 = ssub.s32 %s7307_s28, %s7563_s2  ;;  %p839_p0 = scmp.ne.s32.totalorder %s7303_s26, %s7299_s23 }
  0x50   : > { %p827_p1 = scmp.eq.s32.totalorder %s826_s10, 0  ;;  %p840_p2 = scmp.eq.s32.totalorder %s7559_s0, 1 }
  0x51   : > { %p845_p3 = scmp.ne.s32.totalorder %s7299_s23, %s7295_s22  ;;  %p846_p4 = scmp.eq.s32.totalorder %s6078_s1, 1 }
  0x52   : > { %s7574_s11 = scalar_select %p827_p1, %s7303_s26, %s829_s7  }
  0x53   : > { %p7576_p5 = por %p840_p2, %p839_p0  ;;  %p7580_p6 = por %p846_p4, %p845_p3 }
  0x54   : > { %8636 = sst [smem:[#allocation35_spill]] %s7574_s11  ;;  %p6081_p7 = scmp.ge.s32.totalorder %s7307_s28, 1 }
  0x55   : > { %p1007_p8 = scmp.lt.s32.totalorder %s7307_s28, 3 }
  0x57   : > { %p1008_p9 = pnand %p6081_p7, %p1007_p8 }
  0x58   : > { %p1110_p10 = scmp.lt.s32.totalorder (!%p1008_p9), %s7559_s0, 1  ;;  %s8639_s5 = sld [smem:[#allocation8_spill]] (!%p1008_p9) }
  0x59   : > { %1011 = sbr.rel (%p1008_p9) target bundleno = 24317 (0x5efd), region = 156  ;;  %s8640_s13 = sld [smem:[#allocation10_spill]] (!%p1008_p9) }
  0x5a   : > { %s8641_s3 = sld [smem:[#allocation12_spill]] (!%p1008_p9) }
  0x5b   : > { %s8642_s9 = sld [smem:[#allocation9_spill]] (!%p1008_p9) }
  0x5c   : > { %s8664_s4 = sld [smem:[#allocation33_spill]] (!%p1008_p9) }
  0x5e   : > { %v1132_v0 = vld [vmem:[%s7381_s21 + $0x18] sm:$0xff]  ;;  %v7344_v2 = vmov 0.0   ;;  %v1131_v3 = vld [vmem:[%s7381_s21 + $0x10] sm:$0xff]  ;;  %s7599_s18 = scalar_select %p1110_p10, %s7559_s0, 1  ;;  %v1130_v5 = vld [vmem:[%s7381_s21 + $0x8] sm:$0xff]  ;;  %vm1145_vm0 = vcmask 261120  }
  0x5f   : > { %v7588_v1 = vld [vmem:[%s7386_s25 + $0x18] sm:$0xff]  ;;  %6414 = vmatprep.subr.mxu0 %v7344_v2  ;;  %6425 = vmatprep.subr.mxu1 %v7344_v2  ;;  %v7595_v4 = vld [vmem:[%s7386_s25 + $0x10] sm:$0xff]  ;;  %v7605_v6 = vld [vmem:[%s7386_s25 + $0x8] sm:$0xff]  ;;  %vm7345_vm1 = vmmov 0   ;;  %vm2062_vm2 = vcmask 1040384   ;;  %vm2064_vm3 = vcmask 1041408  }
  0x60   : > { %6415 = vmatpush3.msra.mxu0 %v1132_v0  ;;  %6426 = vmatpush3.msra.mxu1 %v7588_v1  ;;  %s6084_s1 = sshll.u32 %s7599_s18, 3  ;;  %s6086_s7 = sshll.u32 %s7599_s18, 1  ;;  %v1129_v7 = vld [vmem:[%s7381_s21] sm:$0xff]  ;;  %vm2066_vm4 = vcmask 1042432   ;;  %vm2068_vm5 = vcmask 1043456   ;;  %vm2070_vm6 = vcmask 1044480  }
  0x61   : > { %6416 = vmatprep.subr.mxu0 %v7344_v2  ;;  %6427 = vmatprep.subr.mxu1 %v7344_v2  ;;  %s1113_s10 = scalar_lea.vmem %s8639_s5, %s6084_s1  ;;  %v7618_v8 = vld [vmem:[%s7386_s25] sm:$0xff]  ;;  %s1121_s11 = scalar_lea.vmem %s8640_s13, %s6086_s7  ;;  %vm2072_vm7 = vcmask 1045504   ;;  %vm2074_vm8 = vcmask 1046528   ;;  %vm3352_vm11 = vcmask 64512   ;;  %vm3463_vm12 = vcmask 523264  }
  0x62   : > { %6417 = vmatpush3.msra.mxu0 %v1131_v3  ;;  %6428 = vmatpush3.msra.mxu1 %v7595_v4  ;;  %v1125_v9 = vld [vmem:[%s1113_s10] sm:$0xff]  ;;  %s8588_s7 = smov 96   ;;  %s8586_s10 = smov 32   ;;  %vm5834_vm13 = vcmask 146520   ;;  %vm5822_vm14 = vcmask 89088   ;;  %vm5845_vm15 = vcmask 56320  }
  0x63   : > { %6418 = vmatprep.subr.mxu0 %v7344_v2  ;;  %6429 = vmatprep.subr.mxu1 %v7344_v2  ;;  %v7623_v10 = vld [vmem:[%s1121_s11] sm:$0x3]  ;;  %s8590_s11 = smov 64   ;;  %s8652_s5 = smov 64  }
  0x64   : > { %6419 = vmatpush3.msra.mxu0 %v1130_v5  ;;  %6430 = vmatpush3.msra.mxu1 %v7605_v6  ;;  %v7656_v11 = vld [vmem:[%s8641_s3] sm:$0x1]  ;;  %s8651_s3 = sld [smem:[#allocation21_spill]] }
  0x65   : > { %6420 = vmatprep.subr.mxu0 %v7344_v2  ;;  %6431 = vmatprep.subr.mxu1 %v7344_v2  ;;  %v6087_v17 = vld [vmem:[%s7391_s29] ss:$0 sm:$0xff] }
  0x66   : > { %6421 = vmatpush3.msra.mxu0 %v1129_v7  ;;  %6422 = vmatprep.mubr.msk.f32.mxu0 %vm7345_vm1, %v7344_v2 }
  0x67   : > { %6432 = vmatpush3.msra.mxu1 %v7618_v8  ;;  %6433 = vmatprep.mubr.msk.f32.mxu1 %vm7345_vm1, %v7344_v2 }
  0x68   : > { %6423 = vmatmul.mubr.msk.f32.vlgmr.msra.gmra.mxu0 %vm1145_vm0, %v1125_v9  ;;  %6434 = vmatmul.mubr.msk.f32.vlgmr.msra.gmra.mxu1 %vm1145_vm0, %v7623_v10 }
  0x69   : > { %6436 = vmatprep.subr.mxu0 %v7344_v2  ;;  %6444 = vmatprep.mubr.msk.f32.mxu0 %vm7345_vm1, %v7344_v2 }
  0x6a   : > { %6437 = vmatpush3.msra.mxu0 %v7588_v1  ;;  %6447 = vmatprep.subr.mxu1 %v7344_v2 }
  0x6b   : > { %6438 = vmatprep.subr.mxu0 %v7344_v2  ;;  %6448 = vmatpush3.msra.mxu1 %v7588_v1 }
  0x6c   : > { %6439 = vmatpush3.msra.mxu0 %v7595_v4  ;;  %6449 = vmatprep.subr.mxu1 %v7344_v2 }
  0x6d   : > { %6440 = vmatprep.subr.mxu0 %v7344_v2  ;;  %6450 = vmatpush3.msra.mxu1 %v7595_v4 }
  0x6e   : > { %6441 = vmatpush3.msra.mxu0 %v7605_v6  ;;  %6451 = vmatprep.subr.mxu1 %v7344_v2 }
  0x6f   : > { %6442 = vmatprep.subr.mxu0 %v7344_v2  ;;  %6452 = vmatpush3.msra.mxu1 %v7605_v6 }
  0x70   : > { %6443 = vmatpush3.msra.mxu0 %v7618_v8  ;;  %6453 = vmatprep.subr.mxu1 %v7344_v2 }
  0x71   : > { %6454 = vmatpush3.msra.mxu1 %v7618_v8  ;;  %6455 = vmatprep.mubr.msk.f32.mxu1 %vm7345_vm1, %v7344_v2 }
  0x72   : > { %6458 = vmatprep.subr.mxu0 %v7344_v2  ;;  %6469 = vmatprep.subr.mxu1 %v7344_v2 }
 0x128   : > { %v1215_v12 = vpop.f32.mrf.mxu0  ;;  %v1288_v13 = vpop.f32.mrf.mxu1 }
 0x129   : > { %v1289_v14 = vadd.f32 %v1288_v13, %v7656_v11  ;;  %v7661_v18 = vadd.f32 %v6087_v17, %v1215_v12 }
 0x12a   : > { %v6435_v15 = vpop.f32.mrf.mxu1  ;;  %v6424_v16 = vpop.f32.mrf.mxu0 }
 0x12b   : > { %1300 = vrot.lane.b32.xlu0 %v1289_v14, %s8590_s11  ;;  %v1292_v19 = vadd.f32 %v1289_v14, %v7661_v18 }
 0x12d   : > { %v6090_v20 = vmul.f32 -1.442695, %v1292_v19 }
 0x12f   : > { %7009 = vpow2.f32 %v6090_v20 }
 0x13c   : > { %v7010_v21 = vpop.eup %7009 }
 0x13d   : > { %v1296_v22 = vadd.f32 1.0, %v7010_v21 }
 0x13f   : > { %7011 = vrcp.f32 %v1296_v22 }
 0x14c   : > { %v7012_v23 = vpop.eup %7011 }
 0x14d   : > { %v1310_v30 = vsub.f32 1.0, %v7012_v23 }
 0x19d   : > { %v1301_v24 = vpop.permute.xlu0 %1300 }
 0x19e   : > { %v1303_v25 = vmul.f32 %v7012_v23, %v1301_v24 }
 0x1a0   : > { %1305 = vrot.lane.b32.xlu0 %v1303_v25, %s8590_s11 }
 0x212   : > { %v1306_v26 = vpop.permute.xlu0 %1305 }
 0x213   : > { %v1308_v27 = vadd.f32 %v1306_v26, %v7661_v18 }
 0x215   : > { %7013 = vtanh.f32 %v1308_v27 }
 0x222   : > { %v7014_v28 = vpop.eup %7013 }
 0x223   : > { %1312 = vrot.lane.b32.xlu1 %v7014_v28, %s8588_s7 }
 0x227   : > { %1316 = vrot.lane.b32.xlu1 %v7623_v10, %s8586_s10 }
 0x295   : > { %v1313_v29 = vpop.permute.xlu1 %1312 }
 0x296   : > { %v1315_v32 = vmul.f32 %v1313_v29, %v1310_v30 }
 0x299   : > { %v1317_v31 = vpop.permute.xlu1 %1316 }
 0x29a   : > { %v1319_v33 = vmul.f32 %v7012_v23, %v1317_v31 }
 0x29c   : > { %v7669_v34 = vadd.f32 %v1319_v33, %v1315_v32 }
 0x29e   : > { %1322 = vrot.lane.b32.xlu0 %v7669_v34, %s8588_s7  ;;  %v1422_v51 = vrot.slane %v7669_v34, 7 }
 0x310   : > { %v1323_v35 = vpop.permute.xlu0 %1322 }
 0x311   : > { %6445 = vmatmul.mubr.msk.f32.vlgmr.msra.gmra.mxu0 %vm1145_vm0, %v1323_v35 }
 0x312   : > { %6459 = vmatpush3.msra.mxu0 %v7588_v1  ;;  %6466 = vmatprep.mubr.msk.f32.mxu0 %vm7345_vm1, %v7344_v2 }
 0x313   : > { %6460 = vmatprep.subr.mxu0 %v7344_v2 }
 0x314   : > { %6461 = vmatpush3.msra.mxu0 %v7595_v4 }
 0x315   : > { %6462 = vmatprep.subr.mxu0 %v7344_v2 }
 0x316   : > { %6463 = vmatpush3.msra.mxu0 %v7605_v6 }
 0x317   : > { %6464 = vmatprep.subr.mxu0 %v7344_v2 }
 0x318   : > { %6465 = vmatpush3.msra.mxu0 %v7618_v8 }
 0x319   : > { %6480 = vmatprep.subr.mxu0 %v7344_v2 }
 0x3d1   : > { %v1392_v36 = vpop.f32.mrf.mxu0 }
 0x3d2   : > { %v1393_v37 = vadd.f32 %v1392_v36, %v7656_v11 }
 0x3d3   : > { %v6446_v38 = vpop.f32.mrf.mxu0 }
 0x3d4   : > { %v1397_v39 = vrot.slane %v1393_v37, 7 }
 0x3d6   : > { %1406 = vrot.lane.b32.xlu1 %v1397_v39, %s8590_s11  ;;  %v1399_v40 = vadd.f32 %v1397_v39, %v7661_v18 }
 0x3d8   : > { %v6092_v41 = vmul.f32 -1.442695, %v1399_v40 }
 0x3da   : > { %7015 = vpow2.f32 %v6092_v41 }
 0x3e7   : > { %v7016_v42 = vpop.eup %7015 }
 0x3e8   : > { %v1403_v43 = vadd.f32 1.0, %v7016_v42 }
 0x3ea   : > { %7017 = vrcp.f32 %v1403_v43 }
 0x3f7   : > { %v7018_v44 = vpop.eup %7017 }
 0x3f8   : > { %v1416_v50 = vsub.f32 1.0, %v7018_v44  ;;  %v1424_v53 = vmul.f32 %v7018_v44, %v1422_v51 }
 0x448   : > { %v1407_v45 = vpop.permute.xlu1 %1406 }
 0x449   : > { %v1409_v46 = vmul.f32 %v7018_v44, %v1407_v45 }
 0x44b   : > { %1411 = vrot.lane.b32.xlu0 %v1409_v46, %s8590_s11 }
 0x4bd   : > { %v1412_v47 = vpop.permute.xlu0 %1411 }
 0x4be   : > { %v1414_v48 = vadd.f32 %v1412_v47, %v7661_v18 }
 0x4c0   : > { %7019 = vtanh.f32 %v1414_v48 }
 0x4cd   : > { %v7020_v49 = vpop.eup %7019 }
 0x4ce   : > { %1418 = vrot.lane.b32.xlu1 %v7020_v49, %s8588_s7 }
 0x540   : > { %v1419_v52 = vpop.permute.xlu1 %1418 }
 0x541   : > { %v1421_v54 = vmul.f32 %v1419_v52, %v1416_v50 }
 0x543   : > { %v1425_v55 = vadd.f32 %v1424_v53, %v1421_v54 }
 0x545   : > { %v1427_v56 = vrot.slane %v1425_v55, 1  ;;  %v1528_v16 = vrot.slane %v1425_v55, 7  ;;  %v2063_v22 = vsel %vm2062_vm2, %v7669_v34, %v1425_v55 }
 0x547   : > { %1428 = vrot.lane.b32.xlu0 %v1427_v56, %s8588_s7 }
 0x5b9   : > { %v1429_v57 = vpop.permute.xlu0 %1428 }
 0x5ba   : > { %6456 = vmatmul.mubr.msk.f32.vlgmr.msra.gmra.mxu1 %vm1145_vm0, %v1429_v57 }
 0x5bb   : > { %6470 = vmatpush3.msra.mxu1 %v7588_v1  ;;  %6477 = vmatprep.mubr.msk.f32.mxu1 %vm7345_vm1, %v7344_v2 }
 0x5bc   : > { %6471 = vmatprep.subr.mxu1 %v7344_v2 }
 0x5bd   : > { %6472 = vmatpush3.msra.mxu1 %v7595_v4 }
 0x5be   : > { %6473 = vmatprep.subr.mxu1 %v7344_v2 }
 0x5bf   : > { %6474 = vmatpush3.msra.mxu1 %v7605_v6 }
 0x5c0   : > { %6475 = vmatprep.subr.mxu1 %v7344_v2 }
 0x5c1   : > { %6476 = vmatpush3.msra.mxu1 %v7618_v8 }
 0x5c2   : > { %6491 = vmatprep.subr.mxu1 %v7344_v2 }
 0x67a   : > { %v1498_v58 = vpop.f32.mrf.mxu1 }
 0x67b   : > { %v1499_v59 = vadd.f32 %v1498_v58, %v7656_v11 }
 0x67c   : > { %v6457_v60 = vpop.f32.mrf.mxu1 }
 0x67d   : > { %v1503_v61 = vrot.slane %v1499_v59, 6 }
 0x67f   : > { %1512 = vrot.lane.b32.xlu1 %v1503_v61, %s8590_s11  ;;  %v1505_v62 = vadd.f32 %v1503_v61, %v7661_v18 }
 0x681   : > { %v6094_v63 = vmul.f32 -1.442695, %v1505_v62 }
 0x683   : > { %7021 = vpow2.f32 %v6094_v63 }
 0x690   : > { %v7022_v0 = vpop.eup %7021 }
 0x691   : > { %v1509_v3 = vadd.f32 1.0, %v7022_v0 }
 0x693   : > { %7023 = vrcp.f32 %v1509_v3 }
 0x6a0   : > { %v7024_v5 = vpop.eup %7023 }
 0x6a1   : > { %v1522_v15 = vsub.f32 1.0, %v7024_v5  ;;  %v1530_v19 = vmul.f32 %v7024_v5, %v1528_v16 }
 0x6f1   : > { %v1513_v7 = vpop.permute.xlu1 %1512 }
 0x6f2   : > { %v1515_v9 = vmul.f32 %v7024_v5, %v1513_v7 }
 0x6f4   : > { %1517 = vrot.lane.b32.xlu0 %v1515_v9, %s8590_s11 }
 0x766   : > { %v1518_v12 = vpop.permute.xlu0 %1517 }
 0x767   : > { %v1520_v13 = vadd.f32 %v1518_v12, %v7661_v18 }
 0x769   : > { %7025 = vtanh.f32 %v1520_v13 }
 0x776   : > { %v7026_v14 = vpop.eup %7025 }
 0x777   : > { %1524 = vrot.lane.b32.xlu1 %v7026_v14, %s8588_s7 }
 0x7e9   : > { %v1525_v17 = vpop.permute.xlu1 %1524 }
 0x7ea   : > { %v1527_v20 = vmul.f32 %v1525_v17, %v1522_v15 }
 0x7ec   : > { %v1531_v21 = vadd.f32 %v1530_v19, %v1527_v20 }
 0x7ee   : > { %v2065_v23 = vsel %vm2064_vm3, %v2063_v22, %v1531_v21  ;;  %v1533_v24 = vrot.slane %v1531_v21, 2  ;;  %v1634_v41 = vrot.slane %v1531_v21, 7 }
 0x7f0   : > { %1534 = vrot.lane.b32.xlu0 %v1533_v24, %s8588_s7 }
 0x862   : > { %v1535_v25 = vpop.permute.xlu0 %1534 }
 0x863   : > { %6467 = vmatmul.mubr.msk.f32.vlgmr.msra.gmra.mxu0 %vm1145_vm0, %v1535_v25 }
 0x864   : > { %6481 = vmatpush3.msra.mxu0 %v7588_v1  ;;  %6488 = vmatprep.mubr.msk.f32.mxu0 %vm7345_vm1, %v7344_v2 }
 0x865   : > { %6482 = vmatprep.subr.mxu0 %v7344_v2 }
 0x866   : > { %6483 = vmatpush3.msra.mxu0 %v7595_v4 }
 0x867   : > { %6484 = vmatprep.subr.mxu0 %v7344_v2 }
 0x868   : > { %6485 = vmatpush3.msra.mxu0 %v7605_v6 }
 0x869   : > { %6486 = vmatprep.subr.mxu0 %v7344_v2 }
 0x86a   : > { %6487 = vmatpush3.msra.mxu0 %v7618_v8 }
 0x86b   : > { %6502 = vmatprep.subr.mxu0 %v7344_v2 }
 0x923   : > { %v1604_v26 = vpop.f32.mrf.mxu0 }
 0x924   : > { %v1605_v27 = vadd.f32 %v1604_v26, %v7656_v11 }
 0x925   : > { %v6468_v28 = vpop.f32.mrf.mxu0 }
 0x926   : > { %v1609_v29 = vrot.slane %v1605_v27, 5 }
 0x928   : > { %1618 = vrot.lane.b32.xlu1 %v1609_v29, %s8590_s11  ;;  %v1611_v30 = vadd.f32 %v1609_v29, %v7661_v18 }
 0x92a   : > { %v6096_v31 = vmul.f32 -1.442695, %v1611_v30 }
 0x92c   : > { %7027 = vpow2.f32 %v6096_v31 }
 0x939   : > { %v7028_v32 = vpop.eup %7027 }
 0x93a   : > { %v1615_v33 = vadd.f32 1.0, %v7028_v32 }
 0x93c   : > { %7029 = vrcp.f32 %v1615_v33 }
 0x949   : > { %v7030_v34 = vpop.eup %7029 }
 0x94a   : > { %v1628_v40 = vsub.f32 1.0, %v7030_v34  ;;  %v1636_v43 = vmul.f32 %v7030_v34, %v1634_v41 }
 0x99a   : > { %v1619_v35 = vpop.permute.xlu1 %1618 }
 0x99b   : > { %v1621_v36 = vmul.f32 %v7030_v34, %v1619_v35 }
 0x99d   : > { %1623 = vrot.lane.b32.xlu0 %v1621_v36, %s8590_s11 }
 0xa0f   : > { %v1624_v37 = vpop.permute.xlu0 %1623 }
 0xa10   : > { %v1626_v38 = vadd.f32 %v1624_v37, %v7661_v18 }
 0xa12   : > { %7031 = vtanh.f32 %v1626_v38 }
 0xa1f   : > { %v7032_v39 = vpop.eup %7031 }
 0xa20   : > { %1630 = vrot.lane.b32.xlu1 %v7032_v39, %s8588_s7 }
 0xa92   : > { %v1631_v42 = vpop.permute.xlu1 %1630 }
 0xa93   : > { %v1633_v44 = vmul.f32 %v1631_v42, %v1628_v40 }
 0xa95   : > { %v1637_v45 = vadd.f32 %v1636_v43, %v1633_v44 }
 0xa97   : > { %v2067_v46 = vsel %vm2066_vm4, %v2065_v23, %v1637_v45  ;;  %v1639_v47 = vrot.slane %v1637_v45, 3  ;;  %v1740_v0 = vrot.slane %v1637_v45, 7 }
 0xa99   : > { %1640 = vrot.lane.b32.xlu0 %v1639_v47, %s8588_s7 }
 0xb0b   : > { %v1641_v48 = vpop.permute.xlu0 %1640 }
 0xb0c   : > { %6478 = vmatmul.mubr.msk.f32.vlgmr.msra.gmra.mxu1 %vm1145_vm0, %v1641_v48 }
 0xb0d   : > { %6492 = vmatpush3.msra.mxu1 %v7588_v1  ;;  %6499 = vmatprep.mubr.msk.f32.mxu1 %vm7345_vm1, %v7344_v2 }
 0xb0e   : > { %6493 = vmatprep.subr.mxu1 %v7344_v2 }
 0xb0f   : > { %6494 = vmatpush3.msra.mxu1 %v7595_v4 }
 0xb10   : > { %6495 = vmatprep.subr.mxu1 %v7344_v2 }
 0xb11   : > { %6496 = vmatpush3.msra.mxu1 %v7605_v6 }
 0xb12   : > { %6497 = vmatprep.subr.mxu1 %v7344_v2 }
 0xb13   : > { %6498 = vmatpush3.msra.mxu1 %v7618_v8 }
 0xb14   : > { %6513 = vmatprep.subr.mxu1 %v7344_v2 }
 0xbcc   : > { %v1710_v49 = vpop.f32.mrf.mxu1 }
 0xbcd   : > { %v1711_v50 = vadd.f32 %v1710_v49, %v7656_v11 }
 0xbce   : > { %v6479_v51 = vpop.f32.mrf.mxu1 }
 0xbcf   : > { %v1715_v52 = vrot.slane %v1711_v50, 4 }
 0xbd1   : > { %1724 = vrot.lane.b32.xlu1 %v1715_v52, %s8590_s11  ;;  %v1717_v53 = vadd.f32 %v1715_v52, %v7661_v18 }
 0xbd3   : > { %v6098_v54 = vmul.f32 -1.442695, %v1717_v53 }
 0xbd5   : > { %7033 = vpow2.f32 %v6098_v54 }
 0xbe2   : > { %v7034_v55 = vpop.eup %7033 }
 0xbe3   : > { %v1721_v56 = vadd.f32 1.0, %v7034_v55 }
 0xbe5   : > { %7035 = vrcp.f32 %v1721_v56 }
 0xbf2   : > { %v7036_v57 = vpop.eup %7035 }
 0xbf3   : > { %v1734_v63 = vsub.f32 1.0, %v7036_v57  ;;  %v1742_v5 = vmul.f32 %v7036_v57, %v1740_v0 }
 0xc43   : > { %v1725_v58 = vpop.permute.xlu1 %1724 }
 0xc44   : > { %v1727_v59 = vmul.f32 %v7036_v57, %v1725_v58 }
 0xc46   : > { %1729 = vrot.lane.b32.xlu0 %v1727_v59, %s8590_s11 }
 0xcb8   : > { %v1730_v60 = vpop.permute.xlu0 %1729 }
 0xcb9   : > { %v1732_v61 = vadd.f32 %v1730_v60, %v7661_v18 }
 0xcbb   : > { %7037 = vtanh.f32 %v1732_v61 }
 0xcc8   : > { %v7038_v62 = vpop.eup %7037 }
 0xcc9   : > { %1736 = vrot.lane.b32.xlu1 %v7038_v62, %s8588_s7 }
 0xd3b   : > { %v1737_v3 = vpop.permute.xlu1 %1736 }
 0xd3c   : > { %v1739_v7 = vmul.f32 %v1737_v3, %v1734_v63 }
 0xd3e   : > { %v1743_v9 = vadd.f32 %v1742_v5, %v1739_v7 }
 0xd40   : > { %v2069_v12 = vsel %vm2068_vm5, %v2067_v46, %v1743_v9  ;;  %v1745_v13 = vrot.slane %v1743_v9, 4  ;;  %v1846_v27 = vrot.slane %v1743_v9, 7 }
 0xd42   : > { %1746 = vrot.lane.b32.xlu0 %v1745_v13, %s8588_s7  ;;  %v7796_v13 = vld [vmem:[%s8633_s14 + $0x18] sm:$0xff] }
 0xdb4   : > { %v1747_v14 = vpop.permute.xlu0 %1746 }
 0xdb5   : > { %6489 = vmatmul.mubr.msk.f32.vlgmr.msra.gmra.mxu0 %vm1145_vm0, %v1747_v14  ;;  %v7799_v14 = vld [vmem:[%s8633_s14 + $0x10] sm:$0xff] }
 0xdb6   : > { %6503 = vmatpush3.msra.mxu0 %v7588_v1  ;;  %6510 = vmatprep.mubr.msk.f32.mxu0 %vm7345_vm1, %v7344_v2 }
 0xdb7   : > { %6504 = vmatprep.subr.mxu0 %v7344_v2 }
 0xdb8   : > { %6505 = vmatpush3.msra.mxu0 %v7595_v4 }
 0xdb9   : > { %6506 = vmatprep.subr.mxu0 %v7344_v2 }
 0xdba   : > { %6507 = vmatpush3.msra.mxu0 %v7605_v6 }
 0xdbb   : > { %6508 = vmatprep.subr.mxu0 %v7344_v2 }
 0xdbc   : > { %6509 = vmatpush3.msra.mxu0 %v7618_v8 }
 0xdbd   : > { %6524 = vmatprep.subr.mxu0 %v7344_v2 }
 0xe75   : > { %v1816_v15 = vpop.f32.mrf.mxu0 }
 0xe76   : > { %v1817_v1 = vadd.f32 %v1816_v15, %v7656_v11  ;;  %v2079_v15 = vld [vmem:[%s8635_s8 + $0x18] sm:$0xff] }
 0xe77   : > { %v6490_v16 = vpop.f32.mrf.mxu0 }
 0xe78   : > { %v1821_v17 = vrot.slane %v1817_v1, 3  ;;  %v2078_v1 = vld [vmem:[%s8635_s8 + $0x10] sm:$0xff]  ;;  %v7806_v16 = vld [vmem:[%s8633_s14 + $0x8] sm:$0xff] }
 0xe7a   : > { %1830 = vrot.lane.b32.xlu1 %v1821_v17, %s8590_s11  ;;  %v1823_v19 = vadd.f32 %v1821_v17, %v7661_v18  ;;  %v2167_v17 = vrot.slane %v7623_v10, 1 }
 0xe7c   : > { %v6100_v4 = vmul.f32 -1.442695, %v1823_v19  ;;  %v7814_v19 = vld [vmem:[%s8633_s14] sm:$0xff] }
 0xe7e   : > { %7039 = vpow2.f32 %v6100_v4  ;;  %v2076_v4 = vld [vmem:[%s8635_s8] sm:$0xff] }
 0xe8b   : > { %v7040_v20 = vpop.eup %7039 }
 0xe8c   : > { %v1827_v21 = vadd.f32 1.0, %v7040_v20 }
 0xe8e   : > { %7041 = vrcp.f32 %v1827_v21 }
 0xe9b   : > { %v7042_v6 = vpop.eup %7041 }
 0xe9c   : > { %v1840_v26 = vsub.f32 1.0, %v7042_v6  ;;  %v1848_v29 = vmul.f32 %v7042_v6, %v1846_v27 }
 0xeec   : > { %v1831_v22 = vpop.permute.xlu1 %1830 }
 0xeed   : > { %v1833_v23 = vmul.f32 %v7042_v6, %v1831_v22 }
 0xeef   : > { %1835 = vrot.lane.b32.xlu0 %v1833_v23, %s8590_s11 }
 0xf61   : > { %v1836_v8 = vpop.permute.xlu0 %1835 }
 0xf62   : > { %v1838_v24 = vadd.f32 %v1836_v8, %v7661_v18 }
 0xf64   : > { %7043 = vtanh.f32 %v1838_v24 }
 0xf71   : > { %v7044_v25 = vpop.eup %7043 }
 0xf72   : > { %1842 = vrot.lane.b32.xlu1 %v7044_v25, %s8588_s7 }
 0xfe4   : > { %v1843_v28 = vpop.permute.xlu1 %1842 }
 0xfe5   : > { %v1845_v30 = vmul.f32 %v1843_v28, %v1840_v26  ;;  %v7843_v26 = vld [vmem:[%s7416_s24] sm:$0x1] }
 0xfe7   : > { %v1849_v31 = vadd.f32 %v1848_v29, %v1845_v30 }
 0xfe9   : > { %v1851_v32 = vrot.slane %v1849_v31, 5  ;;  %v2071_v33 = vsel %vm2070_vm6, %v2069_v12, %v1849_v31  ;;  %v1952_v50 = vrot.slane %v1849_v31, 7  ;;  %v6105_v31 = vld [vmem:[%s7411_s19] ss:$0 sm:$0xff] }
 0xfeb   : > { %1852 = vrot.lane.b32.xlu0 %v1851_v32, %s8588_s7 }
0x105d   : > { %v1853_v34 = vpop.permute.xlu0 %1852 }
0x105e   : > { %6500 = vmatmul.mubr.msk.f32.vlgmr.msra.gmra.mxu1 %vm1145_vm0, %v1853_v34 }
0x105f   : > { %6521 = vmatprep.mubr.msk.f32.mxu1 %vm7345_vm1, %v7344_v2  ;;  %6514 = vmatpush3.msra.mxu1 %v2079_v15 }
0x1060   : > { %6515 = vmatprep.subr.mxu1 %v7344_v2 }
0x1061   : > { %6516 = vmatpush3.msra.mxu1 %v2078_v1 }
0x1062   : > { %6517 = vmatprep.subr.mxu1 %v7344_v2 }
0x111e   : > { %v1922_v35 = vpop.f32.mrf.mxu1 }
0x111f   : > { %v1923_v36 = vadd.f32 %v1922_v35, %v7656_v11 }
0x1120   : > { %v6501_v37 = vpop.f32.mrf.mxu1 }
0x1121   : > { %v1927_v38 = vrot.slane %v1923_v36, 2 }
0x1123   : > { %1936 = vrot.lane.b32.xlu1 %v1927_v38, %s8590_s11  ;;  %v1929_v39 = vadd.f32 %v1927_v38, %v7661_v18 }
0x1125   : > { %v6102_v40 = vmul.f32 -1.442695, %v1929_v39 }
0x1127   : > { %7045 = vpow2.f32 %v6102_v40 }
0x1134   : > { %v7046_v41 = vpop.eup %7045 }
0x1135   : > { %v1933_v42 = vadd.f32 1.0, %v7046_v41 }
0x1137   : > { %7047 = vrcp.f32 %v1933_v42 }
0x1144   : > { %v7048_v43 = vpop.eup %7047 }
0x1145   : > { %v1946_v49 = vsub.f32 1.0, %v7048_v43  ;;  %v1954_v52 = vmul.f32 %v7048_v43, %v1952_v50 }
0x1195   : > { %v1937_v44 = vpop.permute.xlu1 %1936 }
0x1196   : > { %v1939_v45 = vmul.f32 %v7048_v43, %v1937_v44 }
0x1198   : > { %1941 = vrot.lane.b32.xlu0 %v1939_v45, %s8590_s11 }
0x120a   : > { %v1942_v46 = vpop.permute.xlu0 %1941 }
0x120b   : > { %v1944_v47 = vadd.f32 %v1942_v46, %v7661_v18 }
0x120d   : > { %7049 = vtanh.f32 %v1944_v47 }
0x121a   : > { %v7050_v48 = vpop.eup %7049 }
0x121b   : > { %1948 = vrot.lane.b32.xlu1 %v7050_v48, %s8588_s7 }
0x128d   : > { %v1949_v51 = vpop.permute.xlu1 %1948 }
0x128e   : > { %v1951_v53 = vmul.f32 %v1949_v51, %v1946_v49 }
0x1290   : > { %v7779_v54 = vadd.f32 %v1954_v52, %v1951_v53 }
0x1292   : > { %v1957_v55 = vrot.slane %v7779_v54, 6  ;;  %v7784_v56 = vsel %vm2072_vm7, %v2071_v33, %v7779_v54  ;;  %v2058_v6 = vrot.slane %v7779_v54, 7 }
0x1294   : > { %1958 = vrot.lane.b32.xlu0 %v1957_v55, %s8588_s7 }
0x1306   : > { %v1959_v57 = vpop.permute.xlu0 %1958 }
0x1307   : > { %6511 = vmatmul.mubr.msk.f32.vlgmr.msra.gmra.mxu0 %vm1145_vm0, %v1959_v57 }
0x1308   : > { %6532 = vmatprep.mubr.msk.f32.mxu0 %vm7345_vm1, %v7344_v2  ;;  %6525 = vmatpush3.msra.mxu0 %v7796_v13 }
0x1309   : > { %6526 = vmatprep.subr.mxu0 %v7344_v2 }
0x130a   : > { %6527 = vmatpush3.msra.mxu0 %v7799_v14 }
0x130b   : > { %6528 = vmatprep.subr.mxu0 %v7344_v2 }
0x130c   : > { %6529 = vmatpush3.msra.mxu0 %v7806_v16 }
0x130d   : > { %6530 = vmatprep.subr.mxu0 %v7344_v2 }
0x130e   : > { %6531 = vmatpush3.msra.mxu0 %v7814_v19 }
0x130f   : > { %6533 = vmatmul.mubr.msk.f32.vlgmr.msra.gmra.mxu0 %vm1145_vm0, %v2167_v17  ;;  %6546 = vmatprep.subr.mxu0 %v7344_v2 }
0x1310   : > { %6547 = vmatpush3.msra.mxu0 %v7796_v13  ;;  %6554 = vmatprep.mubr.msk.f32.mxu0 %vm7345_vm1, %v7344_v2 }
0x1311   : > { %6548 = vmatprep.subr.mxu0 %v7344_v2 }
0x1312   : > { %6549 = vmatpush3.msra.mxu0 %v7799_v14 }
0x1313   : > { %6550 = vmatprep.subr.mxu0 %v7344_v2 }
0x1314   : > { %6551 = vmatpush3.msra.mxu0 %v7806_v16 }
0x1315   : > { %6552 = vmatprep.subr.mxu0 %v7344_v2 }
0x1316   : > { %6553 = vmatpush3.msra.mxu0 %v7814_v19 }
0x1317   : > { %6568 = vmatprep.subr.mxu0 %v7344_v2 }
0x13c7   : > { %v2028_v58 = vpop.f32.mrf.mxu0 }
0x13c8   : > { %v2029_v59 = vadd.f32 %v2028_v58, %v7656_v11 }
0x13c9   : > { %v6512_v60 = vpop.f32.mrf.mxu0 }
0x13ca   : > { %v2033_v61 = vrot.slane %v2029_v59, 1 }
0x13cc   : > { %2042 = vrot.lane.b32.xlu1 %v2033_v61, %s8590_s11  ;;  %v2035_v62 = vadd.f32 %v2033_v61, %v7661_v18 }
0x13ce   : > { %v6104_v63 = vmul.f32 -1.442695, %v2035_v62 }
0x13cf   : > { %v2236_v27 = vpop.f32.mrf.mxu0 }
0x13d0   : > { %7051 = vpow2.f32 %v6104_v63  ;;  %v2237_v28 = vadd.f32 %v2236_v27, %v7843_v26 }
0x13d1   : > { %v6534_v29 = vpop.f32.mrf.mxu0 }
0x13dd   : > { %v7052_v0 = vpop.eup %7051 }
0x13de   : > { %v2039_v3 = vadd.f32 1.0, %v7052_v0 }
0x13e0   : > { %7053 = vrcp.f32 %v2039_v3 }
0x13ed   : > { %v7054_v5 = vpop.eup %7053 }
0x13ee   : > { %v2052_v21 = vsub.f32 1.0, %v7054_v5  ;;  %v2060_v23 = vmul.f32 %v7054_v5, %v2058_v6 }
0x143e   : > { %v2043_v7 = vpop.permute.xlu1 %2042 }
0x143f   : > { %v2045_v11 = vmul.f32 %v7054_v5, %v2043_v7 }
0x1441   : > { %2047 = vrot.lane.b32.xlu0 %v2045_v11, %s8590_s11 }
0x14b3   : > { %v2048_v9 = vpop.permute.xlu0 %2047 }
0x14b4   : > { %v2050_v12 = vadd.f32 %v2048_v9, %v7661_v18  ;;  %v2077_v18 = vld [vmem:[%s8635_s8 + $0x8] sm:$0xff]  ;;  %s8656_s8 = sld [smem:[#allocation26_spill]] }
0x14b5   : > { %6518 = vmatpush3.msra.mxu1 %v2077_v18 }
0x14b6   : > { %7055 = vtanh.f32 %v2050_v12  ;;  %6519 = vmatprep.subr.mxu1 %v7344_v2 }
0x14b7   : > { %6520 = vmatpush3.msra.mxu1 %v2076_v4 }
0x14b8   : > { %6535 = vmatprep.subr.mxu1 %v7344_v2 }
0x14c3   : > { %v7056_v20 = vpop.eup %7055 }
0x14c4   : > { %2054 = vrot.lane.b32.xlu1 %v7056_v20, %s8588_s7 }
0x14c8   : > { %2248 = vrot.lane.b32.xlu1 %v2237_v28, %s8590_s11 }
0x1536   : > { %v2055_v22 = vpop.permute.xlu1 %2054 }
0x1537   : > { %v2057_v8 = vmul.f32 %v2055_v22, %v2052_v21 }
0x1539   : > { %v2061_v24 = vadd.f32 %v2060_v23, %v2057_v8 }
0x153a   : > { %v2249_v39 = vpop.permute.xlu1 %2248 }
0x153b   : > { %v2075_v25 = vsel %vm2074_vm8, %v7784_v56, %v2061_v24 }
0x153c   : > { %2093 = vrot.lane.b32.xlu0 %v2075_v25, %s8588_s7 }
0x15ae   : > { %v2094_v30 = vpop.permute.xlu0 %2093 }
0x15af   : > { %6522 = vmatmul.mubr.msk.f32.vlgmr.msra.gmra.mxu1 %vm1145_vm0, %v2094_v30 }
0x15b0   : > { %6536 = vmatpush3.msra.mxu1 %v7796_v13  ;;  %6543 = vmatprep.mubr.msk.f32.mxu1 %vm7345_vm1, %v7344_v2 }
0x15b1   : > { %6537 = vmatprep.subr.mxu1 %v7344_v2 }
0x15b2   : > { %6538 = vmatpush3.msra.mxu1 %v7799_v14 }
0x15b3   : > { %6539 = vmatprep.subr.mxu1 %v7344_v2 }
0x15b4   : > { %6540 = vmatpush3.msra.mxu1 %v7806_v16 }
0x15b5   : > { %6541 = vmatprep.subr.mxu1 %v7344_v2 }
0x15b6   : > { %6542 = vmatpush3.msra.mxu1 %v7814_v19 }
0x15b7   : > { %6557 = vmatprep.subr.mxu1 %v7344_v2 }
0x166f   : > { %v2163_v32 = vpop.f32.mrf.mxu1 }
0x1670   : > { %v7859_v33 = vadd.f32 %v6105_v31, %v2163_v32 }
0x1671   : > { %v6523_v34 = vpop.f32.mrf.mxu1 }
0x1672   : > { %v2240_v35 = vadd.f32 %v2237_v28, %v7859_v33 }
0x1674   : > { %v6108_v36 = vmul.f32 -1.442695, %v2240_v35 }
0x1676   : > { %7057 = vpow2.f32 %v6108_v36 }
0x1683   : > { %v7058_v37 = vpop.eup %7057 }
0x1684   : > { %v2244_v38 = vadd.f32 1.0, %v7058_v37 }
0x1686   : > { %7059 = vrcp.f32 %v2244_v38 }
0x1693   : > { %v7060_v40 = vpop.eup %7059 }
0x1694   : > { %v2251_v41 = vmul.f32 %v7060_v40, %v2249_v39  ;;  %v2258_v46 = vsub.f32 1.0, %v7060_v40 }
0x1696   : > { %2253 = vrot.lane.b32.xlu0 %v2251_v41, %s8590_s11 }
0x169a   : > { %2264 = vrot.lane.b32.xlu0 %v2167_v17, %s8586_s10  ;;  %s1117_s10 = scalar_lea.vmem %s8642_s9, %s6084_s1  ;;  %s8643_s1 = sld [smem:[#allocation15_spill]] }
0x169b   : > { %s8658_s9 = sld [smem:[#allocation27_spill]] }
0x1708   : > { %v2254_v42 = vpop.permute.xlu0 %2253 }
0x1709   : > { %v2256_v43 = vadd.f32 %v2254_v42, %v7859_v33 }
0x170b   : > { %7061 = vtanh.f32 %v2256_v43 }
0x170c   : > { %v2265_v45 = vpop.permute.xlu0 %2264 }
0x170d   : > { %v2267_v48 = vmul.f32 %v7060_v40, %v2265_v45 }
0x1718   : > { %v7062_v44 = vpop.eup %7061 }
0x1719   : > { %2260 = vrot.lane.b32.xlu1 %v7062_v44, %s8588_s7 }
0x178b   : > { %v2261_v47 = vpop.permute.xlu1 %2260 }
0x178c   : > { %v2263_v49 = vmul.f32 %v2261_v47, %v2258_v46 }
0x178e   : > { %v7868_v50 = vadd.f32 %v2267_v48, %v2263_v49 }
0x1790   : > { %2270 = vrot.lane.b32.xlu1 %v7868_v50, %s8588_s7  ;;  %v2370_v5 = vrot.slane %v7868_v50, 7 }
0x1802   : > { %v2271_v51 = vpop.permute.xlu1 %2270 }
0x1803   : > { %6544 = vmatmul.mubr.msk.f32.vlgmr.msra.gmra.mxu1 %vm1145_vm0, %v2271_v51 }
0x1804   : > { %6558 = vmatpush3.msra.mxu1 %v7796_v13  ;;  %6565 = vmatprep.mubr.msk.f32.mxu1 %vm7345_vm1, %v7344_v2 }
0x1805   : > { %6559 = vmatprep.subr.mxu1 %v7344_v2 }
0x1806   : > { %6560 = vmatpush3.msra.mxu1 %v7799_v14 }
0x1807   : > { %6561 = vmatprep.subr.mxu1 %v7344_v2 }
0x1808   : > { %6562 = vmatpush3.msra.mxu1 %v7806_v16 }
0x1809   : > { %6563 = vmatprep.subr.mxu1 %v7344_v2 }
0x180a   : > { %6564 = vmatpush3.msra.mxu1 %v7814_v19 }
0x180b   : > { %6579 = vmatprep.subr.mxu1 %v7344_v2 }
0x18c3   : > { %v2340_v10 = vpop.f32.mrf.mxu1 }
0x18c4   : > { %v2341_v52 = vadd.f32 %v2340_v10, %v7843_v26 }
0x18c5   : > { %v6545_v53 = vpop.f32.mrf.mxu1 }
0x18c6   : > { %v2345_v54 = vrot.slane %v2341_v52, 7 }
0x18c8   : > { %2354 = vrot.lane.b32.xlu0 %v2345_v54, %s8590_s11  ;;  %v2347_v55 = vadd.f32 %v2345_v54, %v7859_v33 }
0x18ca   : > { %v6110_v56 = vmul.f32 -1.442695, %v2347_v55 }
0x18cc   : > { %7063 = vpow2.f32 %v6110_v56 }
0x18d9   : > { %v7064_v57 = vpop.eup %7063 }
0x18da   : > { %v2351_v58 = vadd.f32 1.0, %v7064_v57 }
0x18dc   : > { %7065 = vrcp.f32 %v2351_v58 }
0x18e9   : > { %v7066_v59 = vpop.eup %7065 }
0x18ea   : > { %v2364_v3 = vsub.f32 1.0, %v7066_v59  ;;  %v2372_v9 = vmul.f32 %v7066_v59, %v2370_v5 }
0x193a   : > { %v2355_v60 = vpop.permute.xlu0 %2354 }
0x193b   : > { %v2357_v61 = vmul.f32 %v7066_v59, %v2355_v60 }
0x193d   : > { %2359 = vrot.lane.b32.xlu1 %v2357_v61, %s8590_s11 }
0x19af   : > { %v2360_v62 = vpop.permute.xlu1 %2359 }
0x19b0   : > { %v2362_v63 = vadd.f32 %v2360_v62, %v7859_v33 }
0x19b2   : > { %7067 = vtanh.f32 %v2362_v63 }
0x19bf   : > { %v7068_v0 = vpop.eup %7067 }
0x19c0   : > { %2366 = vrot.lane.b32.xlu0 %v7068_v0, %s8588_s7 }
0x1a32   : > { %v2367_v7 = vpop.permute.xlu0 %2366 }
0x1a33   : > { %v2369_v11 = vmul.f32 %v2367_v7, %v2364_v3 }
0x1a35   : > { %v2373_v12 = vadd.f32 %v2372_v9, %v2369_v11 }
0x1a37   : > { %v2375_v15 = vrot.slane %v2373_v12, 1  ;;  %v2476_v31 = vrot.slane %v2373_v12, 7  ;;  %v3010_v37 = vsel %vm2062_vm2, %v7868_v50, %v2373_v12 }
0x1a39   : > { %2376 = vrot.lane.b32.xlu1 %v2375_v15, %s8588_s7 }
0x1aab   : > { %v2377_v1 = vpop.permute.xlu1 %2376 }
0x1aac   : > { %6555 = vmatmul.mubr.msk.f32.vlgmr.msra.gmra.mxu0 %vm1145_vm0, %v2377_v1 }
0x1aad   : > { %6569 = vmatpush3.msra.mxu0 %v7796_v13  ;;  %6576 = vmatprep.mubr.msk.f32.mxu0 %vm7345_vm1, %v7344_v2 }
0x1aae   : > { %6570 = vmatprep.subr.mxu0 %v7344_v2 }
0x1aaf   : > { %6571 = vmatpush3.msra.mxu0 %v7799_v14 }
0x1ab0   : > { %6572 = vmatprep.subr.mxu0 %v7344_v2 }
0x1ab1   : > { %6573 = vmatpush3.msra.mxu0 %v7806_v16 }
0x1ab2   : > { %6574 = vmatprep.subr.mxu0 %v7344_v2 }
0x1ab3   : > { %6575 = vmatpush3.msra.mxu0 %v7814_v19 }
0x1ab4   : > { %6590 = vmatprep.subr.mxu0 %v7344_v2 }
0x1b6c   : > { %v2446_v18 = vpop.f32.mrf.mxu0 }
0x1b6d   : > { %v2447_v17 = vadd.f32 %v2446_v18, %v7843_v26 }
0x1b6e   : > { %v6556_v4 = vpop.f32.mrf.mxu0 }
0x1b6f   : > { %v2451_v20 = vrot.slane %v2447_v17, 6 }
0x1b71   : > { %2460 = vrot.lane.b32.xlu0 %v2451_v20, %s8590_s11  ;;  %v2453_v21 = vadd.f32 %v2451_v20, %v7859_v33 }
0x1b73   : > { %v6112_v6 = vmul.f32 -1.442695, %v2453_v21 }
0x1b75   : > { %7069 = vpow2.f32 %v6112_v6 }
0x1b82   : > { %v7070_v22 = vpop.eup %7069 }
0x1b83   : > { %v2457_v23 = vadd.f32 1.0, %v7070_v22 }
0x1b85   : > { %7071 = vrcp.f32 %v2457_v23 }
0x1b92   : > { %v7072_v8 = vpop.eup %7071 }
0x1b93   : > { %v2470_v30 = vsub.f32 1.0, %v7072_v8  ;;  %v2478_v34 = vmul.f32 %v7072_v8, %v2476_v31 }
0x1be3   : > { %v2461_v24 = vpop.permute.xlu0 %2460 }
0x1be4   : > { %v2463_v25 = vmul.f32 %v7072_v8, %v2461_v24 }
0x1be6   : > { %2465 = vrot.lane.b32.xlu1 %v2463_v25, %s8590_s11 }
0x1c58   : > { %v2466_v27 = vpop.permute.xlu1 %2465 }
0x1c59   : > { %v2468_v28 = vadd.f32 %v2466_v27, %v7859_v33 }
0x1c5b   : > { %7073 = vtanh.f32 %v2468_v28 }
0x1c68   : > { %v7074_v29 = vpop.eup %7073 }
0x1c69   : > { %2472 = vrot.lane.b32.xlu0 %v7074_v29, %s8588_s7 }
0x1cdb   : > { %v2473_v32 = vpop.permute.xlu0 %2472 }
0x1cdc   : > { %v2475_v35 = vmul.f32 %v2473_v32, %v2470_v30 }
0x1cde   : > { %v2479_v36 = vadd.f32 %v2478_v34, %v2475_v35 }
0x1ce0   : > { %v3011_v38 = vsel %vm2064_vm3, %v3010_v37, %v2479_v36  ;;  %v2481_v39 = vrot.slane %v2479_v36, 2  ;;  %v2582_v55 = vrot.slane %v2479_v36, 7 }
0x1ce2   : > { %2482 = vrot.lane.b32.xlu1 %v2481_v39, %s8588_s7 }
0x1d54   : > { %v2483_v40 = vpop.permute.xlu1 %2482 }
0x1d55   : > { %6566 = vmatmul.mubr.msk.f32.vlgmr.msra.gmra.mxu1 %vm1145_vm0, %v2483_v40 }
0x1d56   : > { %6580 = vmatpush3.msra.mxu1 %v7796_v13  ;;  %6587 = vmatprep.mubr.msk.f32.mxu1 %vm7345_vm1, %v7344_v2 }
0x1d57   : > { %6581 = vmatprep.subr.mxu1 %v7344_v2 }
0x1d58   : > { %6582 = vmatpush3.msra.mxu1 %v7799_v14 }
0x1d59   : > { %6583 = vmatprep.subr.mxu1 %v7344_v2 }
0x1d5a   : > { %6584 = vmatpush3.msra.mxu1 %v7806_v16 }
0x1d5b   : > { %6585 = vmatprep.subr.mxu1 %v7344_v2 }
0x1d5c   : > { %6586 = vmatpush3.msra.mxu1 %v7814_v19 }
0x1d5d   : > { %6601 = vmatprep.subr.mxu1 %v7344_v2 }
0x1e15   : > { %v2552_v41 = vpop.f32.mrf.mxu1 }
0x1e16   : > { %v2553_v42 = vadd.f32 %v2552_v41, %v7843_v26 }
0x1e17   : > { %v6567_v43 = vpop.f32.mrf.mxu1 }
0x1e18   : > { %v2557_v44 = vrot.slane %v2553_v42, 5 }
0x1e1a   : > { %2566 = vrot.lane.b32.xlu0 %v2557_v44, %s8590_s11  ;;  %v2559_v45 = vadd.f32 %v2557_v44, %v7859_v33 }
0x1e1c   : > { %v6114_v46 = vmul.f32 -1.442695, %v2559_v45 }
0x1e1e   : > { %7075 = vpow2.f32 %v6114_v46 }
0x1e2b   : > { %v7076_v47 = vpop.eup %7075 }
0x1e2c   : > { %v2563_v48 = vadd.f32 1.0, %v7076_v47 }
0x1e2e   : > { %7077 = vrcp.f32 %v2563_v48 }
0x1e3b   : > { %v7078_v49 = vpop.eup %7077 }
0x1e3c   : > { %v2576_v54 = vsub.f32 1.0, %v7078_v49  ;;  %v2584_v57 = vmul.f32 %v7078_v49, %v2582_v55 }
0x1e8c   : > { %v2567_v50 = vpop.permute.xlu0 %2566 }
0x1e8d   : > { %v2569_v51 = vmul.f32 %v7078_v49, %v2567_v50 }
0x1e8f   : > { %2571 = vrot.lane.b32.xlu1 %v2569_v51, %s8590_s11 }
0x1f01   : > { %v2572_v10 = vpop.permute.xlu1 %2571 }
0x1f02   : > { %v2574_v52 = vadd.f32 %v2572_v10, %v7859_v33 }
0x1f04   : > { %7079 = vtanh.f32 %v2574_v52 }
0x1f11   : > { %v7080_v53 = vpop.eup %7079 }
0x1f12   : > { %2578 = vrot.lane.b32.xlu0 %v7080_v53, %s8588_s7 }
0x1f84   : > { %v2579_v56 = vpop.permute.xlu0 %2578 }
0x1f85   : > { %v2581_v58 = vmul.f32 %v2579_v56, %v2576_v54 }
0x1f87   : > { %v2585_v59 = vadd.f32 %v2584_v57, %v2581_v58 }
0x1f89   : > { %v3012_v60 = vsel %vm2066_vm4, %v3011_v38, %v2585_v59  ;;  %v2587_v61 = vrot.slane %v2585_v59, 3  ;;  %v2688_v6 = vrot.slane %v2585_v59, 7 }
0x1f8b   : > { %2588 = vrot.lane.b32.xlu1 %v2587_v61, %s8588_s7 }
0x1ffd   : > { %v2589_v62 = vpop.permute.xlu1 %2588 }
0x1ffe   : > { %6577 = vmatmul.mubr.msk.f32.vlgmr.msra.gmra.mxu0 %vm1145_vm0, %v2589_v62 }
0x1fff   : > { %6591 = vmatpush3.msra.mxu0 %v7796_v13  ;;  %6598 = vmatprep.mubr.msk.f32.mxu0 %vm7345_vm1, %v7344_v2 }
0x2000   : > { %6592 = vmatprep.subr.mxu0 %v7344_v2 }
0x2001   : > { %6593 = vmatpush3.msra.mxu0 %v7799_v14 }
0x2002   : > { %6594 = vmatprep.subr.mxu0 %v7344_v2 }
0x2003   : > { %6595 = vmatpush3.msra.mxu0 %v7806_v16 }
0x2004   : > { %6596 = vmatprep.subr.mxu0 %v7344_v2 }
0x2005   : > { %6597 = vmatpush3.msra.mxu0 %v7814_v19 }
0x2006   : > { %6612 = vmatprep.subr.mxu0 %v7344_v2 }
0x20be   : > { %v2658_v63 = vpop.f32.mrf.mxu0 }
0x20bf   : > { %v2659_v0 = vadd.f32 %v2658_v63, %v7843_v26 }
0x20c0   : > { %v6578_v3 = vpop.f32.mrf.mxu0 }
0x20c1   : > { %v2663_v5 = vrot.slane %v2659_v0, 4 }
0x20c3   : > { %2672 = vrot.lane.b32.xlu0 %v2663_v5, %s8590_s11  ;;  %v2665_v7 = vadd.f32 %v2663_v5, %v7859_v33 }
0x20c5   : > { %v6116_v11 = vmul.f32 -1.442695, %v2665_v7 }
0x20c7   : > { %7081 = vpow2.f32 %v6116_v11 }
0x20d4   : > { %v7082_v9 = vpop.eup %7081 }
0x20d5   : > { %v2669_v12 = vadd.f32 1.0, %v7082_v9 }
0x20d7   : > { %7083 = vrcp.f32 %v2669_v12 }
0x20e4   : > { %v7084_v15 = vpop.eup %7083 }
0x20e5   : > { %v2682_v21 = vsub.f32 1.0, %v7084_v15  ;;  %v2690_v23 = vmul.f32 %v7084_v15, %v2688_v6 }
0x2135   : > { %v2673_v1 = vpop.permute.xlu0 %2672 }
0x2136   : > { %v2675_v18 = vmul.f32 %v7084_v15, %v2673_v1 }
0x2138   : > { %2677 = vrot.lane.b32.xlu1 %v2675_v18, %s8590_s11 }
0x21aa   : > { %v2678_v17 = vpop.permute.xlu1 %2677 }
0x21ab   : > { %v2680_v4 = vadd.f32 %v2678_v17, %v7859_v33 }
0x21ad   : > { %7085 = vtanh.f32 %v2680_v4 }
0x21ba   : > { %v7086_v20 = vpop.eup %7085 }
0x21bb   : > { %2684 = vrot.lane.b32.xlu0 %v7086_v20, %s8588_s7 }
0x222d   : > { %v2685_v22 = vpop.permute.xlu0 %2684 }
0x222e   : > { %v2687_v8 = vmul.f32 %v2685_v22, %v2682_v21 }
0x2230   : > { %v2691_v24 = vadd.f32 %v2690_v23, %v2687_v8 }
0x2232   : > { %v3013_v25 = vsel %vm2068_vm5, %v3012_v60, %v2691_v24  ;;  %v2693_v27 = vrot.slane %v2691_v24, 4  ;;  %v2794_v41 = vrot.slane %v2691_v24, 7 }
0x2234   : > { %2694 = vrot.lane.b32.xlu1 %v2693_v27, %s8588_s7  ;;  %v3024_v27 = vld [vmem:[%s8634_s12 + $0x10] sm:$0xff] }
0x22a6   : > { %v2695_v28 = vpop.permute.xlu1 %2694 }
0x22a7   : > { %6588 = vmatmul.mubr.msk.f32.vlgmr.msra.gmra.mxu1 %vm1145_vm0, %v2695_v28  ;;  %v3020_v28 = vld [vmem:[%s7421_s30 + $0x18] sm:$0xff] }
0x22a8   : > { %6602 = vmatpush3.msra.mxu1 %v7796_v13  ;;  %6609 = vmatprep.mubr.msk.f32.mxu1 %vm7345_vm1, %v7344_v2 }
0x22a9   : > { %6603 = vmatprep.subr.mxu1 %v7344_v2 }
0x22aa   : > { %6604 = vmatpush3.msra.mxu1 %v7799_v14 }
0x22ab   : > { %6605 = vmatprep.subr.mxu1 %v7344_v2 }
0x22ac   : > { %6606 = vmatpush3.msra.mxu1 %v7806_v16 }
0x22ad   : > { %6607 = vmatprep.subr.mxu1 %v7344_v2 }
0x22ae   : > { %6608 = vmatpush3.msra.mxu1 %v7814_v19 }
0x22af   : > { %6623 = vmatprep.subr.mxu1 %v7344_v2 }
0x2367   : > { %v2764_v29 = vpop.f32.mrf.mxu1 }
0x2368   : > { %v2765_v13 = vadd.f32 %v2764_v29, %v7843_v26  ;;  %v3023_v29 = vld [vmem:[%s8634_s12 + $0x8] sm:$0xff] }
0x2369   : > { %v6589_v30 = vpop.f32.mrf.mxu1 }
0x236a   : > { %v2769_v31 = vrot.slane %v2765_v13, 3  ;;  %v3019_v13 = vld [vmem:[%s7421_s30 + $0x10] sm:$0xff]  ;;  %v3018_v30 = vld [vmem:[%s7421_s30 + $0x8] sm:$0xff] }
0x236c   : > { %2778 = vrot.lane.b32.xlu0 %v2769_v31, %s8590_s11  ;;  %v2771_v32 = vadd.f32 %v2769_v31, %v7859_v33  ;;  %v8001_v31 = vld [vmem:[%s1117_s10] sm:$0xff]  ;;  %s8644_s10 = sld [smem:[#allocation17_spill]] }
0x236e   : > { %v6118_v14 = vmul.f32 -1.442695, %v2771_v32  ;;  %v3017_v32 = vld [vmem:[%s7421_s30] sm:$0xff] }
0x2370   : > { %7087 = vpow2.f32 %v6118_v14 }
0x237d   : > { %v7088_v34 = vpop.eup %7087 }
0x237e   : > { %v2775_v35 = vadd.f32 1.0, %v7088_v34 }
0x2380   : > { %7089 = vrcp.f32 %v2775_v35 }
0x238d   : > { %v7090_v16 = vpop.eup %7089 }
0x238e   : > { %v2788_v40 = vsub.f32 1.0, %v7090_v16  ;;  %v2796_v43 = vmul.f32 %v7090_v16, %v2794_v41 }
0x23de   : > { %v2779_v36 = vpop.permute.xlu0 %2778 }
0x23df   : > { %v2781_v37 = vmul.f32 %v7090_v16, %v2779_v36 }
0x23e1   : > { %2783 = vrot.lane.b32.xlu1 %v2781_v37, %s8590_s11 }
0x2453   : > { %v2784_v19 = vpop.permute.xlu1 %2783 }
0x2454   : > { %v2786_v38 = vadd.f32 %v2784_v19, %v7859_v33 }
0x2456   : > { %7091 = vtanh.f32 %v2786_v38 }
0x2463   : > { %v7092_v39 = vpop.eup %7091 }
0x2464   : > { %2790 = vrot.lane.b32.xlu0 %v7092_v39, %s8588_s7  ;;  %v6125_v39 = vld [vmem:[%s7436_s20] ss:$0 sm:$0xff] }
0x24d6   : > { %v2791_v42 = vpop.permute.xlu0 %2790 }
0x24d7   : > { %v2793_v44 = vmul.f32 %v2791_v42, %v2788_v40 }
0x24d9   : > { %v2797_v45 = vadd.f32 %v2796_v43, %v2793_v44  ;;  %v6123_v44 = vld [vmem:[%s8643_s1] ss:$0 sm:$0xff] }
0x24db   : > { %v2799_v46 = vrot.slane %v2797_v45, 5  ;;  %v3014_v47 = vsel %vm2070_vm6, %v3013_v25, %v2797_v45  ;;  %v2900_v63 = vrot.slane %v2797_v45, 7  ;;  %v3025_v25 = vld [vmem:[%s8634_s12 + $0x18] sm:$0xff] }
0x24dd   : > { %2800 = vrot.lane.b32.xlu1 %v2799_v46, %s8588_s7 }
0x254f   : > { %v2801_v48 = vpop.permute.xlu1 %2800 }
0x2550   : > { %6599 = vmatmul.mubr.msk.f32.vlgmr.msra.gmra.mxu0 %vm1145_vm0, %v2801_v48  ;;  %v3030_v48 = vld [vmem:[%s8644_s10 + $0x18] sm:$0xff] }
0x2551   : > { %6620 = vmatprep.mubr.msk.f32.mxu0 %vm7345_vm1, %v7344_v2  ;;  %6613 = vmatpush3.msra.mxu0 %v3020_v28 }
0x2552   : > { %6614 = vmatprep.subr.mxu0 %v7344_v2 }
0x2553   : > { %6615 = vmatpush3.msra.mxu0 %v3019_v13 }
0x2554   : > { %6616 = vmatprep.subr.mxu0 %v7344_v2 }
0x2555   : > { %6617 = vmatpush3.msra.mxu0 %v3018_v30 }
0x2556   : > { %6618 = vmatprep.subr.mxu0 %v7344_v2 }
0x2557   : > { %6619 = vmatpush3.msra.mxu0 %v3017_v32 }
0x2558   : > { %6634 = vmatprep.subr.mxu0 %v7344_v2 }
0x2610   : > { %v2870_v49 = vpop.f32.mrf.mxu0 }
0x2611   : > { %v2871_v50 = vadd.f32 %v2870_v49, %v7843_v26  ;;  %v3029_v49 = vld [vmem:[%s8644_s10 + $0x10] sm:$0xff] }
0x2612   : > { %v6600_v51 = vpop.f32.mrf.mxu0 }
0x2613   : > { %v2875_v10 = vrot.slane %v2871_v50, 2  ;;  %v3028_v50 = vld [vmem:[%s8644_s10 + $0x8] sm:$0xff]  ;;  %v3027_v51 = vld [vmem:[%s8644_s10] sm:$0xff] }
0x2615   : > { %2884 = vrot.lane.b32.xlu0 %v2875_v10, %s8590_s11  ;;  %v2877_v52 = vadd.f32 %v2875_v10, %v7859_v33  ;;  %v3346_v10 = vlaneseq }
0x2617   : > { %v6120_v53 = vmul.f32 -1.442695, %v2877_v52 }
0x2619   : > { %7093 = vpow2.f32 %v6120_v53  ;;  %v3347_v53 = vshrl.u32 %v3346_v10, 7 }
0x2626   : > { %v7094_v54 = vpop.eup %7093 }
0x2627   : > { %v2881_v55 = vadd.f32 1.0, %v7094_v54  ;;  %v3348_v54 = vsub.s32 0, %v3347_v53 }
0x2629   : > { %7095 = vrcp.f32 %v2881_v55  ;;  %v7349_v55 = vmov 0  }
0x2636   : > { %v7096_v56 = vpop.eup %7095 }
0x2637   : > { %v2894_v62 = vsub.f32 1.0, %v7096_v56  ;;  %v2902_v3 = vmul.f32 %v7096_v56, %v2900_v63 }
0x2687   : > { %v2885_v57 = vpop.permute.xlu0 %2884 }
0x2688   : > { %v2887_v58 = vmul.f32 %v7096_v56, %v2885_v57 }
0x268a   : > { %2889 = vrot.lane.b32.xlu1 %v2887_v58, %s8590_s11 }
0x26fc   : > { %v2890_v59 = vpop.permute.xlu1 %2889 }
0x26fd   : > { %v2892_v60 = vadd.f32 %v2890_v59, %v7859_v33 }
0x26ff   : > { %7097 = vtanh.f32 %v2892_v60 }
0x270c   : > { %v7098_v61 = vpop.eup %7097 }
0x270d   : > { %2896 = vrot.lane.b32.xlu0 %v7098_v61, %s8588_s7 }
0x277f   : > { %v2897_v0 = vpop.permute.xlu0 %2896 }
0x2780   : > { %v2899_v5 = vmul.f32 %v2897_v0, %v2894_v62 }
0x2782   : > { %v2903_v7 = vadd.f32 %v2902_v3, %v2899_v5 }
0x2784   : > { %v2905_v11 = vrot.slane %v2903_v7, 6  ;;  %v3015_v9 = vsel %vm2072_vm7, %v3014_v47, %v2903_v7  ;;  %v3006_v35 = vrot.slane %v2903_v7, 7 }
0x2786   : > { %2906 = vrot.lane.b32.xlu1 %v2905_v11, %s8588_s7 }
0x27f8   : > { %v2907_v12 = vpop.permute.xlu1 %2906 }
0x27f9   : > { %6610 = vmatmul.mubr.msk.f32.vlgmr.msra.gmra.mxu1 %vm1145_vm0, %v2907_v12 }
0x27fa   : > { %6631 = vmatprep.mubr.msk.f32.mxu1 %vm7345_vm1, %v7344_v2  ;;  %6624 = vmatpush3.msra.mxu1 %v3025_v25 }
0x27fb   : > { %6625 = vmatprep.subr.mxu1 %v7344_v2 }
0x27fc   : > { %6626 = vmatpush3.msra.mxu1 %v3024_v27 }
0x27fd   : > { %6627 = vmatprep.subr.mxu1 %v7344_v2 }
0x27fe   : > { %6628 = vmatpush3.msra.mxu1 %v3023_v29 }
0x27ff   : > { %6629 = vmatprep.subr.mxu1 %v7344_v2 }
0x28b9   : > { %v2976_v15 = vpop.f32.mrf.mxu1 }
0x28ba   : > { %v2977_v1 = vadd.f32 %v2976_v15, %v7843_v26 }
0x28bb   : > { %v6611_v18 = vpop.f32.mrf.mxu1 }
0x28bc   : > { %v2981_v17 = vrot.slane %v2977_v1, 1 }
0x28be   : > { %2990 = vrot.lane.b32.xlu0 %v2981_v17, %s8590_s11  ;;  %v2983_v4 = vadd.f32 %v2981_v17, %v7859_v33 }
0x28c0   : > { %v6122_v20 = vmul.f32 -1.442695, %v2983_v4 }
0x28c2   : > { %7099 = vpow2.f32 %v6122_v20 }
0x28cf   : > { %v7100_v21 = vpop.eup %7099 }
0x28d0   : > { %v2987_v6 = vadd.f32 1.0, %v7100_v21 }
0x28d2   : > { %7101 = vrcp.f32 %v2987_v6 }
0x28df   : > { %v7102_v22 = vpop.eup %7101 }
0x28e0   : > { %v3000_v34 = vsub.f32 1.0, %v7102_v22  ;;  %v3008_v36 = vmul.f32 %v7102_v22, %v3006_v35  ;;  %v6132_v35 = vld [vmem:[%s8651_s3] ss:$0 sm:$0xff]  ;;  %s8653_s3 = smov 96  }
0x2930   : > { %v2991_v26 = vpop.permute.xlu0 %2990 }
0x2931   : > { %v2993_v23 = vmul.f32 %v7102_v22, %v2991_v26 }
0x2933   : > { %2995 = vrot.lane.b32.xlu1 %v2993_v23, %s8590_s11  ;;  %s8646_s11 = sld [smem:[#allocation18_spill]] }
0x2939   : > { %v6127_v7 = vld [vmem:[%s8646_s11] ss:$0 sm:$0xff]  ;;  %s8649_s11 = sld [smem:[#allocation22_spill]] }
0x293f   : > { %v8104_v13 = vld [vmem:[%s8649_s11] sm:$0x1]  ;;  %s8654_s11 = sld [smem:[#allocation25_spill]] }
0x29a5   : > { %v2996_v8 = vpop.permute.xlu1 %2995 }
0x29a6   : > { %v2998_v24 = vadd.f32 %v2996_v8, %v7859_v33  ;;  %v3022_v33 = vld [vmem:[%s8634_s12] sm:$0xff] }
0x29a7   : > { %6630 = vmatpush3.msra.mxu1 %v3022_v33 }
0x29a8   : > { %7103 = vtanh.f32 %v2998_v24  ;;  %6632 = vmatmul.mubr.msk.f32.vlgmr.msra.gmra.mxu1 %vm1145_vm0, %v8001_v31  ;;  %6645 = vmatprep.subr.mxu1 %v7344_v2 }
0x29a9   : > { %6647 = vmatprep.mubr.msk.f32.mxu1 %vm7345_vm1, %v7344_v2 }
0x29b5   : > { %v7104_v14 = vpop.eup %7103 }
0x29b6   : > { %3002 = vrot.lane.b32.xlu0 %v7104_v14, %s8588_s7 }
0x2a28   : > { %v3003_v16 = vpop.permute.xlu0 %3002 }
0x2a29   : > { %v3005_v37 = vmul.f32 %v3003_v16, %v3000_v34 }
0x2a2b   : > { %v3009_v19 = vadd.f32 %v3008_v36, %v3005_v37 }
0x2a2d   : > { %v3016_v38 = vsel %vm2074_vm8, %v3015_v9, %v3009_v19 }
0x2a2e   : > { %3039 = vrot.lane.b32.xlu1 %v3016_v38, %s8588_s7  ;;  %s8645_s7 = sld [smem:[#allocation11_spill]] }
0x2a34   : > { %s1124_s1 = scalar_lea.vmem %s8645_s7, %s7599_s18  ;;  %s8647_s18 = sld [smem:[#allocation20_spill]] }
0x2a35   : > { %v1128_v52 = vld [vmem:[%s1124_s1] sm:$0x1]  ;;  %s8648_s7 = sld [smem:[#allocation19_spill]]  ;;  %s8650_s1 = smov 32  }
0x2a36   : > { %vm3344_vm9 = vcmp.gt.f32.partialorder %v1128_v52, 0.5 }
0x2a37   : > { %v3345_v56 = vsel %vm3344_vm9, 1, %v7349_v55 }
0x2a38   : > { %v8043_v57 = vrot.slane %v3345_v56, %v3348_v54 }
0x2a3a   : > { %vm3350_vm10 = vcmp.eq.s32.totalorder %v8043_v57, 1  ;;  %v8056_v17 = vld [vmem:[%s8647_s18 + $0x18] sm:$0xff]  ;;  %v8059_v4 = vld [vmem:[%s8647_s18 + $0x10] sm:$0xff]  ;;  %v8066_v6 = vld [vmem:[%s8647_s18 + $0x8] sm:$0xff] }
0x2a3b   : > { %v3450_v20 = vld [vmem:[%s8648_s7 + $0x38] sm:$0xff]  ;;  %v3449_v21 = vld [vmem:[%s8648_s7 + $0x30] sm:$0xff]  ;;  %v3448_v22 = vld [vmem:[%s8648_s7 + $0x28] sm:$0xff] }
0x2a3c   : > { %v8073_v26 = vld [vmem:[%s8647_s18] sm:$0xff]  ;;  %v3446_v8 = vld [vmem:[%s8648_s7 + $0x18] sm:$0xff]  ;;  %v3445_v24 = vld [vmem:[%s8648_s7 + $0x10] sm:$0xff] }
0x2a3d   : > { %v3447_v23 = vld [vmem:[%s8648_s7 + $0x20] sm:$0xff]  ;;  %v3444_v25 = vld [vmem:[%s8648_s7 + $0x8] sm:$0xff] }
0x2a3e   : > { %v3443_v27 = vld [vmem:[%s8648_s7] sm:$0xff]  ;;  %s8655_s7 = sld [smem:[#allocation23_spill]] }
0x2a68   : > { %v3188_v40 = vpop.f32.mrf.mxu1 }
0x2a69   : > { %v3189_v41 = vadd.f32 %v6125_v39, %v3188_v40 }
0x2a6a   : > { %v6633_v42 = vpop.f32.mrf.mxu1 }
0x2a6b   : > { %6646 = vmatpush3.xpose.msk.msra.mxu1 %vm1145_vm0, %v3189_v41 }
0x2a6c   : > { %6650 = vmatprep.subr.mxu1 %v7344_v2 }
0x2aa0   : > { %v8019_v43 = vpop.permute.xlu1 %3039 }
0x2aa1   : > { %6621 = vmatmul.mubr.msk.f32.vlgmr.msra.gmra.mxu0 %vm1145_vm0, %v8019_v43 }
0x2aa2   : > { %6642 = vmatprep.mubr.msk.f32.mxu0 %vm7345_vm1, %v7344_v2  ;;  %6635 = vmatpush3.msra.mxu0 %v3030_v48 }
0x2aa3   : > { %6636 = vmatprep.subr.mxu0 %v7344_v2 }
0x2aa4   : > { %6637 = vmatpush3.msra.mxu0 %v3029_v49 }
0x2aa5   : > { %6638 = vmatprep.subr.mxu0 %v7344_v2 }
0x2aa6   : > { %6639 = vmatpush3.msra.mxu0 %v3028_v50 }
0x2aa7   : > { %6640 = vmatprep.subr.mxu0 %v7344_v2 }
0x2aa8   : > { %6641 = vmatpush3.msra.mxu0 %v3027_v51 }
0x2aa9   : > { %6643 = vmatmul.mubr.msk.f32.vlgmr.msra.gmra.mxu0 %vm1145_vm0, %v8001_v31  ;;  %6655 = vmatprep.subr.mxu0 %v7344_v2 }
0x2aaa   : > { %6671 = vmatprep.mubr.msk.f32.mxu0 %vm7345_vm1, %v7344_v2  ;;  %6656 = vmatpush3.msra.mxu0 %v3450_v20 }
0x2aab   : > { %6657 = vmatprep.subr.mxu0 %v7344_v2 }
0x2aac   : > { %6658 = vmatpush3.msra.mxu0 %v3449_v21 }
0x2aad   : > { %6659 = vmatprep.subr.mxu0 %v7344_v2 }
0x2aae   : > { %6660 = vmatpush3.msra.mxu0 %v3448_v22 }
0x2aaf   : > { %6661 = vmatprep.subr.mxu0 %v7344_v2 }
0x2ab0   : > { %6662 = vmatpush3.msra.mxu0 %v3447_v23 }
0x2ab1   : > { %6663 = vmatprep.subr.mxu0 %v7344_v2 }
0x2ab2   : > { %6664 = vmatpush3.msra.mxu0 %v3446_v8 }
0x2ab3   : > { %6665 = vmatprep.subr.mxu0 %v7344_v2 }
0x2ab4   : > { %6666 = vmatpush3.msra.mxu0 %v3445_v24 }
0x2ab5   : > { %6667 = vmatprep.subr.mxu0 %v7344_v2 }
0x2ab6   : > { %6668 = vmatpush3.msra.mxu0 %v3444_v25 }
0x2ab7   : > { %6669 = vmatprep.subr.mxu0 %v7344_v2 }
0x2ab8   : > { %6670 = vmatpush3.msra.mxu0 %v3443_v27 }
0x2ab9   : > { %6696 = vmatprep.subr.mxu0 %v7344_v2 }
0x2b61   : > { %v3109_v45 = vpop.f32.mrf.mxu0 }
0x2b62   : > { %v3110_v46 = vadd.f32 %v6123_v44, %v3109_v45 }
0x2b63   : > { %v6622_v47 = vpop.f32.mrf.mxu0 }
0x2b64   : > { %6648 = vmatmul.mubr.msk.f32.vlgmr.msra.gmra.mxu1 %vm1145_vm0, %v3110_v46 }
0x2b65   : > { %6652 = vmatprep.mubr.msk.f32.mxu1 %vm7345_vm1, %v7344_v2 }
0x2b69   : > { %v3264_v11 = vpop.f32.mrf.mxu0 }
0x2b6a   : > { %v3265_v9 = vadd.f32 %v6127_v7, %v3264_v11 }
0x2b6b   : > { %v6644_v12 = vpop.f32.mrf.mxu0 }
0x2b6c   : > { %6651 = vmatpush3.msra.mxu1 %v3265_v9 }
0x2b6d   : > { %6674 = vmatprep.subr.mxu1 %v7344_v2 }
0x2c24   : > { %v3340_v58 = vpop.f32.mrf.mxu1 }
0x2c25   : > { %v3351_v59 = vsel %vm3350_vm10, %v3340_v58, -1e+30 }
0x2c26   : > { %v6649_v60 = vpop.f32.mrf.mxu1  ;;  %v3353_v61 = vsel %vm3352_vm11, %v3351_v59, -inf }
0x2c27   : > { %3354 = vmax.xlane.f32.xlu0 %v3353_v61 }
0x2cb0   : > { %v3355_v62 = vpop.xlane.xlu0 %3354 }
0x2cb1   : > { %v3356_v63 = vsub.f32 %v3351_v59, %v3355_v62 }
0x2cb3   : > { %v3357_v0 = vmul.f32 1.442695, %v3356_v63 }
0x2cb5   : > { %7105 = vpow2.f32 %v3357_v0 }
0x2cc2   : > { %v7106_v3 = vpop.eup %7105 }
0x2cc3   : > { %v3359_v5 = vsel %vm3352_vm11, %v7106_v3, 0.0 }
0x2cc4   : > { %3360 = vadd.xlane.f32.xlu1 %v3359_v5 }
0x2d4d   : > { %v3361_v15 = vpop.xlane.xlu1 %3360 }
0x2d4e   : > { %7107 = vrcp.f32 %v3361_v15 }
0x2d5b   : > { %v7108_v1 = vpop.eup %7107 }
0x2d5c   : > { %v3363_v18 = vmul.f32 %v7108_v1, %v7106_v3 }
0x2d5e   : > { %6653 = vmatmul.mubr.msk.f32.vlgmr.msra.gmra.mxu1 %vm3352_vm11, %v3363_v18 }
0x2d5f   : > { %6682 = vmatprep.mubr.msk.f32.mxu1 %vm7345_vm1, %v7344_v2  ;;  %6675 = vmatpush3.msra.mxu1 %v8056_v17 }
0x2d60   : > { %6676 = vmatprep.subr.mxu1 %v7344_v2 }
0x2d61   : > { %6677 = vmatpush3.msra.mxu1 %v8059_v4 }
0x2d62   : > { %6678 = vmatprep.subr.mxu1 %v7344_v2 }
0x2d63   : > { %6679 = vmatpush3.msra.mxu1 %v8066_v6 }
0x2d64   : > { %6680 = vmatprep.subr.mxu1 %v7344_v2 }
0x2d65   : > { %6681 = vmatpush3.msra.mxu1 %v8073_v26 }
0x2d66   : > { %6683 = vmatmul.mubr.f32.vlgmr.msra.gmra.mxu1 %v7344_v2  ;;  %6685 = vmatprep.subr.mxu1 %v7344_v2 }
0x2d67   : > { %6686 = vmatpush3.msra.mxu1 %v8056_v17  ;;  %6693 = vmatprep.mubr.msk.f32.mxu1 %vm7345_vm1, %v7344_v2 }
0x2d68   : > { %6687 = vmatprep.subr.mxu1 %v7344_v2 }
0x2d69   : > { %6688 = vmatpush3.msra.mxu1 %v8059_v4 }
0x2d6a   : > { %6689 = vmatprep.subr.mxu1 %v7344_v2 }
0x2d6b   : > { %6690 = vmatpush3.msra.mxu1 %v8066_v6 }
0x2d6c   : > { %6691 = vmatprep.subr.mxu1 %v7344_v2 }
0x2d6d   : > { %6692 = vmatpush3.msra.mxu1 %v8073_v26 }
0x2d6e   : > { %6707 = vmatprep.subr.mxu1 %v7344_v2 }
0x2e1e   : > { %v3433_v28 = vpop.f32.mrf.mxu1 }
0x2e1f   : > { %3439 = vrot.lane.b32.xlu0 %v3433_v28, %s8650_s1 }
0x2e20   : > { %v6654_v29 = vpop.f32.mrf.mxu1 }
0x2e26   : > { %v3606_v30 = vpop.f32.mrf.mxu1 }
0x2e27   : > { %v3607_v33 = vadd.f32 %v3606_v30, %v8104_v13 }
0x2e28   : > { %v6684_v32 = vpop.f32.mrf.mxu1 }
0x2e29   : > { %3618 = vrot.lane.b32.xlu1 %v3607_v33, %s8652_s5 }
0x2e91   : > { %v3440_v14 = vpop.permute.xlu0 %3439 }
0x2e92   : > { %v3442_v34 = vsel %vm1145_vm0, %v8019_v43, %v3440_v14 }
0x2e93   : > { %6672 = vmatmul.mubr.msk.f32.vlgmr.msra.gmra.mxu0 %vm3463_vm12, %v3442_v34 }
0x2e94   : > { %6697 = vmatpush3.msra.mxu0 %v8056_v17  ;;  %6704 = vmatprep.mubr.msk.f32.mxu0 %vm7345_vm1, %v7344_v2 }
0x2e95   : > { %6698 = vmatprep.subr.mxu0 %v7344_v2 }
0x2e96   : > { %6699 = vmatpush3.msra.mxu0 %v8059_v4 }
0x2e97   : > { %6700 = vmatprep.subr.mxu0 %v7344_v2 }
0x2e98   : > { %6701 = vmatpush3.msra.mxu0 %v8066_v6 }
0x2e99   : > { %6702 = vmatprep.subr.mxu0 %v7344_v2 }
0x2e9a   : > { %6703 = vmatpush3.msra.mxu0 %v8073_v26 }
0x2e9b   : > { %6718 = vmatprep.subr.mxu0 %v7344_v2  ;;  %v3619_v41 = vpop.permute.xlu1 %3618 }
0x2f53   : > { %v3533_v16 = vpop.f32.mrf.mxu0 }
0x2f54   : > { %v8122_v36 = vadd.f32 %v6132_v35, %v3533_v16 }
0x2f55   : > { %v6673_v37 = vpop.f32.mrf.mxu0 }
0x2f56   : > { %v3610_v19 = vadd.f32 %v3607_v33, %v8122_v36 }
0x2f58   : > { %v6134_v38 = vmul.f32 -1.442695, %v3610_v19 }
0x2f5a   : > { %7109 = vpow2.f32 %v6134_v38 }
0x2f67   : > { %v7110_v39 = vpop.eup %7109 }
0x2f68   : > { %v3614_v40 = vadd.f32 1.0, %v7110_v39 }
0x2f6a   : > { %7111 = vrcp.f32 %v3614_v40 }
0x2f77   : > { %v7112_v42 = vpop.eup %7111 }
0x2f78   : > { %v3621_v43 = vmul.f32 %v7112_v42, %v3619_v41  ;;  %v3628_v47 = vsub.f32 1.0, %v7112_v42  ;;  %v3634_v49 = vmul.f32 0.0, %v7112_v42 }
0x2f7a   : > { %3623 = vrot.lane.b32.xlu0 %v3621_v43, %s8652_s5 }
0x2fec   : > { %v3624_v44 = vpop.permute.xlu0 %3623 }
0x2fed   : > { %v3626_v45 = vadd.f32 %v3624_v44, %v8122_v36 }
0x2fef   : > { %7113 = vtanh.f32 %v3626_v45 }
0x2ffc   : > { %v7114_v46 = vpop.eup %7113 }
0x2ffd   : > { %3630 = vrot.lane.b32.xlu1 %v7114_v46, %s8653_s3 }
0x306f   : > { %v3631_v48 = vpop.permute.xlu1 %3630 }
0x3070   : > { %v3633_v50 = vmul.f32 %v3631_v48, %v3628_v47 }
0x3072   : > { %v8128_v51 = vadd.f32 %v3634_v49, %v3633_v50 }
0x3074   : > { %3637 = vrot.lane.b32.xlu0 %v8128_v51, %s8653_s3  ;;  %v3737_v11 = vrot.slane %v8128_v51, 7 }
0x30e6   : > { %v3638_v10 = vpop.permute.xlu0 %3637 }
0x30e7   : > { %6694 = vmatmul.mubr.msk.f32.vlgmr.msra.gmra.mxu1 %vm1145_vm0, %v3638_v10 }
0x30e8   : > { %6708 = vmatpush3.msra.mxu1 %v8056_v17  ;;  %6715 = vmatprep.mubr.msk.f32.mxu1 %vm7345_vm1, %v7344_v2 }
0x30e9   : > { %6709 = vmatprep.subr.mxu1 %v7344_v2 }
0x30ea   : > { %6710 = vmatpush3.msra.mxu1 %v8059_v4 }
0x30eb   : > { %6711 = vmatprep.subr.mxu1 %v7344_v2 }
0x30ec   : > { %6712 = vmatpush3.msra.mxu1 %v8066_v6 }
0x30ed   : > { %6713 = vmatprep.subr.mxu1 %v7344_v2 }
0x30ee   : > { %6714 = vmatpush3.msra.mxu1 %v8073_v26 }
0x30ef   : > { %6729 = vmatprep.subr.mxu1 %v7344_v2 }
0x31a7   : > { %v3707_v52 = vpop.f32.mrf.mxu1 }
0x31a8   : > { %v3708_v53 = vadd.f32 %v3707_v52, %v8104_v13 }
0x31a9   : > { %v6695_v54 = vpop.f32.mrf.mxu1 }
0x31aa   : > { %v3712_v55 = vrot.slane %v3708_v53, 7 }
0x31ac   : > { %3721 = vrot.lane.b32.xlu1 %v3712_v55, %s8652_s5  ;;  %v3714_v56 = vadd.f32 %v3712_v55, %v8122_v36 }
0x31ae   : > { %v6136_v58 = vmul.f32 -1.442695, %v3714_v56 }
0x31b0   : > { %7115 = vpow2.f32 %v6136_v58 }
0x31bd   : > { %v7116_v59 = vpop.eup %7115 }
0x31be   : > { %v3718_v60 = vadd.f32 1.0, %v7116_v59 }
0x31c0   : > { %7117 = vrcp.f32 %v3718_v60 }
0x31cd   : > { %v7118_v61 = vpop.eup %7117 }
0x31ce   : > { %v3731_v7 = vsub.f32 1.0, %v7118_v61  ;;  %v3739_v15 = vmul.f32 %v7118_v61, %v3737_v11 }
0x321e   : > { %v3722_v62 = vpop.permute.xlu1 %3721 }
0x321f   : > { %v3724_v63 = vmul.f32 %v7118_v61, %v3722_v62 }
0x3221   : > { %3726 = vrot.lane.b32.xlu0 %v3724_v63, %s8652_s5 }
0x3293   : > { %v3727_v0 = vpop.permute.xlu0 %3726 }
0x3294   : > { %v3729_v3 = vadd.f32 %v3727_v0, %v8122_v36 }
0x3296   : > { %7119 = vtanh.f32 %v3729_v3 }
0x32a3   : > { %v7120_v5 = vpop.eup %7119 }
0x32a4   : > { %3733 = vrot.lane.b32.xlu1 %v7120_v5, %s8653_s3 }
0x3316   : > { %v3734_v9 = vpop.permute.xlu1 %3733 }
0x3317   : > { %v3736_v12 = vmul.f32 %v3734_v9, %v3731_v7 }
0x3319   : > { %v3740_v1 = vadd.f32 %v3739_v15, %v3736_v12 }
0x331b   : > { %v3742_v18 = vrot.slane %v3740_v1, 1  ;;  %v3843_v16 = vrot.slane %v3740_v1, 7  ;;  %v4377_v40 = vsel %vm2062_vm2, %v8128_v51, %v3740_v1 }
0x331d   : > { %3743 = vrot.lane.b32.xlu0 %v3742_v18, %s8653_s3 }
0x338f   : > { %v3744_v20 = vpop.permute.xlu0 %3743 }
0x3390   : > { %6705 = vmatmul.mubr.msk.f32.vlgmr.msra.gmra.mxu0 %vm1145_vm0, %v3744_v20 }
0x3391   : > { %6719 = vmatpush3.msra.mxu0 %v8056_v17  ;;  %6726 = vmatprep.mubr.msk.f32.mxu0 %vm7345_vm1, %v7344_v2 }
0x3392   : > { %6720 = vmatprep.subr.mxu0 %v7344_v2 }
0x3393   : > { %6721 = vmatpush3.msra.mxu0 %v8059_v4 }
0x3394   : > { %6722 = vmatprep.subr.mxu0 %v7344_v2 }
0x3395   : > { %6723 = vmatpush3.msra.mxu0 %v8066_v6 }
0x3396   : > { %6724 = vmatprep.subr.mxu0 %v7344_v2 }
0x3397   : > { %6725 = vmatpush3.msra.mxu0 %v8073_v26 }
0x3398   : > { %6740 = vmatprep.subr.mxu0 %v7344_v2 }
0x3450   : > { %v3813_v21 = vpop.f32.mrf.mxu0 }
0x3451   : > { %v3814_v22 = vadd.f32 %v3813_v21, %v8104_v13 }
0x3452   : > { %v6706_v23 = vpop.f32.mrf.mxu0 }
0x3453   : > { %v3818_v8 = vrot.slane %v3814_v22, 6 }
0x3455   : > { %3827 = vrot.lane.b32.xlu1 %v3818_v8, %s8652_s5  ;;  %v3820_v24 = vadd.f32 %v3818_v8, %v8122_v36 }
0x3457   : > { %v6138_v25 = vmul.f32 -1.442695, %v3820_v24 }
0x3459   : > { %7121 = vpow2.f32 %v6138_v25 }
0x3466   : > { %v7122_v27 = vpop.eup %7121 }
0x3467   : > { %v3824_v28 = vadd.f32 1.0, %v7122_v27 }
0x3469   : > { %7123 = vrcp.f32 %v3824_v28 }
0x3476   : > { %v7124_v29 = vpop.eup %7123 }
0x3477   : > { %v3837_v35 = vsub.f32 1.0, %v7124_v29  ;;  %v3845_v19 = vmul.f32 %v7124_v29, %v3843_v16 }
0x34c7   : > { %v3828_v30 = vpop.permute.xlu1 %3827 }
0x34c8   : > { %v3830_v33 = vmul.f32 %v7124_v29, %v3828_v30 }
0x34ca   : > { %3832 = vrot.lane.b32.xlu0 %v3830_v33, %s8652_s5 }
0x353c   : > { %v3833_v32 = vpop.permute.xlu0 %3832 }
0x353d   : > { %v3835_v14 = vadd.f32 %v3833_v32, %v8122_v36 }
0x353f   : > { %7125 = vtanh.f32 %v3835_v14 }
0x354c   : > { %v7126_v34 = vpop.eup %7125 }
0x354d   : > { %3839 = vrot.lane.b32.xlu1 %v7126_v34, %s8653_s3 }
0x35bf   : > { %v3840_v37 = vpop.permute.xlu1 %3839 }
0x35c0   : > { %v3842_v38 = vmul.f32 %v3840_v37, %v3837_v35 }
0x35c2   : > { %v3846_v39 = vadd.f32 %v3845_v19, %v3842_v38 }
0x35c4   : > { %v4378_v41 = vsel %vm2064_vm3, %v4377_v40, %v3846_v39  ;;  %v3848_v42 = vrot.slane %v3846_v39, 2  ;;  %v3949_v59 = vrot.slane %v3846_v39, 7 }
0x35c6   : > { %3849 = vrot.lane.b32.xlu0 %v3848_v42, %s8653_s3 }
0x3638   : > { %v3850_v43 = vpop.permute.xlu0 %3849 }
0x3639   : > { %6716 = vmatmul.mubr.msk.f32.vlgmr.msra.gmra.mxu1 %vm1145_vm0, %v3850_v43 }
0x363a   : > { %6730 = vmatpush3.msra.mxu1 %v8056_v17  ;;  %6737 = vmatprep.mubr.msk.f32.mxu1 %vm7345_vm1, %v7344_v2 }
0x363b   : > { %6731 = vmatprep.subr.mxu1 %v7344_v2 }
0x363c   : > { %6732 = vmatpush3.msra.mxu1 %v8059_v4 }
0x363d   : > { %6733 = vmatprep.subr.mxu1 %v7344_v2 }
0x363e   : > { %6734 = vmatpush3.msra.mxu1 %v8066_v6 }
0x363f   : > { %6735 = vmatprep.subr.mxu1 %v7344_v2 }
0x3640   : > { %6736 = vmatpush3.msra.mxu1 %v8073_v26 }
0x3641   : > { %6751 = vmatprep.subr.mxu1 %v7344_v2 }
0x36f9   : > { %v3919_v44 = vpop.f32.mrf.mxu1 }
0x36fa   : > { %v3920_v45 = vadd.f32 %v3919_v44, %v8104_v13 }
0x36fb   : > { %v6717_v46 = vpop.f32.mrf.mxu1 }
0x36fc   : > { %v3924_v47 = vrot.slane %v3920_v45, 5 }
0x36fe   : > { %3933 = vrot.lane.b32.xlu1 %v3924_v47, %s8652_s5  ;;  %v3926_v48 = vadd.f32 %v3924_v47, %v8122_v36 }
0x3700   : > { %v6140_v49 = vmul.f32 -1.442695, %v3926_v48 }
0x3702   : > { %7127 = vpow2.f32 %v6140_v49 }
0x370f   : > { %v7128_v50 = vpop.eup %7127 }
0x3710   : > { %v3930_v51 = vadd.f32 1.0, %v7128_v50 }
0x3712   : > { %7129 = vrcp.f32 %v3930_v51 }
0x371f   : > { %v7130_v10 = vpop.eup %7129 }
0x3720   : > { %v3943_v58 = vsub.f32 1.0, %v7130_v10  ;;  %v3951_v61 = vmul.f32 %v7130_v10, %v3949_v59 }
0x3770   : > { %v3934_v52 = vpop.permute.xlu1 %3933 }
0x3771   : > { %v3936_v53 = vmul.f32 %v7130_v10, %v3934_v52 }
0x3773   : > { %3938 = vrot.lane.b32.xlu0 %v3936_v53, %s8652_s5 }
0x37e5   : > { %v3939_v54 = vpop.permute.xlu0 %3938 }
0x37e6   : > { %v3941_v55 = vadd.f32 %v3939_v54, %v8122_v36 }
0x37e8   : > { %7131 = vtanh.f32 %v3941_v55 }
0x37f5   : > { %v7132_v56 = vpop.eup %7131 }
0x37f6   : > { %3945 = vrot.lane.b32.xlu1 %v7132_v56, %s8653_s3 }
0x3868   : > { %v3946_v60 = vpop.permute.xlu1 %3945 }
0x3869   : > { %v3948_v62 = vmul.f32 %v3946_v60, %v3943_v58 }
0x386b   : > { %v3952_v63 = vadd.f32 %v3951_v61, %v3948_v62 }
0x386d   : > { %v4379_v0 = vsel %vm2066_vm4, %v4378_v41, %v3952_v63  ;;  %v3954_v3 = vrot.slane %v3952_v63, 3  ;;  %v4055_v28 = vrot.slane %v3952_v63, 7 }
0x386f   : > { %3955 = vrot.lane.b32.xlu0 %v3954_v3, %s8653_s3 }
0x38e1   : > { %v3956_v5 = vpop.permute.xlu0 %3955 }
0x38e2   : > { %6727 = vmatmul.mubr.msk.f32.vlgmr.msra.gmra.mxu0 %vm1145_vm0, %v3956_v5 }
0x38e3   : > { %6741 = vmatpush3.msra.mxu0 %v8056_v17  ;;  %6748 = vmatprep.mubr.msk.f32.mxu0 %vm7345_vm1, %v7344_v2 }
0x38e4   : > { %6742 = vmatprep.subr.mxu0 %v7344_v2 }
0x38e5   : > { %6743 = vmatpush3.msra.mxu0 %v8059_v4 }
0x38e6   : > { %6744 = vmatprep.subr.mxu0 %v7344_v2 }
0x38e7   : > { %6745 = vmatpush3.msra.mxu0 %v8066_v6 }
0x38e8   : > { %6746 = vmatprep.subr.mxu0 %v7344_v2 }
0x38e9   : > { %6747 = vmatpush3.msra.mxu0 %v8073_v26 }
0x38ea   : > { %6762 = vmatprep.subr.mxu0 %v7344_v2 }
0x39a2   : > { %v4025_v7 = vpop.f32.mrf.mxu0 }
0x39a3   : > { %v4026_v11 = vadd.f32 %v4025_v7, %v8104_v13 }
0x39a4   : > { %v6728_v9 = vpop.f32.mrf.mxu0 }
0x39a5   : > { %v4030_v12 = vrot.slane %v4026_v11, 4 }
0x39a7   : > { %4039 = vrot.lane.b32.xlu1 %v4030_v12, %s8652_s5  ;;  %v4032_v15 = vadd.f32 %v4030_v12, %v8122_v36 }
0x39a9   : > { %v6142_v1 = vmul.f32 -1.442695, %v4032_v15 }
0x39ab   : > { %7133 = vpow2.f32 %v6142_v1 }
0x39b8   : > { %v7134_v18 = vpop.eup %7133 }
0x39b9   : > { %v4036_v20 = vadd.f32 1.0, %v7134_v18 }
0x39bb   : > { %7135 = vrcp.f32 %v4036_v20 }
0x39c8   : > { %v7136_v21 = vpop.eup %7135 }
0x39c9   : > { %v4049_v27 = vsub.f32 1.0, %v7136_v21  ;;  %v4057_v30 = vmul.f32 %v7136_v21, %v4055_v28 }
0x3a19   : > { %v4040_v22 = vpop.permute.xlu1 %4039 }
0x3a1a   : > { %v4042_v23 = vmul.f32 %v7136_v21, %v4040_v22 }
0x3a1c   : > { %4044 = vrot.lane.b32.xlu0 %v4042_v23, %s8652_s5 }
0x3a8e   : > { %v4045_v8 = vpop.permute.xlu0 %4044 }
0x3a8f   : > { %v4047_v24 = vadd.f32 %v4045_v8, %v8122_v36 }
0x3a91   : > { %7137 = vtanh.f32 %v4047_v24 }
0x3a9e   : > { %v7138_v25 = vpop.eup %7137 }
0x3a9f   : > { %4051 = vrot.lane.b32.xlu1 %v7138_v25, %s8653_s3 }
0x3b11   : > { %v4052_v29 = vpop.permute.xlu1 %4051 }
0x3b12   : > { %v4054_v33 = vmul.f32 %v4052_v29, %v4049_v27 }
0x3b14   : > { %v4058_v32 = vadd.f32 %v4057_v30, %v4054_v33 }
0x3b16   : > { %v4380_v14 = vsel %vm2068_vm5, %v4379_v0, %v4058_v32  ;;  %v4060_v34 = vrot.slane %v4058_v32, 4  ;;  %v4161_v46 = vrot.slane %v4058_v32, 7 }
0x3b18   : > { %4061 = vrot.lane.b32.xlu0 %v4060_v34, %s8653_s3 }
0x3b8a   : > { %v4062_v35 = vpop.permute.xlu0 %4061 }
0x3b8b   : > { %6738 = vmatmul.mubr.msk.f32.vlgmr.msra.gmra.mxu1 %vm1145_vm0, %v4062_v35  ;;  %v4392_v35 = vld [vmem:[%s8654_s11 + $0x18] sm:$0xff] }
0x3b8c   : > { %6752 = vmatpush3.msra.mxu1 %v8056_v17  ;;  %6759 = vmatprep.mubr.msk.f32.mxu1 %vm7345_vm1, %v7344_v2 }
0x3b8d   : > { %6753 = vmatprep.subr.mxu1 %v7344_v2 }
0x3b8e   : > { %6754 = vmatpush3.msra.mxu1 %v8059_v4 }
0x3b8f   : > { %6755 = vmatprep.subr.mxu1 %v7344_v2 }
0x3b90   : > { %6756 = vmatpush3.msra.mxu1 %v8066_v6 }
0x3b91   : > { %6757 = vmatprep.subr.mxu1 %v7344_v2 }
0x3b92   : > { %6758 = vmatpush3.msra.mxu1 %v8073_v26 }
0x3b93   : > { %6773 = vmatprep.subr.mxu1 %v7344_v2 }
0x3c4b   : > { %v4131_v16 = vpop.f32.mrf.mxu1 }
0x3c4c   : > { %v4132_v17 = vadd.f32 %v4131_v16, %v8104_v13  ;;  %v4391_v16 = vld [vmem:[%s8654_s11 + $0x10] sm:$0xff] }
0x3c4d   : > { %v6739_v37 = vpop.f32.mrf.mxu1 }
0x3c4e   : > { %v4136_v19 = vrot.slane %v4132_v17, 3  ;;  %v4387_v17 = vld [vmem:[%s8655_s7 + $0x18] sm:$0xff]  ;;  %v4386_v37 = vld [vmem:[%s8655_s7 + $0x10] sm:$0xff] }
0x3c50   : > { %4145 = vrot.lane.b32.xlu1 %v4136_v19, %s8652_s5  ;;  %v4138_v38 = vadd.f32 %v4136_v19, %v8122_v36  ;;  %v4390_v19 = vld [vmem:[%s8654_s11 + $0x8] sm:$0xff] }
0x3c52   : > { %v6144_v4 = vmul.f32 -1.442695, %v4138_v38  ;;  %v4385_v38 = vld [vmem:[%s8655_s7 + $0x8] sm:$0xff] }
0x3c54   : > { %7139 = vpow2.f32 %v6144_v4  ;;  %v4389_v4 = vld [vmem:[%s8654_s11] sm:$0xff]  ;;  %s7351_s11 = smov [#allocation2]  }
0x3c61   : > { %v7140_v39 = vpop.eup %7139 }
0x3c62   : > { %v4142_v40 = vadd.f32 1.0, %v7140_v39 }
0x3c64   : > { %7141 = vrcp.f32 %v4142_v40 }
0x3c71   : > { %v7142_v6 = vpop.eup %7141 }
0x3c72   : > { %v4155_v45 = vsub.f32 1.0, %v7142_v6  ;;  %v4163_v48 = vmul.f32 %v7142_v6, %v4161_v46 }
0x3cc2   : > { %v4146_v41 = vpop.permute.xlu1 %4145 }
0x3cc3   : > { %v4148_v42 = vmul.f32 %v7142_v6, %v4146_v41 }
0x3cc5   : > { %4150 = vrot.lane.b32.xlu0 %v4148_v42, %s8652_s5 }
0x3d37   : > { %v4151_v26 = vpop.permute.xlu0 %4150 }
0x3d38   : > { %v4153_v43 = vadd.f32 %v4151_v26, %v8122_v36 }
0x3d3a   : > { %7143 = vtanh.f32 %v4153_v43 }
0x3d47   : > { %v7144_v44 = vpop.eup %7143 }
0x3d48   : > { %4157 = vrot.lane.b32.xlu1 %v7144_v44, %s8653_s3 }
0x3dba   : > { %v4158_v47 = vpop.permute.xlu1 %4157 }
0x3dbb   : > { %v4160_v49 = vmul.f32 %v4158_v47, %v4155_v45  ;;  %v6151_v45 = vld [vmem:[%s8656_s8] ss:$0 sm:$0xff]  ;;  %s8659_s8 = sld [smem:[#allocation28_spill]] }
0x3dbd   : > { %v4164_v50 = vadd.f32 %v4163_v48, %v4160_v49 }
0x3dbf   : > { %v4381_v51 = vsel %vm2070_vm6, %v4380_v14, %v4164_v50  ;;  %v4166_v10 = vrot.slane %v4164_v50, 5  ;;  %v4267_v9 = vrot.slane %v4164_v50, 7 }
0x3dc1   : > { %4167 = vrot.lane.b32.xlu0 %v4166_v10, %s8653_s3 }
0x3e33   : > { %v4168_v52 = vpop.permute.xlu0 %4167 }
0x3e34   : > { %6749 = vmatmul.mubr.msk.f32.vlgmr.msra.gmra.mxu0 %vm1145_vm0, %v4168_v52 }
0x3e35   : > { %6770 = vmatprep.mubr.msk.f32.mxu0 %vm7345_vm1, %v7344_v2  ;;  %6763 = vmatpush3.msra.mxu0 %v4387_v17 }
0x3e36   : > { %6764 = vmatprep.subr.mxu0 %v7344_v2 }
0x3e37   : > { %6765 = vmatpush3.msra.mxu0 %v4386_v37 }
0x3e38   : > { %6766 = vmatprep.subr.mxu0 %v7344_v2 }
0x3e39   : > { %6767 = vmatpush3.msra.mxu0 %v4385_v38 }
0x3e3a   : > { %6768 = vmatprep.subr.mxu0 %v7344_v2 }
0x3ef4   : > { %v4237_v53 = vpop.f32.mrf.mxu0 }
0x3ef5   : > { %v4238_v54 = vadd.f32 %v4237_v53, %v8104_v13  ;;  %v4397_v53 = vld [vmem:[%s8658_s9 + $0x18] sm:$0xff] }
0x3ef6   : > { %v6750_v55 = vpop.f32.mrf.mxu0 }
0x3ef7   : > { %v4242_v56 = vrot.slane %v4238_v54, 2  ;;  %v4396_v54 = vld [vmem:[%s8658_s9 + $0x10] sm:$0xff]  ;;  %v4395_v55 = vld [vmem:[%s8658_s9 + $0x8] sm:$0xff] }
0x3ef9   : > { %4251 = vrot.lane.b32.xlu1 %v4242_v56, %s8652_s5  ;;  %v4244_v58 = vadd.f32 %v4242_v56, %v8122_v36  ;;  %v4394_v56 = vld [vmem:[%s8658_s9] sm:$0xff]  ;;  %s8661_s9 = sld [smem:[#allocation29_spill]] }
0x3efb   : > { %v6146_v59 = vmul.f32 -1.442695, %v4244_v58 }
0x3efd   : > { %7145 = vpow2.f32 %v6146_v59 }
0x3f0a   : > { %v7146_v60 = vpop.eup %7145 }
0x3f0b   : > { %v4248_v61 = vadd.f32 1.0, %v7146_v60 }
0x3f0d   : > { %7147 = vrcp.f32 %v4248_v61 }
0x3f1a   : > { %v7148_v62 = vpop.eup %7147 }
0x3f1b   : > { %v4261_v11 = vsub.f32 1.0, %v7148_v62  ;;  %v4269_v15 = vmul.f32 %v7148_v62, %v4267_v9 }
0x3f6b   : > { %v4252_v63 = vpop.permute.xlu1 %4251 }
0x3f6c   : > { %v4254_v0 = vmul.f32 %v7148_v62, %v4252_v63 }
0x3f6e   : > { %4256 = vrot.lane.b32.xlu0 %v4254_v0, %s8652_s5 }
0x3fe0   : > { %v4257_v3 = vpop.permute.xlu0 %4256 }
0x3fe1   : > { %v4259_v5 = vadd.f32 %v4257_v3, %v8122_v36 }
0x3fe3   : > { %7149 = vtanh.f32 %v4259_v5  ;;  %v6153_v5 = vld [vmem:[%s8659_s8] ss:$0 sm:$0xff]  ;;  %s8662_s8 = sld [smem:[#allocation32_spill]] }
0x3ff0   : > { %v7150_v7 = vpop.eup %7149 }
0x3ff1   : > { %4263 = vrot.lane.b32.xlu1 %v7150_v7, %s8653_s3 }
0x4063   : > { %v4264_v12 = vpop.permute.xlu1 %4263 }
0x4064   : > { %v4266_v1 = vmul.f32 %v4264_v12, %v4261_v11 }
0x4066   : > { %v4270_v18 = vadd.f32 %v4269_v15, %v4266_v1 }
0x4068   : > { %v4272_v20 = vrot.slane %v4270_v18, 6  ;;  %v4382_v21 = vsel %vm2072_vm7, %v4381_v51, %v4270_v18  ;;  %v4373_v6 = vrot.slane %v4270_v18, 7 }
0x406a   : > { %4273 = vrot.lane.b32.xlu0 %v4272_v20, %s8653_s3  ;;  %v4806_v20 = vld [vmem:[%s8661_s9 + $0x38] sm:$0xff] }
0x40dc   : > { %v4274_v22 = vpop.permute.xlu0 %4273 }
0x40dd   : > { %6760 = vmatmul.mubr.msk.f32.vlgmr.msra.gmra.mxu1 %vm1145_vm0, %v4274_v22 }
0x40de   : > { %6781 = vmatprep.mubr.msk.f32.mxu1 %vm7345_vm1, %v7344_v2  ;;  %6774 = vmatpush3.msra.mxu1 %v4392_v35 }
0x40df   : > { %6775 = vmatprep.subr.mxu1 %v7344_v2 }
0x40e0   : > { %6776 = vmatpush3.msra.mxu1 %v4391_v16 }
0x40e1   : > { %6777 = vmatprep.subr.mxu1 %v7344_v2 }
0x40e2   : > { %6778 = vmatpush3.msra.mxu1 %v4390_v19 }
0x40e3   : > { %6779 = vmatprep.subr.mxu1 %v7344_v2 }
0x40e4   : > { %6780 = vmatpush3.msra.mxu1 %v4389_v4 }
0x40e5   : > { %6782 = vmatmul.mubr.msk.f32.vlgmr.msra.gmra.mxu1 %vm1145_vm0, %v8001_v31  ;;  %6795 = vmatprep.subr.mxu1 %v7344_v2 }
0x40e6   : > { %6797 = vmatprep.mubr.msk.f32.mxu1 %vm7345_vm1, %v7344_v2 }
0x419d   : > { %v4343_v23 = vpop.f32.mrf.mxu1 }
0x419e   : > { %v4344_v8 = vadd.f32 %v4343_v23, %v8104_v13  ;;  %v4804_v23 = vld [vmem:[%s8661_s9 + $0x28] sm:$0xff] }
0x419f   : > { %v6761_v24 = vpop.f32.mrf.mxu1 }
0x41a0   : > { %v4348_v25 = vrot.slane %v4344_v8, 1  ;;  %v4803_v24 = vld [vmem:[%s8661_s9 + $0x20] sm:$0xff] }
0x41a2   : > { %4357 = vrot.lane.b32.xlu1 %v4348_v25, %s8652_s5  ;;  %v4350_v27 = vadd.f32 %v4348_v25, %v8122_v36  ;;  %v4802_v25 = vld [vmem:[%s8661_s9 + $0x18] sm:$0xff] }
0x41a4   : > { %v6148_v28 = vmul.f32 -1.442695, %v4350_v27  ;;  %v4801_v27 = vld [vmem:[%s8661_s9 + $0x10] sm:$0xff] }
0x41a5   : > { %v4552_v46 = vpop.f32.mrf.mxu1 }
0x41a6   : > { %7151 = vpow2.f32 %v6148_v28  ;;  %v4553_v47 = vadd.f32 %v6151_v45, %v4552_v46  ;;  %v4800_v28 = vld [vmem:[%s8661_s9 + $0x8] sm:$0xff] }
0x41a7   : > { %v6783_v48 = vpop.f32.mrf.mxu1 }
0x41a8   : > { %6796 = vmatpush3.xpose.msk.msra.mxu1 %vm1145_vm0, %v4553_v47 }
0x41a9   : > { %6800 = vmatprep.subr.mxu1 %v7344_v2 }
0x41b3   : > { %v7152_v29 = vpop.eup %7151 }
0x41b4   : > { %v4354_v30 = vadd.f32 1.0, %v7152_v29  ;;  %v4799_v29 = vld [vmem:[%s8661_s9] sm:$0xff] }
0x41b6   : > { %7153 = vrcp.f32 %v4354_v30 }
0x41c3   : > { %v7154_v33 = vpop.eup %7153 }
0x41c4   : > { %v4367_v40 = vsub.f32 1.0, %v7154_v33  ;;  %v4375_v42 = vmul.f32 %v7154_v33, %v4373_v6 }
0x4214   : > { %v4358_v32 = vpop.permute.xlu1 %4357 }
0x4215   : > { %v4360_v13 = vmul.f32 %v7154_v33, %v4358_v32  ;;  %v8357_v32 = vld [vmem:[%s8662_s8] sm:$0x1] }
0x4217   : > { %4362 = vrot.lane.b32.xlu0 %v4360_v13, %s8652_s5 }
0x4289   : > { %v4363_v14 = vpop.permute.xlu0 %4362 }
0x428a   : > { %v4365_v34 = vadd.f32 %v4363_v14, %v8122_v36  ;;  %v4384_v36 = vld [vmem:[%s8655_s7] sm:$0xff]  ;;  %s8657_s7 = sld [smem:[#allocation24_spill]] }
0x428b   : > { %6769 = vmatpush3.msra.mxu0 %v4384_v36 }
0x428c   : > { %7155 = vtanh.f32 %v4365_v34  ;;  %6784 = vmatprep.subr.mxu0 %v7344_v2 }
0x4290   : > { %v6149_v50 = vld [vmem:[%s8657_s7] ss:$0 sm:$0xff]  ;;  %s8660_s7 = sld [smem:[#allocation30_spill]] }
0x4296   : > { %v8309_v1 = vld [vmem:[%s8660_s7 + $0x18] sm:$0xff]  ;;  %v8312_v18 = vld [vmem:[%s8660_s7 + $0x10] sm:$0xff]  ;;  %v8319_v22 = vld [vmem:[%s8660_s7 + $0x8] sm:$0xff] }
0x4297   : > { %v8326_v8 = vld [vmem:[%s8660_s7] sm:$0xff]  ;;  %s8663_s7 = sld [smem:[#allocation31_spill]] }
0x4299   : > { %v7156_v39 = vpop.eup %7155 }
0x429a   : > { %4369 = vrot.lane.b32.xlu1 %v7156_v39, %s8653_s3 }
0x429d   : > { %v6158_v17 = vld [vmem:[%s8663_s7] ss:$0 sm:$0xff]  ;;  %s8602_s7 = sshll.u32 %s7559_s0, 7 }
0x430c   : > { %v4370_v41 = vpop.permute.xlu1 %4369 }
0x430d   : > { %v4372_v26 = vmul.f32 %v4370_v41, %v4367_v40 }
0x430f   : > { %v4376_v43 = vadd.f32 %v4375_v42, %v4372_v26 }
0x4311   : > { %v4383_v44 = vsel %vm2074_vm8, %v4382_v21, %v4376_v43  ;;  %v4805_v21 = vld [vmem:[%s8661_s9 + $0x30] sm:$0xff] }
0x4312   : > { %4406 = vrot.lane.b32.xlu0 %v4383_v44, %s8653_s3 }
0x4384   : > { %v8274_v49 = vpop.permute.xlu0 %4406 }
0x4385   : > { %6771 = vmatmul.mubr.msk.f32.vlgmr.msra.gmra.mxu0 %vm1145_vm0, %v8274_v49 }
0x4386   : > { %6792 = vmatprep.mubr.msk.f32.mxu0 %vm7345_vm1, %v7344_v2  ;;  %6785 = vmatpush3.msra.mxu0 %v4397_v53 }
0x4387   : > { %6786 = vmatprep.subr.mxu0 %v7344_v2 }
0x4388   : > { %6787 = vmatpush3.msra.mxu0 %v4396_v54 }
0x4389   : > { %6788 = vmatprep.subr.mxu0 %v7344_v2 }
0x438a   : > { %6789 = vmatpush3.msra.mxu0 %v4395_v55 }
0x438b   : > { %6790 = vmatprep.subr.mxu0 %v7344_v2 }
0x438c   : > { %6791 = vmatpush3.msra.mxu0 %v4394_v56 }
0x438d   : > { %6793 = vmatmul.mubr.msk.f32.vlgmr.msra.gmra.mxu0 %vm1145_vm0, %v8001_v31  ;;  %6805 = vmatprep.subr.mxu0 %v7344_v2 }
0x438e   : > { %6821 = vmatprep.mubr.msk.f32.mxu0 %vm7345_vm1, %v7344_v2  ;;  %6806 = vmatpush3.msra.mxu0 %v4806_v20 }
0x438f   : > { %6807 = vmatprep.subr.mxu0 %v7344_v2 }
0x4390   : > { %6808 = vmatpush3.msra.mxu0 %v4805_v21 }
0x4391   : > { %6809 = vmatprep.subr.mxu0 %v7344_v2 }
0x4392   : > { %6810 = vmatpush3.msra.mxu0 %v4804_v23 }
0x4393   : > { %6811 = vmatprep.subr.mxu0 %v7344_v2 }
0x4394   : > { %6812 = vmatpush3.msra.mxu0 %v4803_v24 }
0x4395   : > { %6813 = vmatprep.subr.mxu0 %v7344_v2 }
0x4396   : > { %6814 = vmatpush3.msra.mxu0 %v4802_v25 }
0x4397   : > { %6815 = vmatprep.subr.mxu0 %v7344_v2 }
0x4398   : > { %6816 = vmatpush3.msra.mxu0 %v4801_v27 }
0x4399   : > { %6817 = vmatprep.subr.mxu0 %v7344_v2 }
0x439a   : > { %6818 = vmatpush3.msra.mxu0 %v4800_v28 }
0x439b   : > { %6819 = vmatprep.subr.mxu0 %v7344_v2 }
0x439c   : > { %6820 = vmatpush3.msra.mxu0 %v4799_v29 }
0x439d   : > { %6846 = vmatprep.subr.mxu0 %v7344_v2 }
0x4445   : > { %v4476_v51 = vpop.f32.mrf.mxu0 }
0x4446   : > { %v4477_v10 = vadd.f32 %v6149_v50, %v4476_v51 }
0x4447   : > { %v6772_v52 = vpop.f32.mrf.mxu0 }
0x4448   : > { %6798 = vmatmul.mubr.msk.f32.vlgmr.msra.gmra.mxu1 %vm1145_vm0, %v4477_v10 }
0x4449   : > { %6802 = vmatprep.mubr.msk.f32.mxu1 %vm7345_vm1, %v7344_v2 }
0x444d   : > { %v4628_v7 = vpop.f32.mrf.mxu0 }
0x444e   : > { %v4629_v57 = vadd.f32 %v6153_v5, %v4628_v7 }
0x444f   : > { %v6794_v11 = vpop.f32.mrf.mxu0 }
0x4450   : > { %6801 = vmatpush3.msra.mxu1 %v4629_v57 }
0x4451   : > { %6824 = vmatprep.subr.mxu1 %v7344_v2 }
0x4508   : > { %v4704_v58 = vpop.f32.mrf.mxu1 }
0x4509   : > { %v4708_v59 = vsel %vm3350_vm10, %v4704_v58, -1e+30 }
0x450a   : > { %v4709_v60 = vsel %vm3352_vm11, %v4708_v59, -inf  ;;  %v6799_v61 = vpop.f32.mrf.mxu1 }
0x450b   : > { %4710 = vmax.xlane.f32.xlu1 %v4709_v60 }
0x4594   : > { %v4711_v62 = vpop.xlane.xlu1 %4710 }
0x4595   : > { %v4712_v63 = vsub.f32 %v4708_v59, %v4711_v62 }
0x4597   : > { %v4713_v0 = vmul.f32 1.442695, %v4712_v63 }
0x4599   : > { %7157 = vpow2.f32 %v4713_v0 }
0x45a6   : > { %v7158_v3 = vpop.eup %7157 }
0x45a7   : > { %v4715_v31 = vsel %vm3352_vm11, %v7158_v3, 0.0 }
0x45a8   : > { %4716 = vadd.xlane.f32.xlu0 %v4715_v31 }
0x4631   : > { %v4717_v9 = vpop.xlane.xlu0 %4716 }
0x4632   : > { %7159 = vrcp.f32 %v4717_v9 }
0x463f   : > { %v7160_v12 = vpop.eup %7159 }
0x4640   : > { %v8302_v15 = vmul.f32 %v7160_v12, %v7158_v3 }
0x4642   : > { %6803 = vmatmul.mubr.msk.f32.vlgmr.msra.gmra.mxu1 %vm3352_vm11, %v8302_v15 }
0x4643   : > { %6832 = vmatprep.mubr.msk.f32.mxu1 %vm7345_vm1, %v7344_v2  ;;  %6825 = vmatpush3.msra.mxu1 %v8309_v1 }
0x4644   : > { %6826 = vmatprep.subr.mxu1 %v7344_v2 }
0x4645   : > { %6827 = vmatpush3.msra.mxu1 %v8312_v18 }
0x4646   : > { %6828 = vmatprep.subr.mxu1 %v7344_v2 }
0x4647   : > { %6829 = vmatpush3.msra.mxu1 %v8319_v22 }
0x4648   : > { %6830 = vmatprep.subr.mxu1 %v7344_v2 }
0x4649   : > { %6831 = vmatpush3.msra.mxu1 %v8326_v8 }
0x464a   : > { %6833 = vmatmul.mubr.f32.vlgmr.msra.gmra.mxu1 %v7344_v2  ;;  %6835 = vmatprep.subr.mxu1 %v7344_v2 }
0x464b   : > { %6836 = vmatpush3.msra.mxu1 %v8309_v1  ;;  %6843 = vmatprep.mubr.msk.f32.mxu1 %vm7345_vm1, %v7344_v2 }
0x464c   : > { %6837 = vmatprep.subr.mxu1 %v7344_v2 }
0x464d   : > { %6838 = vmatpush3.msra.mxu1 %v8312_v18 }
0x464e   : > { %6839 = vmatprep.subr.mxu1 %v7344_v2 }
0x464f   : > { %6840 = vmatpush3.msra.mxu1 %v8319_v22 }
0x4650   : > { %6841 = vmatprep.subr.mxu1 %v7344_v2 }
0x4651   : > { %6842 = vmatpush3.msra.mxu1 %v8326_v8 }
0x4652   : > { %6857 = vmatprep.subr.mxu1 %v7344_v2 }
0x4702   : > { %v4789_v30 = vpop.f32.mrf.mxu1 }
0x4703   : > { %4795 = vrot.lane.b32.xlu0 %v4789_v30, %s8650_s1  ;;  %s8514_s1 = sand.u32 1, %s7299_s23  }
0x4704   : > { %v6804_v33 = vpop.f32.mrf.mxu1  ;;  %s5888_s9 = scalar_lea.sflag [#allocation3], %s8514_s1 }
0x470a   : > { %v4958_v13 = vpop.f32.mrf.mxu1 }
0x470b   : > { %v4959_v14 = vadd.f32 %v4958_v13, %v8357_v32 }
0x470c   : > { %v6834_v34 = vpop.f32.mrf.mxu1 }
0x470d   : > { %4970 = vrot.lane.b32.xlu1 %v4959_v14, %s8652_s5 }
0x4775   : > { %v4796_v35 = vpop.permute.xlu0 %4795 }
0x4776   : > { %v4798_v16 = vsel %vm1145_vm0, %v8274_v49, %v4796_v35 }
0x4777   : > { %6822 = vmatmul.mubr.msk.f32.vlgmr.msra.gmra.mxu0 %vm3463_vm12, %v4798_v16 }
0x4778   : > { %6847 = vmatpush3.msra.mxu0 %v8309_v1  ;;  %6854 = vmatprep.mubr.msk.f32.mxu0 %vm7345_vm1, %v7344_v2 }
0x4779   : > { %6848 = vmatprep.subr.mxu0 %v7344_v2 }
0x477a   : > { %6849 = vmatpush3.msra.mxu0 %v8312_v18 }
0x477b   : > { %6850 = vmatprep.subr.mxu0 %v7344_v2 }
0x477c   : > { %6851 = vmatpush3.msra.mxu0 %v8319_v22 }
0x477d   : > { %6852 = vmatprep.subr.mxu0 %v7344_v2 }
0x477e   : > { %6853 = vmatpush3.msra.mxu0 %v8326_v8 }
0x477f   : > { %6868 = vmatprep.subr.mxu0 %v7344_v2  ;;  %v4971_v6 = vpop.permute.xlu1 %4970 }
0x4837   : > { %v4888_v37 = vpop.f32.mrf.mxu0 }
0x4838   : > { %v8375_v19 = vadd.f32 %v6158_v17, %v4888_v37 }
0x4839   : > { %v6823_v38 = vpop.f32.mrf.mxu0 }
0x483a   : > { %v4962_v4 = vadd.f32 %v4959_v14, %v8375_v19 }
0x483c   : > { %v6160_v36 = vmul.f32 -1.442695, %v4962_v4 }
0x483e   : > { %7161 = vpow2.f32 %v6160_v36 }
0x484b   : > { %v7162_v39 = vpop.eup %7161 }
0x484c   : > { %v4966_v40 = vadd.f32 1.0, %v7162_v39 }
0x484e   : > { %7163 = vrcp.f32 %v4966_v40 }
0x485b   : > { %v7164_v41 = vpop.eup %7163 }
0x485c   : > { %v4973_v42 = vmul.f32 %v7164_v41, %v4971_v6  ;;  %v4980_v45 = vsub.f32 1.0, %v7164_v41  ;;  %v4986_v47 = vmul.f32 0.0, %v7164_v41 }
0x485e   : > { %4975 = vrot.lane.b32.xlu1 %v4973_v42, %s8652_s5 }
0x48d0   : > { %v4976_v26 = vpop.permute.xlu1 %4975 }
0x48d1   : > { %v4978_v43 = vadd.f32 %v4976_v26, %v8375_v19 }
0x48d3   : > { %7165 = vtanh.f32 %v4978_v43 }
0x48e0   : > { %v7166_v44 = vpop.eup %7165 }
0x48e1   : > { %4982 = vrot.lane.b32.xlu0 %v7166_v44, %s8653_s3 }
0x4953   : > { %v4983_v46 = vpop.permute.xlu0 %4982 }
0x4954   : > { %v4985_v48 = vmul.f32 %v4983_v46, %v4980_v45 }
0x4956   : > { %v8381_v49 = vadd.f32 %v4986_v47, %v4985_v48 }
0x4958   : > { %4989 = vrot.lane.b32.xlu1 %v8381_v49, %s8653_s3  ;;  %v5089_v31 = vrot.slane %v8381_v49, 7 }
0x49ca   : > { %v4990_v50 = vpop.permute.xlu1 %4989 }
0x49cb   : > { %6844 = vmatmul.mubr.msk.f32.vlgmr.msra.gmra.mxu1 %vm1145_vm0, %v4990_v50 }
0x49cc   : > { %6858 = vmatpush3.msra.mxu1 %v8309_v1  ;;  %6865 = vmatprep.mubr.msk.f32.mxu1 %vm7345_vm1, %v7344_v2 }
0x49cd   : > { %6859 = vmatprep.subr.mxu1 %v7344_v2 }
0x49ce   : > { %6860 = vmatpush3.msra.mxu1 %v8312_v18 }
0x49cf   : > { %6861 = vmatprep.subr.mxu1 %v7344_v2 }
0x49d0   : > { %6862 = vmatpush3.msra.mxu1 %v8319_v22 }
0x49d1   : > { %6863 = vmatprep.subr.mxu1 %v7344_v2 }
0x49d2   : > { %6864 = vmatpush3.msra.mxu1 %v8326_v8 }
0x49d3   : > { %6879 = vmatprep.subr.mxu1 %v7344_v2 }
0x4a8b   : > { %v5059_v51 = vpop.f32.mrf.mxu1 }
0x4a8c   : > { %v5060_v10 = vadd.f32 %v5059_v51, %v8357_v32 }
0x4a8d   : > { %v6845_v52 = vpop.f32.mrf.mxu1 }
0x4a8e   : > { %v5064_v53 = vrot.slane %v5060_v10, 7 }
0x4a90   : > { %5073 = vrot.lane.b32.xlu0 %v5064_v53, %s8652_s5  ;;  %v5066_v54 = vadd.f32 %v5064_v53, %v8375_v19 }
0x4a92   : > { %v6162_v55 = vmul.f32 -1.442695, %v5066_v54 }
0x4a94   : > { %7167 = vpow2.f32 %v6162_v55 }
0x4aa1   : > { %v7168_v56 = vpop.eup %7167 }
0x4aa2   : > { %v5070_v58 = vadd.f32 1.0, %v7168_v56 }
0x4aa4   : > { %7169 = vrcp.f32 %v5070_v58 }
0x4ab1   : > { %v7170_v59 = vpop.eup %7169 }
0x4ab2   : > { %v5083_v3 = vsub.f32 1.0, %v7170_v59  ;;  %v5091_v57 = vmul.f32 %v7170_v59, %v5089_v31 }
0x4b02   : > { %v5074_v60 = vpop.permute.xlu0 %5073 }
0x4b03   : > { %v5076_v61 = vmul.f32 %v7170_v59, %v5074_v60 }
0x4b05   : > { %5078 = vrot.lane.b32.xlu1 %v5076_v61, %s8652_s5 }
0x4b77   : > { %v5079_v62 = vpop.permute.xlu1 %5078 }
0x4b78   : > { %v5081_v63 = vadd.f32 %v5079_v62, %v8375_v19 }
0x4b7a   : > { %7171 = vtanh.f32 %v5081_v63 }
0x4b87   : > { %v7172_v0 = vpop.eup %7171 }
0x4b88   : > { %5085 = vrot.lane.b32.xlu0 %v7172_v0, %s8653_s3 }
0x4bfa   : > { %v5086_v5 = vpop.permute.xlu0 %5085 }
0x4bfb   : > { %v5088_v7 = vmul.f32 %v5086_v5, %v5083_v3 }
0x4bfd   : > { %v5092_v11 = vadd.f32 %v5091_v57, %v5088_v7 }
0x4bff   : > { %v5094_v9 = vrot.slane %v5092_v11, 1  ;;  %v5195_v17 = vrot.slane %v5092_v11, 7  ;;  %v5729_v39 = vsel %vm2062_vm2, %v8381_v49, %v5092_v11 }
0x4c01   : > { %5095 = vrot.lane.b32.xlu1 %v5094_v9, %s8653_s3 }
0x4c73   : > { %v5096_v12 = vpop.permute.xlu1 %5095 }
0x4c74   : > { %6855 = vmatmul.mubr.msk.f32.vlgmr.msra.gmra.mxu0 %vm1145_vm0, %v5096_v12 }
0x4c75   : > { %6869 = vmatpush3.msra.mxu0 %v8309_v1  ;;  %6876 = vmatprep.mubr.msk.f32.mxu0 %vm7345_vm1, %v7344_v2 }
0x4c76   : > { %6870 = vmatprep.subr.mxu0 %v7344_v2 }
0x4c77   : > { %6871 = vmatpush3.msra.mxu0 %v8312_v18 }
0x4c78   : > { %6872 = vmatprep.subr.mxu0 %v7344_v2 }
0x4c79   : > { %6873 = vmatpush3.msra.mxu0 %v8319_v22 }
0x4c7a   : > { %6874 = vmatprep.subr.mxu0 %v7344_v2 }
0x4c7b   : > { %6875 = vmatpush3.msra.mxu0 %v8326_v8 }
0x4c7c   : > { %6890 = vmatprep.subr.mxu0 %v7344_v2 }
0x4d34   : > { %v5165_v20 = vpop.f32.mrf.mxu0 }
0x4d35   : > { %v5166_v21 = vadd.f32 %v5165_v20, %v8357_v32 }
0x4d36   : > { %v6856_v23 = vpop.f32.mrf.mxu0 }
0x4d37   : > { %v5170_v24 = vrot.slane %v5166_v21, 6 }
0x4d39   : > { %5179 = vrot.lane.b32.xlu0 %v5170_v24, %s8652_s5  ;;  %v5172_v25 = vadd.f32 %v5170_v24, %v8375_v19 }
0x4d3b   : > { %v6164_v27 = vmul.f32 -1.442695, %v5172_v25 }
0x4d3d   : > { %7173 = vpow2.f32 %v6164_v27 }
0x4d4a   : > { %v7174_v28 = vpop.eup %7173 }
0x4d4b   : > { %v5176_v29 = vadd.f32 1.0, %v7174_v28 }
0x4d4d   : > { %7175 = vrcp.f32 %v5176_v29 }
0x4d5a   : > { %v7176_v30 = vpop.eup %7175 }
0x4d5b   : > { %v5189_v16 = vsub.f32 1.0, %v7176_v30  ;;  %v5197_v38 = vmul.f32 %v7176_v30, %v5195_v17 }
0x4dab   : > { %v5180_v33 = vpop.permute.xlu0 %5179 }
0x4dac   : > { %v5182_v13 = vmul.f32 %v7176_v30, %v5180_v33 }
0x4dae   : > { %5184 = vrot.lane.b32.xlu1 %v5182_v13, %s8652_s5 }
0x4e20   : > { %v5185_v14 = vpop.permute.xlu1 %5184 }
0x4e21   : > { %v5187_v34 = vadd.f32 %v5185_v14, %v8375_v19 }
0x4e23   : > { %7177 = vtanh.f32 %v5187_v34 }
0x4e30   : > { %v7178_v35 = vpop.eup %7177 }
0x4e31   : > { %5191 = vrot.lane.b32.xlu0 %v7178_v35, %s8653_s3 }
0x4ea3   : > { %v5192_v37 = vpop.permute.xlu0 %5191 }
0x4ea4   : > { %v5194_v4 = vmul.f32 %v5192_v37, %v5189_v16 }
0x4ea6   : > { %v5198_v36 = vadd.f32 %v5197_v38, %v5194_v4 }
0x4ea8   : > { %v5200_v40 = vrot.slane %v5198_v36, 2  ;;  %v5730_v6 = vsel %vm2064_vm3, %v5729_v39, %v5198_v36  ;;  %v5301_v55 = vrot.slane %v5198_v36, 7 }
0x4eaa   : > { %5201 = vrot.lane.b32.xlu1 %v5200_v40, %s8653_s3 }
0x4f1c   : > { %v5202_v41 = vpop.permute.xlu1 %5201 }
0x4f1d   : > { %6866 = vmatmul.mubr.msk.f32.vlgmr.msra.gmra.mxu1 %vm1145_vm0, %v5202_v41 }
0x4f1e   : > { %6880 = vmatpush3.msra.mxu1 %v8309_v1  ;;  %6887 = vmatprep.mubr.msk.f32.mxu1 %vm7345_vm1, %v7344_v2 }
0x4f1f   : > { %6881 = vmatprep.subr.mxu1 %v7344_v2 }
0x4f20   : > { %6882 = vmatpush3.msra.mxu1 %v8312_v18 }
0x4f21   : > { %6883 = vmatprep.subr.mxu1 %v7344_v2 }
0x4f22   : > { %6884 = vmatpush3.msra.mxu1 %v8319_v22 }
0x4f23   : > { %6885 = vmatprep.subr.mxu1 %v7344_v2 }
0x4f24   : > { %6886 = vmatpush3.msra.mxu1 %v8326_v8 }
0x4f25   : > { %6901 = vmatprep.subr.mxu1 %v7344_v2 }
0x4fdd   : > { %v5271_v42 = vpop.f32.mrf.mxu1 }
0x4fde   : > { %v5272_v26 = vadd.f32 %v5271_v42, %v8357_v32 }
0x4fdf   : > { %v6867_v43 = vpop.f32.mrf.mxu1 }
0x4fe0   : > { %v5276_v44 = vrot.slane %v5272_v26, 5 }
0x4fe2   : > { %5285 = vrot.lane.b32.xlu0 %v5276_v44, %s8652_s5  ;;  %v5278_v45 = vadd.f32 %v5276_v44, %v8375_v19 }
0x4fe4   : > { %v6166_v46 = vmul.f32 -1.442695, %v5278_v45 }
0x4fe6   : > { %7179 = vpow2.f32 %v6166_v46 }
0x4ff3   : > { %v7180_v47 = vpop.eup %7179 }
0x4ff4   : > { %v5282_v48 = vadd.f32 1.0, %v7180_v47 }
0x4ff6   : > { %7181 = vrcp.f32 %v5282_v48 }
0x5003   : > { %v7182_v49 = vpop.eup %7181 }
0x5004   : > { %v5295_v54 = vsub.f32 1.0, %v7182_v49  ;;  %v5303_v58 = vmul.f32 %v7182_v49, %v5301_v55 }
0x5054   : > { %v5286_v50 = vpop.permute.xlu0 %5285 }
0x5055   : > { %v5288_v51 = vmul.f32 %v7182_v49, %v5286_v50 }
0x5057   : > { %5290 = vrot.lane.b32.xlu1 %v5288_v51, %s8652_s5 }
0x50c9   : > { %v5291_v10 = vpop.permute.xlu1 %5290 }
0x50ca   : > { %v5293_v52 = vadd.f32 %v5291_v10, %v8375_v19 }
0x50cc   : > { %7183 = vtanh.f32 %v5293_v52 }
0x50d9   : > { %v7184_v53 = vpop.eup %7183 }
0x50da   : > { %5297 = vrot.lane.b32.xlu0 %v7184_v53, %s8653_s3 }
0x514c   : > { %v5298_v56 = vpop.permute.xlu0 %5297 }
0x514d   : > { %v5300_v59 = vmul.f32 %v5298_v56, %v5295_v54 }
0x514f   : > { %v5304_v60 = vadd.f32 %v5303_v58, %v5300_v59 }
0x5151   : > { %v5306_v61 = vrot.slane %v5304_v60, 3  ;;  %v5731_v62 = vsel %vm2066_vm4, %v5730_v6, %v5304_v60  ;;  %v5407_v28 = vrot.slane %v5304_v60, 7 }
0x5153   : > { %5307 = vrot.lane.b32.xlu1 %v5306_v61, %s8653_s3 }
0x51c5   : > { %v5308_v63 = vpop.permute.xlu1 %5307 }
0x51c6   : > { %6877 = vmatmul.mubr.msk.f32.vlgmr.msra.gmra.mxu0 %vm1145_vm0, %v5308_v63 }
0x51c7   : > { %6891 = vmatpush3.msra.mxu0 %v8309_v1  ;;  %6898 = vmatprep.mubr.msk.f32.mxu0 %vm7345_vm1, %v7344_v2 }
0x51c8   : > { %6892 = vmatprep.subr.mxu0 %v7344_v2 }
0x51c9   : > { %6893 = vmatpush3.msra.mxu0 %v8312_v18 }
0x51ca   : > { %6894 = vmatprep.subr.mxu0 %v7344_v2 }
0x51cb   : > { %6895 = vmatpush3.msra.mxu0 %v8319_v22 }
0x51cc   : > { %6896 = vmatprep.subr.mxu0 %v7344_v2 }
0x51cd   : > { %6897 = vmatpush3.msra.mxu0 %v8326_v8 }
0x51ce   : > { %6912 = vmatprep.subr.mxu0 %v7344_v2 }
0x5286   : > { %v5377_v0 = vpop.f32.mrf.mxu0 }
0x5287   : > { %v5378_v3 = vadd.f32 %v5377_v0, %v8357_v32 }
0x5288   : > { %v6878_v31 = vpop.f32.mrf.mxu0 }
0x5289   : > { %v5382_v5 = vrot.slane %v5378_v3, 4 }
0x528b   : > { %5391 = vrot.lane.b32.xlu0 %v5382_v5, %s8652_s5  ;;  %v5384_v7 = vadd.f32 %v5382_v5, %v8375_v19 }
0x528d   : > { %v6168_v57 = vmul.f32 -1.442695, %v5384_v7 }
0x528f   : > { %7185 = vpow2.f32 %v6168_v57 }
0x529c   : > { %v7186_v11 = vpop.eup %7185 }
0x529d   : > { %v5388_v9 = vadd.f32 1.0, %v7186_v11 }
0x529f   : > { %7187 = vrcp.f32 %v5388_v9 }
0x52ac   : > { %v7188_v12 = vpop.eup %7187 }
0x52ad   : > { %v5401_v27 = vsub.f32 1.0, %v7188_v12  ;;  %v5409_v30 = vmul.f32 %v7188_v12, %v5407_v28 }
0x52fd   : > { %v5392_v20 = vpop.permute.xlu0 %5391 }
0x52fe   : > { %v5394_v21 = vmul.f32 %v7188_v12, %v5392_v20 }
0x5300   : > { %5396 = vrot.lane.b32.xlu1 %v5394_v21, %s8652_s5 }
0x5372   : > { %v5397_v23 = vpop.permute.xlu1 %5396 }
0x5373   : > { %v5399_v24 = vadd.f32 %v5397_v23, %v8375_v19 }
0x5375   : > { %7189 = vtanh.f32 %v5399_v24 }
0x5382   : > { %v7190_v25 = vpop.eup %7189 }
0x5383   : > { %5403 = vrot.lane.b32.xlu0 %v7190_v25, %s8653_s3 }
0x53f5   : > { %v5404_v29 = vpop.permute.xlu0 %5403 }
0x53f6   : > { %v5406_v33 = vmul.f32 %v5404_v29, %v5401_v27 }
0x53f8   : > { %v5410_v13 = vadd.f32 %v5409_v30, %v5406_v33 }
0x53fa   : > { %v5412_v14 = vrot.slane %v5410_v13, 4  ;;  %v5732_v34 = vsel %vm2068_vm5, %v5731_v62, %v5410_v13  ;;  %v5513_v26 = vrot.slane %v5410_v13, 7 }
0x53fc   : > { %5413 = vrot.lane.b32.xlu1 %v5412_v14, %s8653_s3 }
0x546e   : > { %v5414_v35 = vpop.permute.xlu1 %5413 }
0x546f   : > { %6888 = vmatmul.mubr.msk.f32.vlgmr.msra.gmra.mxu1 %vm1145_vm0, %v5414_v35  ;;  %v5738_v35 = vld [vmem:[%s7521_s27 + $0x10] sm:$0xff] }
0x5470   : > { %6902 = vmatpush3.msra.mxu1 %v8309_v1  ;;  %6909 = vmatprep.mubr.msk.f32.mxu1 %vm7345_vm1, %v7344_v2 }
0x5471   : > { %6903 = vmatprep.subr.mxu1 %v7344_v2 }
0x5472   : > { %6904 = vmatpush3.msra.mxu1 %v8312_v18 }
0x5473   : > { %6905 = vmatprep.subr.mxu1 %v7344_v2 }
0x5474   : > { %6906 = vmatpush3.msra.mxu1 %v8319_v22 }
0x5475   : > { %6907 = vmatprep.subr.mxu1 %v7344_v2 }
0x5476   : > { %6908 = vmatpush3.msra.mxu1 %v8326_v8 }
0x552f   : > { %v5483_v16 = vpop.f32.mrf.mxu1 }
0x5530   : > { %v5484_v17 = vadd.f32 %v5483_v16, %v8357_v32  ;;  %v5737_v16 = vld [vmem:[%s7521_s27 + $0x8] sm:$0xff] }
0x5531   : > { %v6889_v37 = vpop.f32.mrf.mxu1 }
0x5532   : > { %v5488_v1 = vrot.slane %v5484_v17, 3  ;;  %v5736_v17 = vld [vmem:[%s7521_s27] sm:$0xff] }
0x5534   : > { %5497 = vrot.lane.b32.xlu0 %v5488_v1, %s8652_s5  ;;  %v5490_v38 = vadd.f32 %v5488_v1, %v8375_v19 }
0x5536   : > { %v6170_v4 = vmul.f32 -1.442695, %v5490_v38 }
0x5538   : > { %7191 = vpow2.f32 %v6170_v4 }
0x5545   : > { %v7192_v18 = vpop.eup %7191 }
0x5546   : > { %v5494_v36 = vadd.f32 1.0, %v7192_v18 }
0x5548   : > { %7193 = vrcp.f32 %v5494_v36 }
0x5555   : > { %v7194_v39 = vpop.eup %7193 }
0x5556   : > { %v5507_v42 = vsub.f32 1.0, %v7194_v39  ;;  %v5515_v44 = vmul.f32 %v7194_v39, %v5513_v26 }
0x55a6   : > { %v5498_v22 = vpop.permute.xlu0 %5497 }
0x55a7   : > { %v5500_v40 = vmul.f32 %v7194_v39, %v5498_v22 }
0x55a9   : > { %5502 = vrot.lane.b32.xlu1 %v5500_v40, %s8652_s5  ;;  %v6175_v40 = vld [vmem:[%s8664_s4] ss:$0 sm:$0xff]  ;;  %s8523_s4 = scalar_lea.hbm %s8632_s17, %s8602_s7 }
0x561b   : > { %v5503_v8 = vpop.permute.xlu1 %5502 }
0x561c   : > { %v5505_v6 = vadd.f32 %v5503_v8, %v8375_v19 }
0x561e   : > { %7195 = vtanh.f32 %v5505_v6 }
0x562b   : > { %v7196_v41 = vpop.eup %7195 }
0x562c   : > { %5509 = vrot.lane.b32.xlu0 %v7196_v41, %s8653_s3 }
0x569e   : > { %v5510_v43 = vpop.permute.xlu0 %5509 }
0x569f   : > { %v5512_v45 = vmul.f32 %v5510_v43, %v5507_v42 }
0x56a1   : > { %v5516_v46 = vadd.f32 %v5515_v44, %v5512_v45 }
0x56a3   : > { %v5518_v47 = vrot.slane %v5516_v46, 5  ;;  %v5733_v48 = vsel %vm2070_vm6, %v5732_v34, %v5516_v46  ;;  %v5619_v3 = vrot.slane %v5516_v46, 7  ;;  %v5739_v34 = vld [vmem:[%s7521_s27 + $0x18] sm:$0xff] }
0x56a5   : > { %5519 = vrot.lane.b32.xlu1 %v5518_v47, %s8653_s3 }
0x5717   : > { %v5520_v49 = vpop.permute.xlu1 %5519 }
0x5718   : > { %6899 = vmatmul.mubr.msk.f32.vlgmr.msra.gmra.mxu0 %vm1145_vm0, %v5520_v49 }
0x5719   : > { %6920 = vmatprep.mubr.msk.f32.mxu0 %vm7345_vm1, %v7344_v2  ;;  %6913 = vmatpush3.msra.mxu0 %v5739_v34 }
0x571a   : > { %6914 = vmatprep.subr.mxu0 %v7344_v2 }
0x571b   : > { %6915 = vmatpush3.msra.mxu0 %v5738_v35 }
0x571c   : > { %6916 = vmatprep.subr.mxu0 %v7344_v2 }
0x571d   : > { %6917 = vmatpush3.msra.mxu0 %v5737_v16 }
0x571e   : > { %6918 = vmatprep.subr.mxu0 %v7344_v2 }
0x571f   : > { %6919 = vmatpush3.msra.mxu0 %v5736_v17 }
0x57d8   : > { %v5589_v50 = vpop.f32.mrf.mxu0 }
0x57d9   : > { %v5590_v51 = vadd.f32 %v5589_v50, %v8357_v32 }
0x57da   : > { %v6900_v10 = vpop.f32.mrf.mxu0 }
0x57db   : > { %v5594_v52 = vrot.slane %v5590_v51, 2 }
0x57dd   : > { %5603 = vrot.lane.b32.xlu0 %v5594_v52, %s8652_s5  ;;  %v5596_v53 = vadd.f32 %v5594_v52, %v8375_v19 }
0x57df   : > { %v6172_v54 = vmul.f32 -1.442695, %v5596_v53 }
0x57e1   : > { %7197 = vpow2.f32 %v6172_v54 }
0x57ee   : > { %v7198_v55 = vpop.eup %7197 }
0x57ef   : > { %v5600_v56 = vadd.f32 1.0, %v7198_v55 }
0x57f1   : > { %7199 = vrcp.f32 %v5600_v56 }
0x57fe   : > { %v7200_v58 = vpop.eup %7199 }
0x57ff   : > { %v5613_v0 = vsub.f32 1.0, %v7200_v58  ;;  %v5621_v5 = vmul.f32 %v7200_v58, %v5619_v3 }
0x584f   : > { %v5604_v59 = vpop.permute.xlu0 %5603 }
0x5850   : > { %v5606_v60 = vmul.f32 %v7200_v58, %v5604_v59 }
0x5852   : > { %5608 = vrot.lane.b32.xlu1 %v5606_v60, %s8652_s5 }
0x58c4   : > { %v5609_v61 = vpop.permute.xlu1 %5608 }
0x58c5   : > { %v5611_v62 = vadd.f32 %v5609_v61, %v8375_v19 }
0x58c7   : > { %7201 = vtanh.f32 %v5611_v62 }
0x58d4   : > { %v7202_v63 = vpop.eup %7201 }
0x58d5   : > { %5615 = vrot.lane.b32.xlu0 %v7202_v63, %s8653_s3 }
0x5947   : > { %v5616_v31 = vpop.permute.xlu0 %5615 }
0x5948   : > { %v5618_v7 = vmul.f32 %v5616_v31, %v5613_v0 }
0x594a   : > { %v5622_v57 = vadd.f32 %v5621_v5, %v5618_v7 }
0x594c   : > { %v5624_v11 = vrot.slane %v5622_v57, 6  ;;  %v5734_v9 = vsel %vm2072_vm7, %v5733_v48, %v5622_v57  ;;  %v5725_v1 = vrot.slane %v5622_v57, 7 }
0x594e   : > { %5625 = vrot.lane.b32.xlu1 %v5624_v11, %s8653_s3 }
0x59c0   : > { %v5626_v12 = vpop.permute.xlu1 %5625 }
0x59c1   : > { %6910 = vmatmul.mubr.msk.f32.vlgmr.msra.gmra.mxu1 %vm1145_vm0, %v5626_v12 }
0x5a81   : > { %v5695_v20 = vpop.f32.mrf.mxu1 }
0x5a82   : > { %v5696_v21 = vadd.f32 %v5695_v20, %v8357_v32 }
0x5a83   : > { %v6911_v23 = vpop.f32.mrf.mxu1 }
0x5a84   : > { %v5700_v24 = vrot.slane %v5696_v21, 1 }
0x5a86   : > { %5709 = vrot.lane.b32.xlu0 %v5700_v24, %s8652_s5  ;;  %v5702_v25 = vadd.f32 %v5700_v24, %v8375_v19 }
0x5a88   : > { %v6174_v27 = vmul.f32 -1.442695, %v5702_v25 }
0x5a8a   : > { %7203 = vpow2.f32 %v6174_v27 }
0x5a97   : > { %v7204_v28 = vpop.eup %7203 }
0x5a98   : > { %v5706_v29 = vadd.f32 1.0, %v7204_v28 }
0x5a9a   : > { %7205 = vrcp.f32 %v5706_v29 }
0x5aa7   : > { %v7206_v30 = vpop.eup %7205 }
0x5aa8   : > { %v5727_v4 = vmul.f32 %v7206_v30, %v5725_v1 }
0x5af8   : > { %v5710_v33 = vpop.permute.xlu0 %5709 }
0x5af9   : > { %v5712_v13 = vmul.f32 %v7206_v30, %v5710_v33 }
0x5afb   : > { %5714 = vrot.lane.b32.xlu1 %v5712_v13, %s8652_s5  ;;  %s7350_s5 = smov 117  }
0x5b6d   : > { %v5715_v32 = vpop.permute.xlu1 %5714 }
0x5b6e   : > { %v5717_v14 = vadd.f32 %v5715_v32, %v8375_v19  ;;  %v5719_v19 = vsub.f32 1.0, %v7206_v30 }
0x5b70   : > { %7207 = vtanh.f32 %v5717_v14 }
0x5b7d   : > { %v7208_v37 = vpop.eup %7207 }
0x5b7e   : > { %5721 = vrot.lane.b32.xlu0 %v7208_v37, %s8653_s3 }
0x5bf0   : > { %v5722_v38 = vpop.permute.xlu0 %5721 }
0x5bf1   : > { %v5724_v18 = vmul.f32 %v5722_v38, %v5719_v19 }
0x5bf3   : > { %v5728_v36 = vadd.f32 %v5727_v4, %v5724_v18 }
0x5bf5   : > { %v5735_v39 = vsel %vm2074_vm8, %v5734_v9, %v5728_v36 }
0x5bf6   : > { %5748 = vrot.lane.b32.xlu1 %v5735_v39, %s8653_s3  ;;  %s8600_s3 = sshll.u32 %s8514_s1, 3 }
0x5bf7   : > { %s1102_s8 = scalar_lea.vmem [#allocation2], %s8600_s3  ;;  %s7221_s3 = sshll.u32 %s7351_s11, 4  ;;  %s7222_s3 = int_to_ptr.vmem [resolvable:$false] %s7221_s3 }
0x5bf8   : > { %s7223_s12 = scalar_lea.vmem %s7222_s3, 256 }
0x5c68   : > { %v5749_v22 = vpop.permute.xlu1 %5748 }
0x5c69   : > { %6921 = vmatmul.mubr.msk.f32.vlgmr.msra.gmra.mxu0 %vm1145_vm0, %v5749_v22  ;;  %vm5852_vm0 = vcmask 146432  }
0x5d29   : > { %v5818_v8 = vpop.f32.mrf.mxu0 }
0x5d2a   : > { %v5819_v2 = vadd.f32 %v6175_v40, %v5818_v8 }
0x5d2b   : > { %v6922_v6 = vpop.f32.mrf.mxu0 }
0x5d2c   : > { %v5835_v41 = vsel %vm5834_vm13, %v5819_v2, -inf  ;;  %v5823_v42 = vsel %vm5822_vm14, %v5819_v2, -inf }
0x5d2d   : > { %5836 = vmax.xlane.f32.xlu0 %v5835_v41  ;;  %5824 = vmax.xlane.f32.xlu1 %v5823_v42 }
0x5db6   : > { %v5837_v26 = vpop.xlane.xlu0 %5836  ;;  %v5825_v43 = vpop.xlane.xlu1 %5824 }
0x5db7   : > { %v5838_v44 = vsub.f32 %v5819_v2, %v5837_v26  ;;  %v5826_v45 = vsub.f32 %v5819_v2, %v5825_v43 }
0x5db9   : > { %v5839_v46 = vmul.f32 1.442695, %v5838_v44  ;;  %v5827_v47 = vmul.f32 1.442695, %v5826_v45 }
0x5dbb   : > { %7209 = vpow2.f32 %v5839_v46 }
0x5dbc   : > { %7211 = vpow2.f32 %v5827_v47 }
0x5dc8   : > { %v7210_v48 = vpop.eup %7209 }
0x5dc9   : > { %v7212_v49 = vpop.eup %7211  ;;  %5842 = vrot.lane.b32.xlu0 %v7210_v48, %s7350_s5  ;;  %s5906_s5 = sshll.u32 %s1102_s8, 4  ;;  %s5907_s5 = int_to_ptr.vmem [resolvable:$true] %s5906_s5 }
0x5dca   : > { %v5829_v50 = vsel %vm5822_vm14, %v7212_v49, 0.0  ;;  %s7217_s10 = scalar_lea.vmem %s5907_s5, 128  ;;  %p7224_p0 = scmp.lt.s32.totalorder %s5907_s5, %s7222_s3 }
0x5dcb   : > { %5830 = vadd.xlane.f32.xlu1 %v5829_v50  ;;  %p7218_p11 = scmp.ne.s32.totalorder %s5907_s5, %s7217_s10  ;;  %p7225_p1 = scmp.lt.s32.totalorder %s7223_s12, %s7217_s10 }
0x5dcd   : > { %p7219_p12 = pnand %p7218_p11, %p7576_p5  ;;  %p7226_p2 = por %p7225_p1, %p7224_p0 }
0x5dcf   : > { %p7220_p13 = pneg %p7219_p12 }
0x5dd1   : > { %p7227_p3 = pnand %p7226_p2, %p7220_p13 }
0x5e3b   : > { %v5843_v51 = vpop.permute.xlu0 %5842 }
0x5e3c   : > { %v5846_v10 = vsel %vm5845_vm15, %v5843_v51, 0.0 }
0x5e3d   : > { %5847 = vadd.xlane.f32.xlu1 %v5846_v10 }
0x5e54   : > { %v5831_v52 = vpop.xlane.xlu1 %5830 }
0x5e55   : > { %7213 = vrcp.f32 %v5831_v52 }
0x5e62   : > { %v7214_v54 = vpop.eup %7213 }
0x5e63   : > { %v5833_v56 = vmul.f32 %v7214_v54, %v7212_v49 }
0x5e70   : > { %5854 = vxpose.xlu1.b32.start.end [1/1] (short) (narrow) %v8302_v15, 8 }
0x5ec6   : > { %v5848_v53 = vpop.xlane.xlu1 %5847 }
0x5ec7   : > { %7215 = vrcp.f32 %v5848_v53 }
0x5ed4   : > { %v7216_v55 = vpop.eup %7215 }
0x5ed5   : > { %v5850_v58 = vmul.f32 %v7216_v55, %v7210_v48 }
0x5ed7   : > { %v5851_v15 = vsel %vm5822_vm14, %v5833_v56, %v5850_v58 }
0x5ed8   : > { %5853 = vst.msk [vmem:[%s1102_s8] sm:$0xff] %vm5852_vm0, %v5851_v15 }
0x5ed9   : > { %7230 = shalt.err (!%p7227_p3)
}
0x5eda   : > { %s7231_s8 = scalar_lea.hbm %s8523_s4, 128  ;;  %s7235_s7 = scalar_lea.hbm %s8632_s17, 256 }
0x5edb   : > { %p7232_p4 = scmp.ne.s32.totalorder %s8523_s4, %s7231_s8  ;;  %p7236_p9 = scmp.lt.s32.totalorder %s8523_s4, %s8632_s17 }
0x5edc   : > { %p7237_p10 = scmp.lt.s32.totalorder %s7235_s7, %s7231_s8 }
0x5edd   : > { %p7233_p7 = pnand %p7232_p4, %p7576_p5 }
0x5ede   : > { %p7238_p11 = por %p7237_p10, %p7236_p9 }
0x5edf   : > { %p7234_p8 = pneg %p7233_p7 }
0x5ee1   : > { %p7239_p12 = pnand %p7238_p11, %p7234_p8 }
0x5ee3   : > { %7242 = shalt.err (!%p7239_p12)
}
0x5ee4   : > { %6923 = dma.vmem_to_hbm [thread:$0]  (%p7576_p5), %s5907_s5, 128, %s8523_s4, %s5888_s9  }
0x5ee5   : > { %s8665_s12 = sshll.u32 %s8514_s1, 3  ;;  %s8666_s3 = sshll.u32 %s7559_s0, 7 }
0x5ee6   : > { %s1109_s10 = scalar_lea.vmem [#allocation4], %s8665_s12  ;;  %s8544_s13 = scalar_lea.hbm %s7536_s6, %s8666_s3 }
0x5ee7   : > { %s5919_s11 = sshll.u32 %s1109_s10, 4  ;;  %s5893_s7 = scalar_lea.sflag [#allocation5], %s8514_s1  ;;  %s5920_s11 = int_to_ptr.vmem [resolvable:$true] %s5919_s11 }
0x5ee8   : > { %s7243_s8 = scalar_lea.vmem %s5920_s11, 128  ;;  %s7352_s14 = smov [#allocation4]  }
0x5ee9   : > { %p7244_p13 = scmp.ne.s32.totalorder %s5920_s11, %s7243_s8  ;;  %s7247_s17 = sshll.u32 %s7352_s14, 4  ;;  %s7248_s17 = int_to_ptr.vmem [resolvable:$false] %s7247_s17 }
0x5eea   : > { %s7249_s9 = scalar_lea.vmem %s7248_s17, 256  ;;  %p7250_p2 = scmp.lt.s32.totalorder %s5920_s11, %s7248_s17 }
0x5eeb   : > { %p7245_p0 = pnand %p7244_p13, %p7576_p5  ;;  %p7251_p3 = scmp.lt.s32.totalorder %s7249_s9, %s7243_s8 }
0x5eec   : > { %v5870_v59 = vpop.trf.xlu1 }
0x5eed   : > { %5886 = vst.msk [vmem:[%s1109_s10] sm:$0xff] %vm3352_vm11, %v5870_v59  ;;  %p7246_p1 = pneg %p7245_p0  ;;  %p7252_p4 = por %p7251_p3, %p7250_p2 }
0x5eef   : > { %p7253_p7 = pnand %p7252_p4, %p7246_p1 }
0x5ef1   : > { %7256 = shalt.err (!%p7253_p7)
}
0x5ef2   : > { %s7257_s4 = scalar_lea.hbm %s8544_s13, 128  ;;  %s7261_s0 = scalar_lea.hbm %s7536_s6, 256 }
0x5ef3   : > { %p7258_p8 = scmp.ne.s32.totalorder %s8544_s13, %s7257_s4  ;;  %p7262_p11 = scmp.lt.s32.totalorder %s8544_s13, %s7536_s6 }
0x5ef4   : > { %p7263_p12 = scmp.lt.s32.totalorder %s7261_s0, %s7257_s4 }
0x5ef5   : > { %p7259_p9 = pnand %p7258_p8, %p7576_p5 }
0x5ef6   : > { %p7264_p13 = por %p7263_p12, %p7262_p11 }
0x5ef7   : > { %p7260_p10 = pneg %p7259_p9 }
0x5ef9   : > { %p7265_p0 = pnand %p7264_p13, %p7260_p10 }
0x5efb   : > { %7268 = shalt.err (!%p7265_p0)
}
0x5efc   : > { %6924 = dma.vmem_to_hbm [thread:$0]  (%p7576_p5), %s5920_s11, 128, %s8544_s13, %s5893_s7  }
0x5efd PF: > { %p6934_p1 = scmp.ge.s32.totalorder %s7307_s28, 2  ;;  %s5931_s17 = sand.u32 1, %s7295_s22  }
0x5efe   : > { %s5932_s14 = scalar_lea.sflag [#allocation3], %s5931_s17 }
0x5eff   : > { %p6928_p2 = pnand %p6934_p1, %p7580_p6 }
0x5f01   : > { %p6929_p3 = pneg %p6928_p2 }
0x5f03   : > { %7286 = dma.done.wait (%p6929_p3), %s5932_s14, 128  }
0x5f04   : > { %7288 = vsyncadd (%p6929_p3), %s5932_s14, 4294967168  ;;  %s5941_s1 = scalar_lea.sflag [#allocation5], %s5931_s17 }
0x5f05   : > { %7290 = dma.done.wait (%p6929_p3), %s5941_s1, 128  }
0x5f06   : > { %7292 = vsyncadd (%p6929_p3), %s5941_s1, 4294967168  ;;  %s8667_s15 = sld [smem:[#allocation35_spill]]  ;;  %p85_p5 = scmp.ge.s32.totalorder %s7563_s2, 4  }
0x5f07   : > { %s8668_s22 = smov %s7299_s23  ;;  %s8669_s23 = smov %s7303_s26 }
0x5f08   : > { %s8671_s28 = smov %s7563_s2  ;;  %87 = sbr.rel (!%p85_p5) target bundleno = 75 (0x4b), region = 252 }
0x5f0c   : > { %s8670_s26 = smov %s8667_s15 }
0x5f0d   :  { %5946 = vsyncpa [#allocation3], 1 }
0x5f0e   :  { %5948 = vsyncpa [#allocation3 + $0x1], 1 }
0x5f0f   :  { %5949 = vsyncpa [#allocation5], 1 }
0x5f10   :  { %5951 = vsyncpa [#allocation5 + $0x1], 1 }

</bundles_post_ra>
